<compile_context>
chip_gen: v5e
topology: v5e:2x2
jax: 0.10.0
libtpu: 0.0.40
codegen_flags: <defaults>
</compile_context>

<pallas_src>
import math
import jax
import jax.numpy as jnp
from jax.experimental import pallas as pl
from jax.experimental.pallas import tpu as pltpu

NUM_HEADS = 4
LN_EPS = 1e-5


def _layernorm(v, g, b):
    mu = jnp.mean(v, axis=-1, keepdims=True)
    var = jnp.mean((v - mu) ** 2, axis=-1, keepdims=True)
    return (v - mu) * jax.lax.rsqrt(var + LN_EPS) * g + b


def _gelu_exact(v):
    # matches torch.nn.GELU() default (erf-based, not tanh approximation)
    return 0.5 * v * (1.0 + jax.lax.erf(v * (1.0 / math.sqrt(2.0))))


def _matmul_operand_dtype(n_tokens, channels):
    # bf16 MXU operands (f32 accumulation) double v6e/v7x MXU throughput but only
    # matter once C/N grow beyond toy size; keep exact f32 at small shapes.
    if channels >= 128 or n_tokens >= 1024:
        return jnp.bfloat16
    return jnp.float32


def self_attention_kernel(x_ref, ln1_g, ln1_b, w_qkv, b_qkv, wo, bo,
                          ln2_g, ln2_b, w1, b1, w2, b2, o_ref):
    bb, N, C = x_ref.shape
    H = NUM_HEADS
    d = C // H
    scale = 1.0 / math.sqrt(d)
    mm = _matmul_operand_dtype(N, C)

    x = x_ref[...].reshape(bb * N, C)                       # (bb*N, C) f32

    # ---- LayerNorm 1 ----
    x_ln = _layernorm(x, ln1_g[...], ln1_b[...])

    # ---- fused QKV projection: one MXU pass with a 3C-wide output ----
    qkv = jnp.dot(x_ln.astype(mm), w_qkv[...].astype(mm),
                  preferred_element_type=jnp.float32) + b_qkv[...]   # (bb*N, 3C)

    # ---- head-batched attention over G = bb*H sequences of (N, d) ----
    def to_heads(t2d):                                       # (bb*N, C) -> (bb*H, N, d)
        parts = [t2d[:, h * d:(h + 1) * d].reshape(bb, N, d) for h in range(H)]
        return jnp.stack(parts, axis=1).reshape(bb * H, N, d)

    # scale Q before the score matmul: cheaper than scaling the (N, N) scores
    qh = to_heads(qkv[:, 0 * C:1 * C]) * scale
    kh = to_heads(qkv[:, 1 * C:2 * C])
    vh = to_heads(qkv[:, 2 * C:3 * C])

    # Full (G, N, N) scores are tiny here (N = size^2 = 64); a flash-style tiling
    # is only needed if N scales into the thousands (v7x VMEM budget).
    s = jnp.einsum('gqd,gkd->gqk', qh.astype(mm), kh.astype(mm),
                   preferred_element_type=jnp.float32)                # (bb*H, N, N)
    s = s - jnp.max(s, axis=-1, keepdims=True)
    p = jnp.exp(s)
    p = p * pl.reciprocal(jnp.sum(p, axis=-1, keepdims=True), approx=True)
    ctx = jnp.einsum('gqk,gkd->gqd', p.astype(mm), vh.astype(mm),
                     preferred_element_type=jnp.float32)              # (bb*H, N, d)

    # merge heads back to (bb*N, C): single lane-axis relayout
    ctx4 = ctx.reshape(bb, H, N, d)
    attn = jnp.concatenate([ctx4[:, h].reshape(bb * N, d) for h in range(H)],
                           axis=-1)                                   # (bb*N, C)

    # ---- output projection + residual 1 ----
    attn = jnp.dot(attn.astype(mm), wo[...].astype(mm),
                   preferred_element_type=jnp.float32) + bo[...]
    h1 = attn + x

    # ---- feed-forward: LayerNorm -> Linear -> GELU -> Linear + residual 2 ----
    h_ln = _layernorm(h1, ln2_g[...], ln2_b[...])
    ff = jnp.dot(h_ln.astype(mm), w1[...].astype(mm),
                 preferred_element_type=jnp.float32) + b1[...]
    ff = _gelu_exact(ff)
    ff = jnp.dot(ff.astype(mm), w2[...].astype(mm),
                 preferred_element_type=jnp.float32) + b2[...]
    out = ff + h1

    o_ref[...] = out.reshape(bb, N, C).astype(o_ref.dtype)


def init_params(key, channels):
    C = channels
    ks = jax.random.split(key, 8)
    s = 0.1
    # Linear weights stored pre-transposed to (in_features, out_features) so the
    # kernel does y = x @ W + b directly.  bqkv rows are (q, k, v), matching the
    # PyTorch in_proj chunking order.
    return dict(
        ln1_g=jnp.ones((1, C), jnp.float32),
        ln1_b=jnp.zeros((1, C), jnp.float32),
        wq=jax.random.normal(ks[0], (C, C), jnp.float32) * s,
        wk=jax.random.normal(ks[1], (C, C), jnp.float32) * s,
        wv=jax.random.normal(ks[2], (C, C), jnp.float32) * s,
        bqkv=jax.random.normal(ks[3], (3, C), jnp.float32) * s,
        wo=jax.random.normal(ks[4], (C, C), jnp.float32) * s,
        bo=jnp.zeros((1, C), jnp.float32),
        ln2_g=jnp.ones((1, C), jnp.float32),
        ln2_b=jnp.zeros((1, C), jnp.float32),
        w1=jax.random.normal(ks[5], (C, C), jnp.float32) * s,
        b1=jax.random.normal(ks[6], (1, C), jnp.float32) * s,
        w2=jax.random.normal(ks[7], (C, C), jnp.float32) * s,
        b2=jnp.zeros((1, C), jnp.float32),
    )


def _tensorcores_per_chip():
    # v7x has 2 TensorCores per chip (shard the batch across them); v5e/v6e have 1.
    try:
        kind = jax.devices()[0].device_kind.lower()
    except Exception:
        return 1
    return 2 if ("v7" in kind or "tpu7" in kind) else 1


def self_attention(x, params):
    B, C, S, _ = x.shape
    N = S * S
    assert C % NUM_HEADS == 0

    # NCHW -> (B, N, C) sequence layout
    x_seq = jnp.transpose(x.reshape(B, C, N), (0, 2, 1))

    # Fuse the QKV projection outside the kernel (free): (C, 3C) weight, (1, 3C)
    # bias, column/row order q|k|v to match PyTorch in_proj chunking.
    w_qkv = jnp.concatenate([params["wq"], params["wk"], params["wv"]], axis=1)
    b_qkv = params["bqkv"].reshape(1, 3 * C)

    param_list = [params["ln1_g"], params["ln1_b"], w_qkv, b_qkv,
                  params["wo"], params["bo"], params["ln2_g"], params["ln2_b"],
                  params["w1"], params["b1"], params["w2"], params["b2"]]

    # Chip-aware batching: single invocation on 1-TC chips (grid steps only add
    # fixed overhead there); parallel batch grid on v7x for the 2 TensorCores.
    n_cores = _tensorcores_per_chip()
    n_blocks = n_cores if (n_cores > 1 and B % n_cores == 0) else 1
    bb = B // n_blocks

    in_specs = [pl.BlockSpec((bb, N, C), lambda i: (i, 0, 0))]
    in_specs += [pl.BlockSpec(p.shape, lambda i: (0, 0)) for p in param_list]

    out = pl.pallas_call(
        self_attention_kernel,
        out_shape=jax.ShapeDtypeStruct((B, N, C), x.dtype),
        grid=(n_blocks,),
        in_specs=in_specs,
        out_specs=pl.BlockSpec((bb, N, C), lambda i: (i, 0, 0)),
        compiler_params=pltpu.CompilerParams(
            dimension_semantics=("parallel",)),
    )(x_seq, *param_list)

    # (B, N, C) -> NCHW
    return jnp.transpose(out, (0, 2, 1)).reshape(B, C, S, S)


def self_attention_reference(x, params):
    # Pure-JAX reference of the same forward pass (for correctness check).
    B, C, S, _ = x.shape
    N, H = S * S, NUM_HEADS
    d = C // H
    xs = jnp.transpose(x.reshape(B, C, N), (0, 2, 1)).astype(jnp.float32)

    def ln(v, g, b):
        mu = jnp.mean(v, -1, keepdims=True)
        var = jnp.mean((v - mu) ** 2, -1, keepdims=True)
        return (v - mu) / jnp.sqrt(var + LN_EPS) * g + b

    x_ln = ln(xs, params["ln1_g"], params["ln1_b"])
    q = x_ln @ params["wq"] + params["bqkv"][0]
    k = x_ln @ params["wk"] + params["bqkv"][1]
    v = x_ln @ params["wv"] + params["bqkv"][2]

    def heads(t):
        return t.reshape(B, N, H, d).transpose(0, 2, 1, 3)

    qh, kh, vh = heads(q), heads(k), heads(v)
    s = jnp.einsum('bhqd,bhkd->bhqk', qh, kh) / math.sqrt(d)
    p = jax.nn.softmax(s, axis=-1)
    ctx = jnp.einsum('bhqk,bhkd->bhqd', p, vh)
    attn = ctx.transpose(0, 2, 1, 3).reshape(B, N, C) @ params["wo"] + params["bo"]
    h1 = attn + xs
    h_ln = ln(h1, params["ln2_g"], params["ln2_b"])
    ff = h_ln @ params["w1"] + params["b1"]
    ff = 0.5 * ff * (1.0 + jax.lax.erf(ff / math.sqrt(2.0)))
    ff = ff @ params["w2"] + params["b2"]
    out = ff + h1
    return jnp.transpose(out, (0, 2, 1)).reshape(B, C, S, S)


if __name__ == "__main__":
    B, CHANNELS, SIZE = 2, 32, 8          # channels must be divisible by 4 heads
    key = jax.random.PRNGKey(0)
    kx, kp = jax.random.split(key)
    x = jax.random.normal(kx, (B, CHANNELS, SIZE, SIZE), jnp.float32)
    params = init_params(kp, CHANNELS)

    y = self_attention(x, params)
    jax.block_until_ready(y)
    assert y.shape == (B, CHANNELS, SIZE, SIZE)

    y_ref = self_attention_reference(x, params)
    max_err = float(jnp.max(jnp.abs(y - y_ref)))
    assert jnp.allclose(y, y_ref, rtol=2e-2, atol=2e-2), max_err
    print("KERNEL_OK")
</pallas_src>

<mosaic_0001>
module attributes {stable_mosaic.version = 11 : i64} {
  func.func @self_attention_kernel(%arg0: i32, %arg1: memref<2x64x32xf32, #tpu.memory_space<vmem>>, %arg2: memref<1x32xf32, #tpu.memory_space<vmem>>, %arg3: memref<1x32xf32, #tpu.memory_space<vmem>>, %arg4: memref<32x96xf32, #tpu.memory_space<vmem>>, %arg5: memref<1x96xf32, #tpu.memory_space<vmem>>, %arg6: memref<32x32xf32, #tpu.memory_space<vmem>>, %arg7: memref<1x32xf32, #tpu.memory_space<vmem>>, %arg8: memref<1x32xf32, #tpu.memory_space<vmem>>, %arg9: memref<1x32xf32, #tpu.memory_space<vmem>>, %arg10: memref<32x32xf32, #tpu.memory_space<vmem>>, %arg11: memref<1x32xf32, #tpu.memory_space<vmem>>, %arg12: memref<32x32xf32, #tpu.memory_space<vmem>>, %arg13: memref<1x32xf32, #tpu.memory_space<vmem>>, %arg14: memref<2x64x32xf32, #tpu.memory_space<vmem>>) attributes {dimension_semantics = [#tpu.dimension_semantics<parallel>], iteration_bounds = array<i64: 1>, scalar_prefetch = 0 : i64, scratch_operands = 0 : i64, tpu.core_type = #tpu.core_type<tc>, window_params = [{transform_indices = @transform_0, window_bounds = array<i64: 2, 64, 32>}, {pipeline_mode = #tpu.pipeline_mode<synchronous>, transform_indices = @transform_1, window_bounds = array<i64: 1, 32>}, {pipeline_mode = #tpu.pipeline_mode<synchronous>, transform_indices = @transform_2, window_bounds = array<i64: 1, 32>}, {pipeline_mode = #tpu.pipeline_mode<synchronous>, transform_indices = @transform_3, window_bounds = array<i64: 32, 96>}, {pipeline_mode = #tpu.pipeline_mode<synchronous>, transform_indices = @transform_4, window_bounds = array<i64: 1, 96>}, {pipeline_mode = #tpu.pipeline_mode<synchronous>, transform_indices = @transform_5, window_bounds = array<i64: 32, 32>}, {pipeline_mode = #tpu.pipeline_mode<synchronous>, transform_indices = @transform_6, window_bounds = array<i64: 1, 32>}, {pipeline_mode = #tpu.pipeline_mode<synchronous>, transform_indices = @transform_7, window_bounds = array<i64: 1, 32>}, {pipeline_mode = #tpu.pipeline_mode<synchronous>, transform_indices = @transform_8, window_bounds = array<i64: 1, 32>}, {pipeline_mode = #tpu.pipeline_mode<synchronous>, transform_indices = @transform_9, window_bounds = array<i64: 32, 32>}, {pipeline_mode = #tpu.pipeline_mode<synchronous>, transform_indices = @transform_10, window_bounds = array<i64: 1, 32>}, {pipeline_mode = #tpu.pipeline_mode<synchronous>, transform_indices = @transform_11, window_bounds = array<i64: 32, 32>}, {pipeline_mode = #tpu.pipeline_mode<synchronous>, transform_indices = @transform_12, window_bounds = array<i64: 1, 32>}, {transform_indices = @transform_13, window_bounds = array<i64: 2, 64, 32>}]} {
    %c0 = arith.constant 0 : index
    %c0_0 = arith.constant 0 : index
    %c0_1 = arith.constant 0 : index
    %0 = vector.load %arg1[%c0, %c0_0, %c0_1] : memref<2x64x32xf32, #tpu.memory_space<vmem>>, vector<2x64x32xf32>
    %1 = vector.shape_cast %0 : vector<2x64x32xf32> to vector<128x32xf32>
    %c0_2 = arith.constant 0 : index
    %c0_3 = arith.constant 0 : index
    %2 = vector.load %arg2[%c0_2, %c0_3] : memref<1x32xf32, #tpu.memory_space<vmem>>, vector<1x32xf32>
    %c0_4 = arith.constant 0 : index
    %c0_5 = arith.constant 0 : index
    %3 = vector.load %arg3[%c0_4, %c0_5] : memref<1x32xf32, #tpu.memory_space<vmem>>, vector<1x32xf32>
    %cst = arith.constant dense<0.000000e+00> : vector<128xf32>
    %4 = vector.multi_reduction <add>, %1, %cst [1] : vector<128x32xf32> to vector<128xf32>
    %5 = vector.shape_cast %4 : vector<128xf32> to vector<128x1xf32>
    %cst_6 = arith.constant 3.200000e+01 : f32
    %6 = vector.broadcast %cst_6 : f32 to vector<128x1xf32>
    %7 = arith.divf %5, %6 : vector<128x1xf32>
    %8 = vector.broadcast %7 : vector<128x1xf32> to vector<128x32xf32>
    %9 = arith.subf %1, %8 : vector<128x32xf32>
    %10 = arith.mulf %9, %9 : vector<128x32xf32>
    %cst_7 = arith.constant dense<0.000000e+00> : vector<128xf32>
    %11 = vector.multi_reduction <add>, %10, %cst_7 [1] : vector<128x32xf32> to vector<128xf32>
    %12 = vector.shape_cast %11 : vector<128xf32> to vector<128x1xf32>
    %cst_8 = arith.constant 3.200000e+01 : f32
    %13 = vector.broadcast %cst_8 : f32 to vector<128x1xf32>
    %14 = arith.divf %12, %13 : vector<128x1xf32>
    %15 = vector.broadcast %7 : vector<128x1xf32> to vector<128x32xf32>
    %16 = arith.subf %1, %15 : vector<128x32xf32>
    %cst_9 = arith.constant 9.99999974E-6 : f32
    %17 = vector.broadcast %cst_9 : f32 to vector<128x1xf32>
    %18 = arith.addf %14, %17 : vector<128x1xf32>
    %19 = math.rsqrt %18 : vector<128x1xf32>
    %20 = vector.broadcast %19 : vector<128x1xf32> to vector<128x32xf32>
    %21 = arith.mulf %16, %20 : vector<128x32xf32>
    %22 = vector.broadcast %2 : vector<1x32xf32> to vector<128x32xf32>
    %23 = arith.mulf %21, %22 : vector<128x32xf32>
    %24 = vector.broadcast %3 : vector<1x32xf32> to vector<128x32xf32>
    %25 = arith.addf %23, %24 : vector<128x32xf32>
    %c0_10 = arith.constant 0 : index
    %c0_11 = arith.constant 0 : index
    %26 = vector.load %arg4[%c0_10, %c0_11] : memref<32x96xf32, #tpu.memory_space<vmem>>, vector<32x96xf32>
    %cst_12 = arith.constant dense<0.000000e+00> : vector<128x96xf32>
    %27 = tpu.matmul %25, %26, %cst_12 {dimension_numbers = #tpu.dot_dimension_numbers<[1], [0], [0], [1], [0, 0, 1, 1], [], []>} : vector<128x32xf32>, vector<32x96xf32>, vector<128x96xf32> -> vector<128x96xf32>
    %c0_13 = arith.constant 0 : index
    %c0_14 = arith.constant 0 : index
    %28 = vector.load %arg5[%c0_13, %c0_14] : memref<1x96xf32, #tpu.memory_space<vmem>>, vector<1x96xf32>
    %29 = vector.broadcast %28 : vector<1x96xf32> to vector<128x96xf32>
    %30 = arith.addf %27, %29 : vector<128x96xf32>
    %31 = vector.extract_strided_slice %30 {offsets = [0, 0], sizes = [128, 32], strides = [1, 1]} : vector<128x96xf32> to vector<128x32xf32>
    %32 = vector.extract_strided_slice %31 {offsets = [0, 0], sizes = [128, 8], strides = [1, 1]} : vector<128x32xf32> to vector<128x8xf32>
    %33 = vector.shape_cast %32 : vector<128x8xf32> to vector<2x64x8xf32>
    %34 = vector.extract_strided_slice %31 {offsets = [0, 8], sizes = [128, 8], strides = [1, 1]} : vector<128x32xf32> to vector<128x8xf32>
    %35 = vector.shape_cast %34 : vector<128x8xf32> to vector<2x64x8xf32>
    %36 = vector.extract_strided_slice %31 {offsets = [0, 16], sizes = [128, 8], strides = [1, 1]} : vector<128x32xf32> to vector<128x8xf32>
    %37 = vector.shape_cast %36 : vector<128x8xf32> to vector<2x64x8xf32>
    %38 = vector.extract_strided_slice %31 {offsets = [0, 24], sizes = [128, 8], strides = [1, 1]} : vector<128x32xf32> to vector<128x8xf32>
    %39 = vector.shape_cast %38 : vector<128x8xf32> to vector<2x64x8xf32>
    %40 = vector.shape_cast %33 : vector<2x64x8xf32> to vector<2x1x64x8xf32>
    %41 = vector.shape_cast %35 : vector<2x64x8xf32> to vector<2x1x64x8xf32>
    %42 = vector.shape_cast %37 : vector<2x64x8xf32> to vector<2x1x64x8xf32>
    %43 = vector.shape_cast %39 : vector<2x64x8xf32> to vector<2x1x64x8xf32>
    %44 = tpu.concatenate %40, %41, %42, %43 in 1 : vector<2x1x64x8xf32>, vector<2x1x64x8xf32>, vector<2x1x64x8xf32>, vector<2x1x64x8xf32> -> vector<2x4x64x8xf32>
    %45 = vector.shape_cast %44 : vector<2x4x64x8xf32> to vector<8x64x8xf32>
    %cst_15 = arith.constant 0.353553385 : f32
    %46 = vector.broadcast %cst_15 : f32 to vector<8x64x8xf32>
    %47 = arith.mulf %45, %46 : vector<8x64x8xf32>
    %48 = vector.extract_strided_slice %30 {offsets = [0, 32], sizes = [128, 32], strides = [1, 1]} : vector<128x96xf32> to vector<128x32xf32>
    %49 = vector.extract_strided_slice %48 {offsets = [0, 0], sizes = [128, 8], strides = [1, 1]} : vector<128x32xf32> to vector<128x8xf32>
    %50 = vector.shape_cast %49 : vector<128x8xf32> to vector<2x64x8xf32>
    %51 = vector.extract_strided_slice %48 {offsets = [0, 8], sizes = [128, 8], strides = [1, 1]} : vector<128x32xf32> to vector<128x8xf32>
    %52 = vector.shape_cast %51 : vector<128x8xf32> to vector<2x64x8xf32>
    %53 = vector.extract_strided_slice %48 {offsets = [0, 16], sizes = [128, 8], strides = [1, 1]} : vector<128x32xf32> to vector<128x8xf32>
    %54 = vector.shape_cast %53 : vector<128x8xf32> to vector<2x64x8xf32>
    %55 = vector.extract_strided_slice %48 {offsets = [0, 24], sizes = [128, 8], strides = [1, 1]} : vector<128x32xf32> to vector<128x8xf32>
    %56 = vector.shape_cast %55 : vector<128x8xf32> to vector<2x64x8xf32>
    %57 = vector.shape_cast %50 : vector<2x64x8xf32> to vector<2x1x64x8xf32>
    %58 = vector.shape_cast %52 : vector<2x64x8xf32> to vector<2x1x64x8xf32>
    %59 = vector.shape_cast %54 : vector<2x64x8xf32> to vector<2x1x64x8xf32>
    %60 = vector.shape_cast %56 : vector<2x64x8xf32> to vector<2x1x64x8xf32>
    %61 = tpu.concatenate %57, %58, %59, %60 in 1 : vector<2x1x64x8xf32>, vector<2x1x64x8xf32>, vector<2x1x64x8xf32>, vector<2x1x64x8xf32> -> vector<2x4x64x8xf32>
    %62 = vector.shape_cast %61 : vector<2x4x64x8xf32> to vector<8x64x8xf32>
    %63 = vector.extract_strided_slice %30 {offsets = [0, 64], sizes = [128, 32], strides = [1, 1]} : vector<128x96xf32> to vector<128x32xf32>
    %64 = vector.extract_strided_slice %63 {offsets = [0, 0], sizes = [128, 8], strides = [1, 1]} : vector<128x32xf32> to vector<128x8xf32>
    %65 = vector.shape_cast %64 : vector<128x8xf32> to vector<2x64x8xf32>
    %66 = vector.extract_strided_slice %63 {offsets = [0, 8], sizes = [128, 8], strides = [1, 1]} : vector<128x32xf32> to vector<128x8xf32>
    %67 = vector.shape_cast %66 : vector<128x8xf32> to vector<2x64x8xf32>
    %68 = vector.extract_strided_slice %63 {offsets = [0, 16], sizes = [128, 8], strides = [1, 1]} : vector<128x32xf32> to vector<128x8xf32>
    %69 = vector.shape_cast %68 : vector<128x8xf32> to vector<2x64x8xf32>
    %70 = vector.extract_strided_slice %63 {offsets = [0, 24], sizes = [128, 8], strides = [1, 1]} : vector<128x32xf32> to vector<128x8xf32>
    %71 = vector.shape_cast %70 : vector<128x8xf32> to vector<2x64x8xf32>
    %72 = vector.shape_cast %65 : vector<2x64x8xf32> to vector<2x1x64x8xf32>
    %73 = vector.shape_cast %67 : vector<2x64x8xf32> to vector<2x1x64x8xf32>
    %74 = vector.shape_cast %69 : vector<2x64x8xf32> to vector<2x1x64x8xf32>
    %75 = vector.shape_cast %71 : vector<2x64x8xf32> to vector<2x1x64x8xf32>
    %76 = tpu.concatenate %72, %73, %74, %75 in 1 : vector<2x1x64x8xf32>, vector<2x1x64x8xf32>, vector<2x1x64x8xf32>, vector<2x1x64x8xf32> -> vector<2x4x64x8xf32>
    %77 = vector.shape_cast %76 : vector<2x4x64x8xf32> to vector<8x64x8xf32>
    "tpu.trace_start"() <{level = 10 : i32, message = "gqd,gkd->gqk"}> : () -> ()
    %cst_16 = arith.constant dense<0.000000e+00> : vector<8x64x64xf32>
    %78 = tpu.matmul %47, %62, %cst_16 {dimension_numbers = #tpu.dot_dimension_numbers<[2], [2], [1], [1], [0, 0, 0, 1, 1, 1], [0], [0]>} : vector<8x64x8xf32>, vector<8x64x8xf32>, vector<8x64x64xf32> -> vector<8x64x64xf32>
    "tpu.trace_stop"() : () -> ()
    %cst_17 = arith.constant dense<0xFF800000> : vector<8x64xf32>
    %79 = vector.multi_reduction <maximumf>, %78, %cst_17 [2] : vector<8x64x64xf32> to vector<8x64xf32>
    %80 = vector.shape_cast %79 : vector<8x64xf32> to vector<8x64x1xf32>
    %81 = vector.broadcast %80 : vector<8x64x1xf32> to vector<8x64x64xf32>
    %82 = arith.subf %78, %81 : vector<8x64x64xf32>
    %83 = math.exp %82 : vector<8x64x64xf32>
    %cst_18 = arith.constant dense<0.000000e+00> : vector<8x64xf32>
    %84 = vector.multi_reduction <add>, %83, %cst_18 [2] : vector<8x64x64xf32> to vector<8x64xf32>
    %85 = vector.shape_cast %84 : vector<8x64xf32> to vector<8x64x1xf32>
    %86 = tpu.reciprocal %85 {approx = true} : vector<8x64x1xf32> -> vector<8x64x1xf32>
    %87 = vector.broadcast %86 : vector<8x64x1xf32> to vector<8x64x64xf32>
    %88 = arith.mulf %83, %87 : vector<8x64x64xf32>
    "tpu.trace_start"() <{level = 10 : i32, message = "gqk,gkd->gqd"}> : () -> ()
    %cst_19 = arith.constant dense<0.000000e+00> : vector<8x64x8xf32>
    %89 = tpu.matmul %88, %77, %cst_19 {dimension_numbers = #tpu.dot_dimension_numbers<[2], [1], [1], [2], [0, 0, 0, 1, 1, 2], [0], [0]>} : vector<8x64x64xf32>, vector<8x64x8xf32>, vector<8x64x8xf32> -> vector<8x64x8xf32>
    "tpu.trace_stop"() : () -> ()
    %90 = vector.shape_cast %89 : vector<8x64x8xf32> to vector<2x4x64x8xf32>
    %91 = vector.extract_strided_slice %90 {offsets = [0, 0, 0, 0], sizes = [2, 1, 64, 8], strides = [1, 1, 1, 1]} : vector<2x4x64x8xf32> to vector<2x1x64x8xf32>
    %92 = vector.shape_cast %91 : vector<2x1x64x8xf32> to vector<2x64x8xf32>
    %93 = vector.shape_cast %92 : vector<2x64x8xf32> to vector<128x8xf32>
    %94 = vector.extract_strided_slice %90 {offsets = [0, 1, 0, 0], sizes = [2, 1, 64, 8], strides = [1, 1, 1, 1]} : vector<2x4x64x8xf32> to vector<2x1x64x8xf32>
    %95 = vector.shape_cast %94 : vector<2x1x64x8xf32> to vector<2x64x8xf32>
    %96 = vector.shape_cast %95 : vector<2x64x8xf32> to vector<128x8xf32>
    %97 = vector.extract_strided_slice %90 {offsets = [0, 2, 0, 0], sizes = [2, 1, 64, 8], strides = [1, 1, 1, 1]} : vector<2x4x64x8xf32> to vector<2x1x64x8xf32>
    %98 = vector.shape_cast %97 : vector<2x1x64x8xf32> to vector<2x64x8xf32>
    %99 = vector.shape_cast %98 : vector<2x64x8xf32> to vector<128x8xf32>
    %100 = vector.extract_strided_slice %90 {offsets = [0, 3, 0, 0], sizes = [2, 1, 64, 8], strides = [1, 1, 1, 1]} : vector<2x4x64x8xf32> to vector<2x1x64x8xf32>
    %101 = vector.shape_cast %100 : vector<2x1x64x8xf32> to vector<2x64x8xf32>
    %102 = vector.shape_cast %101 : vector<2x64x8xf32> to vector<128x8xf32>
    %103 = tpu.concatenate %93, %96, %99, %102 in 1 : vector<128x8xf32>, vector<128x8xf32>, vector<128x8xf32>, vector<128x8xf32> -> vector<128x32xf32>
    %c0_20 = arith.constant 0 : index
    %c0_21 = arith.constant 0 : index
    %104 = vector.load %arg6[%c0_20, %c0_21] : memref<32x32xf32, #tpu.memory_space<vmem>>, vector<32x32xf32>
    %cst_22 = arith.constant dense<0.000000e+00> : vector<128x32xf32>
    %105 = tpu.matmul %103, %104, %cst_22 {dimension_numbers = #tpu.dot_dimension_numbers<[1], [0], [0], [1], [0, 0, 1, 1], [], []>} : vector<128x32xf32>, vector<32x32xf32>, vector<128x32xf32> -> vector<128x32xf32>
    %c0_23 = arith.constant 0 : index
    %c0_24 = arith.constant 0 : index
    %106 = vector.load %arg7[%c0_23, %c0_24] : memref<1x32xf32, #tpu.memory_space<vmem>>, vector<1x32xf32>
    %107 = vector.broadcast %106 : vector<1x32xf32> to vector<128x32xf32>
    %108 = arith.addf %105, %107 : vector<128x32xf32>
    %109 = arith.addf %108, %1 : vector<128x32xf32>
    %c0_25 = arith.constant 0 : index
    %c0_26 = arith.constant 0 : index
    %110 = vector.load %arg8[%c0_25, %c0_26] : memref<1x32xf32, #tpu.memory_space<vmem>>, vector<1x32xf32>
    %c0_27 = arith.constant 0 : index
    %c0_28 = arith.constant 0 : index
    %111 = vector.load %arg9[%c0_27, %c0_28] : memref<1x32xf32, #tpu.memory_space<vmem>>, vector<1x32xf32>
    %cst_29 = arith.constant dense<0.000000e+00> : vector<128xf32>
    %112 = vector.multi_reduction <add>, %109, %cst_29 [1] : vector<128x32xf32> to vector<128xf32>
    %113 = vector.shape_cast %112 : vector<128xf32> to vector<128x1xf32>
    %cst_30 = arith.constant 3.200000e+01 : f32
    %114 = vector.broadcast %cst_30 : f32 to vector<128x1xf32>
    %115 = arith.divf %113, %114 : vector<128x1xf32>
    %116 = vector.broadcast %115 : vector<128x1xf32> to vector<128x32xf32>
    %117 = arith.subf %109, %116 : vector<128x32xf32>
    %118 = arith.mulf %117, %117 : vector<128x32xf32>
    %cst_31 = arith.constant dense<0.000000e+00> : vector<128xf32>
    %119 = vector.multi_reduction <add>, %118, %cst_31 [1] : vector<128x32xf32> to vector<128xf32>
    %120 = vector.shape_cast %119 : vector<128xf32> to vector<128x1xf32>
    %cst_32 = arith.constant 3.200000e+01 : f32
    %121 = vector.broadcast %cst_32 : f32 to vector<128x1xf32>
    %122 = arith.divf %120, %121 : vector<128x1xf32>
    %123 = vector.broadcast %115 : vector<128x1xf32> to vector<128x32xf32>
    %124 = arith.subf %109, %123 : vector<128x32xf32>
    %cst_33 = arith.constant 9.99999974E-6 : f32
    %125 = vector.broadcast %cst_33 : f32 to vector<128x1xf32>
    %126 = arith.addf %122, %125 : vector<128x1xf32>
    %127 = math.rsqrt %126 : vector<128x1xf32>
    %128 = vector.broadcast %127 : vector<128x1xf32> to vector<128x32xf32>
    %129 = arith.mulf %124, %128 : vector<128x32xf32>
    %130 = vector.broadcast %110 : vector<1x32xf32> to vector<128x32xf32>
    %131 = arith.mulf %129, %130 : vector<128x32xf32>
    %132 = vector.broadcast %111 : vector<1x32xf32> to vector<128x32xf32>
    %133 = arith.addf %131, %132 : vector<128x32xf32>
    %c0_34 = arith.constant 0 : index
    %c0_35 = arith.constant 0 : index
    %134 = vector.load %arg10[%c0_34, %c0_35] : memref<32x32xf32, #tpu.memory_space<vmem>>, vector<32x32xf32>
    %cst_36 = arith.constant dense<0.000000e+00> : vector<128x32xf32>
    %135 = tpu.matmul %133, %134, %cst_36 {dimension_numbers = #tpu.dot_dimension_numbers<[1], [0], [0], [1], [0, 0, 1, 1], [], []>} : vector<128x32xf32>, vector<32x32xf32>, vector<128x32xf32> -> vector<128x32xf32>
    %c0_37 = arith.constant 0 : index
    %c0_38 = arith.constant 0 : index
    %136 = vector.load %arg11[%c0_37, %c0_38] : memref<1x32xf32, #tpu.memory_space<vmem>>, vector<1x32xf32>
    %137 = vector.broadcast %136 : vector<1x32xf32> to vector<128x32xf32>
    %138 = arith.addf %135, %137 : vector<128x32xf32>
    %cst_39 = arith.constant 5.000000e-01 : f32
    %139 = vector.broadcast %cst_39 : f32 to vector<128x32xf32>
    %140 = arith.mulf %139, %138 : vector<128x32xf32>
    %cst_40 = arith.constant 0.707106769 : f32
    %141 = vector.broadcast %cst_40 : f32 to vector<128x32xf32>
    %142 = arith.mulf %138, %141 : vector<128x32xf32>
    %143 = math.erf %142 : vector<128x32xf32>
    %cst_41 = arith.constant 1.000000e+00 : f32
    %144 = vector.broadcast %cst_41 : f32 to vector<128x32xf32>
    %145 = arith.addf %144, %143 : vector<128x32xf32>
    %146 = arith.mulf %140, %145 : vector<128x32xf32>
    %c0_42 = arith.constant 0 : index
    %c0_43 = arith.constant 0 : index
    %147 = vector.load %arg12[%c0_42, %c0_43] : memref<32x32xf32, #tpu.memory_space<vmem>>, vector<32x32xf32>
    %cst_44 = arith.constant dense<0.000000e+00> : vector<128x32xf32>
    %148 = tpu.matmul %146, %147, %cst_44 {dimension_numbers = #tpu.dot_dimension_numbers<[1], [0], [0], [1], [0, 0, 1, 1], [], []>} : vector<128x32xf32>, vector<32x32xf32>, vector<128x32xf32> -> vector<128x32xf32>
    %c0_45 = arith.constant 0 : index
    %c0_46 = arith.constant 0 : index
    %149 = vector.load %arg13[%c0_45, %c0_46] : memref<1x32xf32, #tpu.memory_space<vmem>>, vector<1x32xf32>
    %150 = vector.broadcast %149 : vector<1x32xf32> to vector<128x32xf32>
    %151 = arith.addf %148, %150 : vector<128x32xf32>
    %152 = arith.addf %151, %109 : vector<128x32xf32>
    %153 = vector.shape_cast %152 : vector<128x32xf32> to vector<2x64x32xf32>
    %c0_47 = arith.constant 0 : index
    %c0_48 = arith.constant 0 : index
    %c0_49 = arith.constant 0 : index
    %154 = vector.load %arg14[%c0_47, %c0_48, %c0_49] : memref<2x64x32xf32, #tpu.memory_space<vmem>>, vector<2x64x32xf32>
    tpu.vector_store %arg14[%c0_47, %c0_48, %c0_49], %153 {strides = array<i32>} : memref<2x64x32xf32, #tpu.memory_space<vmem>>, vector<2x64x32xf32>,
    return
  }
  func.func @transform_0(%arg0: i32) -> (i32, i32, i32) {
    %c0_i32 = arith.constant 0 : i32
    %c0_i32_0 = arith.constant 0 : i32
    %c0_i32_1 = arith.constant 0 : i32
    return %arg0, %c0_i32, %c0_i32_0 : i32, i32, i32
  }
  func.func @transform_1(%arg0: i32) -> (i32, i32) {
    %c0_i32 = arith.constant 0 : i32
    %c0_i32_0 = arith.constant 0 : i32
    %c0_i32_1 = arith.constant 0 : i32
    return %c0_i32, %c0_i32_0 : i32, i32
  }
  func.func @transform_2(%arg0: i32) -> (i32, i32) {
    %c0_i32 = arith.constant 0 : i32
    %c0_i32_0 = arith.constant 0 : i32
    %c0_i32_1 = arith.constant 0 : i32
    return %c0_i32, %c0_i32_0 : i32, i32
  }
  func.func @transform_3(%arg0: i32) -> (i32, i32) {
    %c0_i32 = arith.constant 0 : i32
    %c0_i32_0 = arith.constant 0 : i32
    %c0_i32_1 = arith.constant 0 : i32
    return %c0_i32, %c0_i32_0 : i32, i32
  }
  func.func @transform_4(%arg0: i32) -> (i32, i32) {
    %c0_i32 = arith.constant 0 : i32
    %c0_i32_0 = arith.constant 0 : i32
    %c0_i32_1 = arith.constant 0 : i32
    return %c0_i32, %c0_i32_0 : i32, i32
  }
  func.func @transform_5(%arg0: i32) -> (i32, i32) {
    %c0_i32 = arith.constant 0 : i32
    %c0_i32_0 = arith.constant 0 : i32
    %c0_i32_1 = arith.constant 0 : i32
    return %c0_i32, %c0_i32_0 : i32, i32
  }
  func.func @transform_6(%arg0: i32) -> (i32, i32) {
    %c0_i32 = arith.constant 0 : i32
    %c0_i32_0 = arith.constant 0 : i32
    %c0_i32_1 = arith.constant 0 : i32
    return %c0_i32, %c0_i32_0 : i32, i32
  }
  func.func @transform_7(%arg0: i32) -> (i32, i32) {
    %c0_i32 = arith.constant 0 : i32
    %c0_i32_0 = arith.constant 0 : i32
    %c0_i32_1 = arith.constant 0 : i32
    return %c0_i32, %c0_i32_0 : i32, i32
  }
  func.func @transform_8(%arg0: i32) -> (i32, i32) {
    %c0_i32 = arith.constant 0 : i32
    %c0_i32_0 = arith.constant 0 : i32
    %c0_i32_1 = arith.constant 0 : i32
    return %c0_i32, %c0_i32_0 : i32, i32
  }
  func.func @transform_9(%arg0: i32) -> (i32, i32) {
    %c0_i32 = arith.constant 0 : i32
    %c0_i32_0 = arith.constant 0 : i32
    %c0_i32_1 = arith.constant 0 : i32
    return %c0_i32, %c0_i32_0 : i32, i32
  }
  func.func @transform_10(%arg0: i32) -> (i32, i32) {
    %c0_i32 = arith.constant 0 : i32
    %c0_i32_0 = arith.constant 0 : i32
    %c0_i32_1 = arith.constant 0 : i32
    return %c0_i32, %c0_i32_0 : i32, i32
  }
  func.func @transform_11(%arg0: i32) -> (i32, i32) {
    %c0_i32 = arith.constant 0 : i32
    %c0_i32_0 = arith.constant 0 : i32
    %c0_i32_1 = arith.constant 0 : i32
    return %c0_i32, %c0_i32_0 : i32, i32
  }
  func.func @transform_12(%arg0: i32) -> (i32, i32) {
    %c0_i32 = arith.constant 0 : i32
    %c0_i32_0 = arith.constant 0 : i32
    %c0_i32_1 = arith.constant 0 : i32
    return %c0_i32, %c0_i32_0 : i32, i32
  }
  func.func @transform_13(%arg0: i32) -> (i32, i32, i32) {
    %c0_i32 = arith.constant 0 : i32
    %c0_i32_0 = arith.constant 0 : i32
    %c0_i32_1 = arith.constant 0 : i32
    return %arg0, %c0_i32, %c0_i32_0 : i32, i32, i32
  }
}

</mosaic_0001>

<bundles_post_ra>
// kernel: tpu_custom_call.1
= control target key start
LH: loop header
LB: loop body
LE: loop exit
PB: predicated region body
PF: predicated region fallthrough
CT: control target
= control target key end

     0   :  { %vm62_vm0 = vcmask 261120   ;;  %v5594_v32 = vmov 32.0   ;;  %s5595_s17 = smov 104   ;;  %s5596_s18 = smov 96   ;;  %s9069_s0 = inlined_call_operand.vmem [shape: f32[2,64,32], index: 0, kind: input, shape index: {}]   ;;  %s9070_s1 = inlined_call_operand.vmem [shape: f32[1,32], index: 1, kind: input, shape index: {}]   ;;  %s9071_s2 = inlined_call_operand.vmem [shape: f32[1,32], index: 2, kind: input, shape index: {}]   ;;  %s9072_s4 = inlined_call_operand.vmem [shape: f32[1,96], index: 4, kind: input, shape index: {}]   ;;  %s9073_s3 = inlined_call_operand.vmem [shape: f32[32,96], index: 3, kind: input, shape index: {}]   ;;  %s9074_s5 = inlined_call_operand.vmem [shape: f32[32,32], index: 5, kind: input, shape index: {}]   ;;  %s9075_s6 = inlined_call_operand.vmem [shape: f32[1,32], index: 6, kind: input, shape index: {}]   ;;  %s9076_s7 = inlined_call_operand.vmem [shape: f32[1,32], index: 7, kind: input, shape index: {}]   ;;  %s9077_s8 = inlined_call_operand.vmem [shape: f32[1,32], index: 8, kind: input, shape index: {}]   ;;  %s9078_s9 = inlined_call_operand.vmem [shape: f32[32,32], index: 9, kind: input, shape index: {}]   ;;  %s9079_s10 = inlined_call_operand.vmem [shape: f32[1,32], index: 10, kind: input, shape index: {}]   ;;  %s9080_s11 = inlined_call_operand.vmem [shape: f32[32,32], index: 11, kind: input, shape index: {}]   ;;  %s9081_s12 = inlined_call_operand.vmem [shape: f32[1,32], index: 12, kind: input, shape index: {}]   ;;  %s9082_s13 = inlined_call_operand.vmem [shape: f32[2,64,32], index: 13, kind: output, shape index: {}]  }
   0x1   :  { %v5676_v0 = vld [vmem:[%s9069_s0 + $0x20] sm:$0xff]  ;;  %v46_v1 = vld [vmem:[%s9069_s0 + $0x10] sm:$0xff]  ;;  %v5691_v6 = vld [vmem:[%s9069_s0 + $0x28] sm:$0xff]  ;;  %5221 = vrcp.f32 %v5594_v32  ;;  %s5597_s19 = smov 120   ;;  %s5598_s20 = smov 112  }
   0x2   :  { %v44_v2 = vld [vmem:[%s9069_s0] sm:$0xff]  ;;  %v75_v3 = vsel %vm62_vm0, %v5676_v0, 0.0  ;;  %v69_v4 = vsel %vm62_vm0, %v46_v1, 0.0  ;;  %v5696_v7 = vld [vmem:[%s9069_s0 + $0x18] sm:$0xff]  ;;  %v5701_v8 = vld [vmem:[%s9069_s0 + $0x8] sm:$0xff]  ;;  %v78_v9 = vsel %vm62_vm0, %v5691_v6, 0.0 }
   0x3   :  { %v63_v5 = vsel %vm62_vm0, %v44_v2, 0.0  ;;  %76 = vadd.xlane.f32.xlu2 %v75_v3  ;;  %70 = vadd.xlane.f32.xlu1 %v69_v4  ;;  %v72_v10 = vsel %vm62_vm0, %v5696_v7, 0.0  ;;  %v66_v11 = vsel %vm62_vm0, %v5701_v8, 0.0  ;;  %v5712_v12 = vld [vmem:[%s9069_s0 + $0x30] sm:$0xff]  ;;  %v5717_v13 = vld [vmem:[%s9069_s0 + $0x58] sm:$0xff]  ;;  %v5733_v18 = vld [vmem:[%s9069_s0 + $0x68] sm:$0xff] }
   0x4   :  { %64 = vadd.xlane.f32.xlu0 %v63_v5  ;;  %v5722_v14 = vld [vmem:[%s9069_s0 + $0x38] sm:$0xff]  ;;  %v81_v15 = vsel %vm62_vm0, %v5712_v12, 0.0  ;;  %v96_v16 = vsel %vm62_vm0, %v5717_v13, 0.0  ;;  %v5738_v19 = vld [vmem:[%s9069_s0 + $0x70] sm:$0xff]  ;;  %v102_v21 = vsel %vm62_vm0, %v5733_v18, 0.0  ;;  %v5754_v24 = vld [vmem:[%s9069_s0 + $0x48] sm:$0xff] }
   0x5   :  { %v84_v17 = vsel %vm62_vm0, %v5722_v14, 0.0  ;;  %v5743_v20 = vld [vmem:[%s9069_s0 + $0x50] sm:$0xff]  ;;  %v105_v22 = vsel %vm62_vm0, %v5738_v19, 0.0  ;;  %v5759_v25 = vld [vmem:[%s9069_s0 + $0x60] sm:$0xff]  ;;  %v90_v26 = vsel %vm62_vm0, %v5754_v24, 0.0  ;;  %v5768_v28 = vld [vmem:[%s9069_s0 + $0x78] sm:$0xff] }
   0x6   :  { %v93_v23 = vsel %vm62_vm0, %v5743_v20, 0.0  ;;  %v99_v27 = vsel %vm62_vm0, %v5759_v25, 0.0  ;;  %v108_v29 = vsel %vm62_vm0, %v5768_v28, 0.0  ;;  %v5775_v30 = vld [vmem:[%s9069_s0 + $0x40] sm:$0xff]  ;;  %s5600_s21 = smov 8   ;;  %s5601_s22 = smov 24  }
   0x7   :  { %v87_v31 = vsel %vm62_vm0, %v5775_v30, 0.0  ;;  %v5222_v33 = vpop.eup %5221  ;;  %s5602_s23 = smov 16  }
   0x8   :  { %v112_v34 = vmul.f32 32.0, %v5222_v33  ;;  %vm116_vm1 = vweird.f32 %v5222_v33 }
   0xa   :  { %v113_v35 = vsub.f32 1.0, %v112_v34 }
   0xb   :  { %79 = vadd.xlane.f32.xlu2 %v78_v9  ;;  %73 = vadd.xlane.f32.xlu1 %v72_v10 }
   0xc   :  { %67 = vadd.xlane.f32.xlu0 %v66_v11  ;;  %v114_v36 = vmul.f32 %v5222_v33, %v113_v35 }
   0xe   :  { %v115_v37 = vadd.f32 %v5222_v33, %v114_v36 }
  0x10   :  { %v5779_v38 = vsel %vm116_vm1, %v5222_v33, %v115_v37 }
  0x11   :  { %9179 = vst [vmem:[#allocation2_spill] sm:$0xff] %v5779_v38 }
  0x13   :  { %82 = vadd.xlane.f32.xlu1 %v81_v15  ;;  %97 = vadd.xlane.f32.xlu2 %v96_v16 }
  0x14   :  { %85 = vadd.xlane.f32.xlu0 %v84_v17 }
  0x1b   :  { %103 = vadd.xlane.f32.xlu1 %v102_v21  ;;  %106 = vadd.xlane.f32.xlu2 %v105_v22 }
  0x1c   :  { %94 = vadd.xlane.f32.xlu0 %v93_v23 }
  0x23   :  { %91 = vadd.xlane.f32.xlu2 %v90_v26 }
  0x24   :  { %100 = vadd.xlane.f32.xlu0 %v99_v27 }
  0x2c   :  { %109 = vadd.xlane.f32.xlu0 %v108_v29 }
  0x34   :  { %88 = vadd.xlane.f32.xlu0 %v87_v31 }
  0x76   :  { %v77_v39 = vpop.xlane.xlu2 %76  ;;  %v71_v40 = vpop.xlane.xlu1 %70 }
  0x77   :  { %v120_v41 = vmul.f32 %v5779_v38, %v71_v40  ;;  %v65_v42 = vpop.xlane.xlu0 %64  ;;  %v122_v45 = vmul.f32 %v5779_v38, %v77_v39 }
  0x78   :  { %v118_v43 = vmul.f32 %v5779_v38, %v65_v42 }
  0x79   :  { %v5783_v44 = vsub.f32 %v46_v1, %v120_v41  ;;  %v5794_v50 = vsub.f32 %v5676_v0, %v122_v45 }
  0x7a   :  { %v5786_v46 = vsub.f32 %v44_v2, %v118_v43 }
  0x7b   :  { %v152_v47 = vmul.f32 %v5783_v44, %v5783_v44  ;;  %v154_v60 = vmul.f32 %v5794_v50, %v5794_v50 }
  0x7c   :  { %v150_v48 = vmul.f32 %v5786_v46, %v5786_v46 }
  0x7d   :  { %v172_v49 = vsel %vm62_vm0, %v152_v47, 0.0  ;;  %v178_v2 = vsel %vm62_vm0, %v154_v60, 0.0 }
  0x7e   :  { %v80_v51 = vpop.xlane.xlu2 %79  ;;  %173 = vadd.xlane.f32.xlu1 %v172_v49  ;;  %v74_v52 = vpop.xlane.xlu1 %73  ;;  %v166_v53 = vsel %vm62_vm0, %v150_v48, 0.0 }
  0x7f   :  { %v123_v54 = vmul.f32 %v5779_v38, %v80_v51  ;;  %167 = vadd.xlane.f32.xlu0 %v166_v53  ;;  %v68_v55 = vpop.xlane.xlu0 %67  ;;  %v121_v56 = vmul.f32 %v5779_v38, %v74_v52 }
  0x80   :  { %v119_v57 = vmul.f32 %v5779_v38, %v68_v55 }
  0x81   :  { %v5801_v58 = vsub.f32 %v5691_v6, %v123_v54  ;;  %v5811_v62 = vsub.f32 %v5696_v7, %v121_v56 }
  0x82   :  { %v5804_v59 = vsub.f32 %v5701_v8, %v119_v57 }
  0x83   :  { %v155_v61 = vmul.f32 %v5801_v58, %v5801_v58  ;;  %v153_v7 = vmul.f32 %v5811_v62, %v5811_v62 }
  0x84   :  { %v151_v63 = vmul.f32 %v5804_v59, %v5804_v59 }
  0x85   :  { %v181_v0 = vsel %vm62_vm0, %v155_v61, 0.0  ;;  %v175_v11 = vsel %vm62_vm0, %v153_v7, 0.0 }
  0x86   :  { %182 = vadd.xlane.f32.xlu1 %v181_v0  ;;  %v83_v1 = vpop.xlane.xlu1 %82  ;;  %v169_v3 = vsel %vm62_vm0, %v151_v63, 0.0  ;;  %v98_v8 = vpop.xlane.xlu2 %97  ;;  %v463_v63 = vld [vmem:[%s9073_s3 + $0x18] sm:$0xff]  ;;  %v461_v0 = vld [vmem:[%s9073_s3 + $0x8] sm:$0xff] }
  0x87   :  { %179 = vadd.xlane.f32.xlu0 %v178_v2  ;;  %170 = vadd.xlane.f32.xlu2 %v169_v3  ;;  %v86_v4 = vpop.xlane.xlu0 %85  ;;  %v124_v5 = vmul.f32 %v5779_v38, %v83_v1  ;;  %v460_v1 = vld [vmem:[%s9073_s3] sm:$0xff] }
  0x88   :  { %v125_v6 = vmul.f32 %v5779_v38, %v86_v4  ;;  %528 = vmatpush.msra.mxu0 %v463_v63  ;;  %5024 = vmatpush.msra.mxu1 %v463_v63 }
  0x89   :  { %v5826_v10 = vsub.f32 %v5712_v12, %v124_v5 }
  0x8a   :  { %v5823_v9 = vsub.f32 %v5722_v14, %v125_v6  ;;  %v129_v14 = vmul.f32 %v5779_v38, %v98_v8 }
  0x8b   :  { %v156_v12 = vmul.f32 %v5826_v10, %v5826_v10 }
  0x8c   :  { %v157_v15 = vmul.f32 %v5823_v9, %v5823_v9  ;;  %v5846_v32 = vsub.f32 %v5717_v13, %v129_v14 }
  0x8d   :  { %v184_v33 = vsel %vm62_vm0, %v156_v12, 0.0 }
  0x8e   :  { %v104_v16 = vpop.xlane.xlu1 %103  ;;  %v187_v17 = vsel %vm62_vm0, %v157_v15, 0.0  ;;  %v107_v31 = vpop.xlane.xlu2 %106  ;;  %v161_v13 = vmul.f32 %v5846_v32, %v5846_v32 }
  0x8f   :  { %v131_v21 = vmul.f32 %v5779_v38, %v104_v16  ;;  %176 = vadd.xlane.f32.xlu2 %v175_v11  ;;  %188 = vadd.xlane.f32.xlu1 %v187_v17  ;;  %v95_v22 = vpop.xlane.xlu0 %94  ;;  %v132_v37 = vmul.f32 %v5779_v38, %v107_v31 }
  0x90   :  { %v128_v23 = vmul.f32 %v5779_v38, %v95_v22  ;;  %v199_v41 = vsel %vm62_vm0, %v161_v13, 0.0 }
  0x91   :  { %v5838_v26 = vsub.f32 %v5733_v18, %v131_v21  ;;  %v5861_v40 = vsub.f32 %v5738_v19, %v132_v37 }
  0x92   :  { %v5841_v27 = vsub.f32 %v5743_v20, %v128_v23 }
  0x93   :  { %v163_v29 = vmul.f32 %v5838_v26, %v5838_v26 }
  0x94   :  { %v160_v34 = vmul.f32 %v5841_v27, %v5841_v27 }
  0x95   :  { %v205_v35 = vsel %vm62_vm0, %v163_v29, 0.0 }
  0x96   :  { %206 = vadd.xlane.f32.xlu0 %v205_v35  ;;  %v196_v18 = vsel %vm62_vm0, %v160_v34, 0.0  ;;  %v92_v43 = vpop.xlane.xlu2 %91 }
  0x97   :  { %185 = vadd.xlane.f32.xlu2 %v184_v33  ;;  %197 = vadd.xlane.f32.xlu1 %v196_v18  ;;  %v101_v20 = vpop.xlane.xlu0 %100  ;;  %v127_v49 = vmul.f32 %v5779_v38, %v92_v43 }
  0x98   :  { %v130_v36 = vmul.f32 %v5779_v38, %v101_v20 }
  0x99   :  { %v5875_v51 = vsub.f32 %v5754_v24, %v127_v49 }
  0x9a   :  { %v5858_v39 = vsub.f32 %v5759_v25, %v130_v36  ;;  %v164_v25 = vmul.f32 %v5861_v40, %v5861_v40 }
  0x9b   :  { %v159_v57 = vmul.f32 %v5875_v51, %v5875_v51 }
  0x9c   :  { %v162_v42 = vmul.f32 %v5858_v39, %v5858_v39  ;;  %v208_v52 = vsel %vm62_vm0, %v164_v25, 0.0 }
  0x9d   :  { %v193_v24 = vsel %vm62_vm0, %v159_v57, 0.0 }
  0x9e   :  { %v202_v45 = vsel %vm62_vm0, %v162_v42, 0.0 }
  0x9f   :  { %200 = vadd.xlane.f32.xlu2 %v199_v41  ;;  %203 = vadd.xlane.f32.xlu1 %v202_v45  ;;  %v110_v47 = vpop.xlane.xlu0 %109 }
  0xa0   :  { %v133_v48 = vmul.f32 %v5779_v38, %v110_v47 }
  0xa2   :  { %v5872_v19 = vsub.f32 %v5768_v28, %v133_v48 }
  0xa4   :  { %v165_v53 = vmul.f32 %v5872_v19, %v5872_v19 }
  0xa6   :  { %v211_v54 = vsel %vm62_vm0, %v165_v53, 0.0  ;;  %v5930_v53 = vld [vmem:[%s9070_s1] ss:$0 sm:$0xff] }
  0xa7   :  { %209 = vadd.xlane.f32.xlu1 %v208_v52  ;;  %212 = vadd.xlane.f32.xlu2 %v211_v54  ;;  %v89_v55 = vpop.xlane.xlu0 %88 }
  0xa8   :  { %v126_v56 = vmul.f32 %v5779_v38, %v89_v55 }
  0xaa   :  { %v5885_v28 = vsub.f32 %v5775_v30, %v126_v56  ;;  %v462_v30 = vld [vmem:[%s9073_s3 + $0x10] sm:$0xff] }
  0xab   :  { %529 = vmatpush.msra.mxu0 %v462_v30  ;;  %5025 = vmatpush.msra.mxu1 %v462_v30 }
  0xac   :  { %v158_v60 = vmul.f32 %v5885_v28, %v5885_v28 }
  0xad   :  { %530 = vmatpush.msra.mxu0 %v461_v0  ;;  %5026 = vmatpush.msra.mxu1 %v461_v0 }
  0xae   :  { %v190_v61 = vsel %vm62_vm0, %v158_v60, 0.0 }
  0xaf   :  { %194 = vadd.xlane.f32.xlu1 %v193_v24  ;;  %191 = vadd.xlane.f32.xlu0 %v190_v61 }
  0xb0   :  { %531 = vmatpush.msra.mxu0 %v460_v1  ;;  %5027 = vmatpush.msra.mxu1 %v460_v1 }
  0xf1   :  { %v174_v2 = vpop.xlane.xlu1 %173 }
  0xf2   :  { %v216_v3 = vmul.f32 %v174_v2, %v5779_v38  ;;  %v168_v4 = vpop.xlane.xlu0 %167 }
  0xf3   :  { %v214_v5 = vmul.f32 %v168_v4, %v5779_v38 }
  0xf4   :  { %v5905_v6 = vadd.f32 1e-05, %v216_v3 }
  0xf5   :  { %v230_v7 = vadd.f32 1e-05, %v214_v5 }
  0xf6   :  { %5223 = vrsqrt.f32 %v5905_v6  ;;  %vm272_vm9 = vweird.f32 %v5905_v6 }
  0xf7   :  { %5225 = vrsqrt.f32 %v230_v7  ;;  %vm252_vm3 = vweird.f32 %v230_v7 }
  0xf9   :  { %v183_v8 = vpop.xlane.xlu1 %182 }
  0xfa   :  { %v171_v11 = vpop.xlane.xlu2 %170  ;;  %v180_v15 = vpop.xlane.xlu0 %179  ;;  %v219_v34 = vmul.f32 %v183_v8, %v5779_v38 }
  0xfb   :  { %v215_v16 = vmul.f32 %v171_v11, %v5779_v38  ;;  %v218_v17 = vmul.f32 %v180_v15, %v5779_v38 }
  0xfc   :  { %v5910_v21 = vpop.eup %5223  ;;  %v5922_v43 = vadd.f32 1e-05, %v219_v34 }
  0xfd   :  { %v5226_v22 = vpop.eup %5225  ;;  %v231_v23 = vadd.f32 1e-05, %v215_v16  ;;  %v5912_v12 = vadd.f32 1e-05, %v218_v17  ;;  %v267_v29 = vmul.f32 %v5910_v21, %v5905_v6  ;;  %vm273_vm6 = vweird.f32 %v5910_v21 }
  0xfe   :  { %v247_v14 = vmul.f32 %v5226_v22, %v230_v7  ;;  %vm253_vm2 = vweird.f32 %v5226_v22  ;;  %vm5969_vm10 = vmor %vm272_vm9, %vm273_vm6 }
  0xff   :  { %5227 = vrsqrt.f32 %v231_v23  ;;  %v268_v36 = vmul.f32 %v5910_v21, %v267_v29  ;;  %vm254_vm4 = vmor %vm252_vm3, %vm253_vm2  ;;  %vm262_vm7 = vweird.f32 %v231_v23  ;;  %vm292_vm1 = vweird.f32 %v5912_v12 }
 0x100   :  { %v248_v31 = vmul.f32 %v5226_v22, %v247_v14  ;;  %5229 = vrsqrt.f32 %v5912_v12 }
 0x101   :  { %v269_v47 = vmul.f32 0.5, %v268_v36 }
 0x102   :  { %v249_v33 = vmul.f32 0.5, %v248_v31  ;;  %v177_v35 = vpop.xlane.xlu2 %176  ;;  %v189_v18 = vpop.xlane.xlu1 %188 }
 0x103   :  { %v217_v20 = vmul.f32 %v177_v35, %v5779_v38  ;;  %v270_v63 = vsub.f32 1.5, %v269_v47  ;;  %v221_v29 = vmul.f32 %v189_v18, %v5779_v38 }
 0x104   :  { %v250_v37 = vsub.f32 1.5, %v249_v33 }
 0x105   :  { %v5228_v13 = vpop.eup %5227  ;;  %v5920_v41 = vadd.f32 1e-05, %v217_v20  ;;  %v271_v15 = vmul.f32 %v5910_v21, %v270_v63 }
 0x106   :  { %v251_v42 = vmul.f32 %v5226_v22, %v250_v37  ;;  %v257_v45 = vmul.f32 %v5228_v13, %v231_v23  ;;  %v5925_v49 = vpop.eup %5229  ;;  %vm263_vm5 = vweird.f32 %v5228_v13 }
 0x107   :  { %5231 = vrsqrt.f32 %v5920_v41  ;;  %v287_v0 = vmul.f32 %v5925_v49, %v5912_v12  ;;  %vm264_vm8 = vmor %vm262_vm7, %vm263_vm5  ;;  %vm293_vm12 = vweird.f32 %v5925_v49  ;;  %vm282_vm13 = vweird.f32 %v5920_v41 }
 0x108   :  { %v258_v48 = vmul.f32 %v5228_v13, %v257_v45  ;;  %v255_v52 = vsel %vm254_vm4, %v5226_v22, %v251_v42  ;;  %5233 = vrsqrt.f32 %v5922_v43  ;;  %vm6033_vm3 = vmor %vm292_vm1, %vm293_vm12  ;;  %vm302_vm12 = vweird.f32 %v5922_v43 }
 0x109   :  { %v207_v25 = vpop.xlane.xlu0 %206  ;;  %v406_v24 = vmul.f32 %v255_v52, %v5786_v46  ;;  %v5949_v46 = vld [vmem:[%s9071_s2] ss:$0 sm:$0xff]  ;;  %v288_v16 = vmul.f32 %v5925_v49, %v287_v0  ;;  %v5990_v52 = vadd.f32 1e-05, %v221_v29 }
 0x10a   :  { %v259_v54 = vmul.f32 0.5, %v258_v48  ;;  %v186_v55 = vpop.xlane.xlu2 %185  ;;  %v198_v56 = vpop.xlane.xlu1 %197  ;;  %v227_v57 = vmul.f32 %v207_v25, %v5779_v38 }
 0x10b   :  { %v220_v60 = vmul.f32 %v186_v55, %v5779_v38  ;;  %v224_v61 = vmul.f32 %v198_v56, %v5779_v38  ;;  %v425_v4 = vmul.f32 %v5930_v53, %v406_v24  ;;  %v289_v36 = vmul.f32 0.5, %v288_v16 }
 0x10c   :  { %v260_v30 = vsub.f32 1.5, %v259_v54  ;;  %v5943_v3 = vadd.f32 1e-05, %v227_v57 }
 0x10d   :  { %v5939_v1 = vpop.eup %5231  ;;  %v5941_v2 = vadd.f32 1e-05, %v224_v61  ;;  %v5954_v8 = vadd.f32 1e-05, %v220_v60  ;;  %v444_v22 = vadd.f32 %v5949_v46, %v425_v4  ;;  %v290_v56 = vsub.f32 1.5, %v289_v36 }
 0x10e   :  { %v261_v5 = vmul.f32 %v5228_v13, %v260_v30  ;;  %v277_v7 = vmul.f32 %v5939_v1, %v5920_v41  ;;  %v5956_v11 = vpop.eup %5233  ;;  %vm283_vm11 = vweird.f32 %v5939_v1 }
 0x10f   :  { %5235 = vrsqrt.f32 %v5941_v2  ;;  %v297_v20 = vmul.f32 %v5956_v11, %v5922_v43  ;;  %4752 = vmatmul.msk.f32.vlgmr.msra.gmra.mxu0 %vm62_vm0, %v444_v22  ;;  %vm6007_vm14 = vmor %vm282_vm13, %vm283_vm11  ;;  %v6015_v41 = vmul.f32 %v5925_v49, %v290_v56  ;;  %vm352_vm2 = vweird.f32 %v5941_v2 }
 0x110   :  { %v278_v17 = vmul.f32 %v5939_v1, %v277_v7  ;;  %5237 = vrsqrt.f32 %v5943_v3  ;;  %v265_v14 = vsel %vm264_vm8, %v5228_v13, %v261_v5  ;;  %vm303_vm9 = vweird.f32 %v5956_v11 }
 0x111   :  { %v407_v34 = vmul.f32 %v265_v14, %v5804_v59  ;;  %5239 = vrsqrt.f32 %v5954_v8  ;;  %v275_v59 = vsel %vm5969_vm10, %v5910_v21, %v271_v15  ;;  %v298_v25 = vmul.f32 %v5956_v11, %v297_v20 }
 0x112   :  { %v279_v23 = vmul.f32 0.5, %v278_v17  ;;  %v201_v31 = vpop.xlane.xlu2 %200  ;;  %v204_v33 = vpop.xlane.xlu1 %203  ;;  %v408_v55 = vmul.f32 %v275_v59, %v5783_v44  ;;  %vm382_vm13 = vweird.f32 %v5943_v3 }
 0x113   :  { %v225_v6 = vmul.f32 %v201_v31, %v5779_v38  ;;  %v226_v18 = vmul.f32 %v204_v33, %v5779_v38  ;;  %v426_v42 = vmul.f32 %v5930_v53, %v407_v34  ;;  %v6005_v30 = vmul.f32 0.5, %v298_v25 }
 0x114   :  { %v280_v37 = vsub.f32 1.5, %v279_v23  ;;  %v427_v15 = vmul.f32 %v5930_v53, %v408_v55 }
 0x115   :  { %v5982_v13 = vadd.f32 1e-05, %v225_v6  ;;  %v5236_v45 = vpop.eup %5235  ;;  %v5985_v47 = vadd.f32 1e-05, %v226_v18  ;;  %v445_v60 = vadd.f32 %v5949_v46, %v426_v42  ;;  %v300_v12 = vsub.f32 1.5, %v6005_v30 }
 0x116   :  { %v5987_v48 = vpop.eup %5237  ;;  %v347_v54 = vmul.f32 %v5236_v45, %v5941_v2  ;;  %v281_v21 = vmul.f32 %v5939_v1, %v280_v37  ;;  %vm353_vm15 = vweird.f32 %v5236_v45  ;;  %v446_v20 = vadd.f32 %v5949_v46, %v427_v15 }
 0x117   :  { %5241 = vrsqrt.f32 %v5982_v13  ;;  %v5997_v57 = vpop.eup %5239  ;;  %v377_v44 = vmul.f32 %v5987_v48, %v5943_v3  ;;  %4753 = vmatmul.msk.f32.gmra.mxu0 %vm62_vm0, %v445_v60  ;;  %vm354_vm4 = vmor %vm352_vm2, %vm353_vm15  ;;  %v295_v6 = vsel %vm6033_vm3, %v5925_v49, %v6015_v41  ;;  %vm372_vm5 = vweird.f32 %v5985_v47 }
 0x118   :  { %v348_v24 = vmul.f32 %v5236_v45, %v347_v54  ;;  %5243 = vrsqrt.f32 %v5985_v47  ;;  %v307_v7 = vmul.f32 %v5997_v57, %v5954_v8  ;;  %v285_v16 = vsel %vm6007_vm14, %v5939_v1, %v281_v21  ;;  %vm6106_vm15 = vmor %vm302_vm12, %vm303_vm9 }
 0x119   :  { %5245 = vrsqrt.f32 %v5990_v52  ;;  %v378_v29 = vmul.f32 %v5987_v48, %v377_v44  ;;  %v409_v35 = vmul.f32 %v285_v16, %v5811_v62  ;;  %vm362_vm8 = vweird.f32 %v5982_v13 }
 0x11a   :  { %v210_v61 = vpop.xlane.xlu1 %209  ;;  %v213_v63 = vpop.xlane.xlu2 %212  ;;  %v349_v4 = vmul.f32 0.5, %v348_v24  ;;  %v308_v36 = vmul.f32 %v5997_v57, %v307_v7  ;;  %v301_v15 = vmul.f32 %v5956_v11, %v300_v12  ;;  %vm383_vm14 = vweird.f32 %v5987_v48 }
 0x11b   :  { %v228_v5 = vmul.f32 %v210_v61, %v5779_v38  ;;  %v229_v14 = vmul.f32 %v213_v63, %v5779_v38  ;;  %v379_v42 = vmul.f32 0.5, %v378_v29  ;;  %v428_v60 = vmul.f32 %v5930_v53, %v409_v35  ;;  %vm6116_vm1 = vmor %vm382_vm13, %vm383_vm14 }
 0x11c   :  { %v350_v17 = vsub.f32 1.5, %v349_v4  ;;  %vm312_vm2 = vweird.f32 %v5954_v8  ;;  %vm313_vm3 = vweird.f32 %v5997_v57 }
 0x11d   :  { %v6023_v22 = vadd.f32 1e-05, %v228_v5  ;;  %v5242_v23 = vpop.eup %5241  ;;  %v6051_v59 = vadd.f32 1e-05, %v229_v14  ;;  %v309_v14 = vmul.f32 0.5, %v308_v36  ;;  %v380_v29 = vsub.f32 1.5, %v379_v42 }
 0x11e   :  { %v6029_v31 = vpop.eup %5243  ;;  %v351_v1 = vmul.f32 %v5236_v45, %v350_v17  ;;  %v357_v34 = vmul.f32 %v5242_v23, %v5982_v13  ;;  %vm363_vm6 = vweird.f32 %v5242_v23  ;;  %v410_v17 = vmul.f32 %v295_v6, %v5794_v50 }
 0x11f   :  { %5247 = vrsqrt.f32 %v6023_v22  ;;  %v367_v2 = vmul.f32 %v6029_v31, %v5985_v47  ;;  %v6048_v18 = vpop.eup %5245  ;;  %4754 = vmatmul.msk.f32.gmra.mxu0 %vm62_vm0, %v446_v20  ;;  %vm373_vm7 = vweird.f32 %v6029_v31  ;;  %vm364_vm10 = vmor %vm362_vm8, %vm363_vm6  ;;  %v447_v33 = vadd.f32 %v5949_v46, %v428_v60 }
 0x120   :  { %v358_v37 = vmul.f32 %v5242_v23, %v357_v34  ;;  %v355_v62 = vsel %vm354_vm4, %v5236_v45, %v351_v1  ;;  %5249 = vrsqrt.f32 %v6051_v59  ;;  %v317_v0 = vmul.f32 %v6048_v18, %v5990_v52  ;;  %vm6084_vm11 = vmor %vm372_vm5, %vm373_vm7 }
 0x121   :  { %v368_v25 = vmul.f32 %v6029_v31, %v367_v2  ;;  %v416_v56 = vmul.f32 %v355_v62, %v5841_v27  ;;  %v310_v2 = vsub.f32 1.5, %v309_v14  ;;  %v381_v20 = vmul.f32 %v5987_v48, %v380_v29  ;;  %vm6144_vm8 = vmor %vm312_vm2, %vm313_vm3 }
 0x122   :  { %v195_v54 = vpop.xlane.xlu1 %194  ;;  %v192_v55 = vpop.xlane.xlu0 %191  ;;  %v359_v21 = vmul.f32 0.5, %v358_v37  ;;  %v318_v34 = vmul.f32 %v6048_v18, %v317_v0  ;;  %v305_v6 = vsel %vm6106_vm15, %v5956_v11, %v301_v15  ;;  %vm392_vm9 = vweird.f32 %v6023_v22 }
 0x123   :  { %v223_v49 = vmul.f32 %v195_v54, %v5779_v38  ;;  %v222_v24 = vmul.f32 %v192_v55, %v5779_v38  ;;  %v369_v45 = vmul.f32 0.5, %v368_v25  ;;  %v435_v44 = vmul.f32 %v5930_v53, %v416_v56 }
 0x124   :  { %v360_v63 = vsub.f32 1.5, %v359_v21  ;;  %v319_v54 = vmul.f32 0.5, %v318_v34  ;;  %v385_v60 = vsel %vm6116_vm1, %v5987_v48, %v381_v20  ;;  %vm323_vm14 = vweird.f32 %v6048_v18 }
 0x125   :  { %v6062_v61 = vpop.eup %5247  ;;  %v6065_v27 = vadd.f32 1e-05, %v223_v49  ;;  %v6067_v30 = vadd.f32 1e-05, %v222_v24  ;;  %v370_v4 = vsub.f32 1.5, %v369_v45  ;;  %v454_v5 = vadd.f32 %v5949_v46, %v435_v44 }
 0x126   :  { %v361_v41 = vmul.f32 %v5242_v23, %v360_v63  ;;  %v387_v7 = vmul.f32 %v6062_v61, %v6023_v22  ;;  %v6095_v35 = vpop.eup %5249  ;;  %v411_v49 = vmul.f32 %v305_v6, %v5801_v58  ;;  %v311_v24 = vmul.f32 %v5997_v57, %v310_v2 }
 0x127   :  { %5251 = vrsqrt.f32 %v6065_v27  ;;  %v371_v16 = vmul.f32 %v6029_v31, %v370_v4  ;;  %4762 = vmatmul.msk.f32.vlgmr.msra.gmra.mxu1 %vm62_vm0, %v454_v5  ;;  %4755 = vmatmul.msk.f32.gmra.mxu0 %vm62_vm0, %v447_v33  ;;  %v397_v37 = vmul.f32 %v6095_v35, %v6051_v59  ;;  %vm342_vm4 = vweird.f32 %v6065_v27 }
 0x128   :  { %5253 = vrsqrt.f32 %v6067_v30  ;;  %v365_v1 = vsel %vm364_vm10, %v5242_v23, %v361_v41  ;;  %v388_v12 = vmul.f32 %v6062_v61, %v387_v7  ;;  %vm332_vm6 = vweird.f32 %v6067_v30 }
 0x129   :  { %v417_v47 = vmul.f32 %v365_v1, %v5846_v32  ;;  %v375_v50 = vsel %vm6084_vm11, %v6029_v31, %v371_v16  ;;  %v429_v32 = vmul.f32 %v5930_v53, %v410_v17  ;;  %v398_v45 = vmul.f32 %v6095_v35, %v397_v37 }
 0x12a   :  { %v418_v25 = vmul.f32 %v375_v50, %v5858_v39  ;;  %v389_v55 = vmul.f32 0.5, %v388_v12  ;;  %v320_v58 = vsub.f32 1.5, %v319_v54  ;;  %vm393_vm10 = vweird.f32 %v6062_v61 }
 0x12b   :  { %v436_v3 = vmul.f32 %v5930_v53, %v417_v47  ;;  %v448_v21 = vadd.f32 %v5949_v46, %v429_v32  ;;  %v430_v7 = vmul.f32 %v5930_v53, %v411_v49  ;;  %v315_v22 = vsel %vm6144_vm8, %v5997_v57, %v311_v24  ;;  %vm6167_vm13 = vmor %vm392_vm9, %vm393_vm10 }
 0x12c   :  { %v437_v63 = vmul.f32 %v5930_v53, %v418_v25  ;;  %v390_v0 = vsub.f32 1.5, %v389_v55  ;;  %v399_v17 = vmul.f32 0.5, %v398_v45  ;;  %v412_v34 = vmul.f32 %v315_v22, %v5826_v10 }
 0x12d   :  { %v5252_v23 = vpop.eup %5251  ;;  %v455_v42 = vadd.f32 %v5949_v46, %v436_v3  ;;  %v449_v1 = vadd.f32 %v5949_v46, %v430_v7  ;;  %v321_v47 = vmul.f32 %v6048_v18, %v320_v58  ;;  %vm322_vm15 = vweird.f32 %v5990_v52 }
 0x12e   :  { %v5254_v36 = vpop.eup %5253  ;;  %v337_v62 = vmul.f32 %v5252_v23, %v6065_v27  ;;  %vm343_vm5 = vweird.f32 %v5252_v23  ;;  %v456_v16 = vadd.f32 %v5949_v46, %v437_v63  ;;  %v419_v27 = vmul.f32 %v385_v60, %v5838_v26  ;;  %vm324_vm1 = vmor %vm322_vm15, %vm323_vm14 }
 0x12f   :  { %v327_v11 = vmul.f32 %v5254_v36, %v6067_v30  ;;  %4763 = vmatmul.msk.f32.gmra.mxu1 %vm62_vm0, %v455_v42  ;;  %vm333_vm7 = vweird.f32 %v5254_v36  ;;  %4756 = vmatmul.msk.f32.gmra.mxu0 %vm62_vm0, %v448_v21  ;;  %vm6152_vm11 = vmor %vm342_vm4, %vm343_vm5  ;;  %v391_v13 = vmul.f32 %v6062_v61, %v390_v0  ;;  %v400_v43 = vsub.f32 1.5, %v399_v17 }
 0x130   :  { %v338_v56 = vmul.f32 %v5252_v23, %v337_v62  ;;  %vm6157_vm12 = vmor %vm332_vm6, %vm333_vm7  ;;  %v438_v12 = vmul.f32 %v5930_v53, %v419_v27  ;;  %vm402_vm2 = vweird.f32 %v6051_v59  ;;  %vm403_vm3 = vweird.f32 %v6095_v35 }
 0x131   :  { %v328_v39 = vmul.f32 %v5254_v36, %v327_v11  ;;  %v395_v10 = vsel %vm6167_vm13, %v6062_v61, %v391_v13  ;;  %v325_v2 = vsel %vm324_vm1, %v6048_v18, %v321_v47  ;;  %v401_v52 = vmul.f32 %v6095_v35, %v400_v43  ;;  %vm404_vm4 = vmor %vm402_vm2, %vm403_vm3 }
 0x132   :  { %v339_v44 = vmul.f32 0.5, %v338_v56  ;;  %v420_v61 = vmul.f32 %v395_v10, %v5861_v40  ;;  %v413_v6 = vmul.f32 %v325_v2, %v5823_v9  ;;  %vm821_vm5 = vcmask 64512  }
 0x133   :  { %v329_v4 = vmul.f32 0.5, %v328_v39  ;;  %v405_v31 = vsel %vm404_vm4, %v6095_v35, %v401_v52  ;;  %vm1582_vm6 = vcmask 523264   ;;  %vm3207_vm7 = vcmask 130048  }
 0x134   :  { %v340_v5 = vsub.f32 1.5, %v339_v44  ;;  %v432_v18 = vmul.f32 %v5930_v53, %v413_v6  ;;  %v421_v37 = vmul.f32 %v405_v31, %v5872_v19  ;;  %v6219_v19 = vld [vmem:[%s9072_s4] ss:$0 sm:$0xff]  ;;  %s5599_s4 = smov 64   ;;  %vm3224_vm8 = vcmask 195584  }
 0x135   :  { %v330_v41 = vsub.f32 1.5, %v329_v4 }
 0x136   :  { %v341_v15 = vmul.f32 %v5252_v23, %v340_v5  ;;  %v451_v62 = vadd.f32 %v5949_v46, %v432_v18  ;;  %v440_v42 = vmul.f32 %v5930_v53, %v421_v37 }
 0x137   :  { %v331_v14 = vmul.f32 %v5254_v36, %v330_v41  ;;  %4764 = vmatmul.msk.f32.gmra.mxu1 %vm62_vm0, %v456_v16  ;;  %4757 = vmatmul.msk.f32.gmra.mxu0 %vm62_vm0, %v449_v1 }
 0x138   :  { %v345_v33 = vsel %vm6152_vm11, %v5252_v23, %v341_v15  ;;  %v457_v23 = vadd.f32 %v5949_v46, %v438_v12  ;;  %v459_v9 = vadd.f32 %v5949_v46, %v440_v42 }
 0x139   :  { %v335_v26 = vsel %vm6157_vm12, %v5254_v36, %v331_v14  ;;  %v415_v57 = vmul.f32 %v345_v33, %v5875_v51  ;;  %v439_v36 = vmul.f32 %v5930_v53, %v420_v61 }
 0x13a   :  { %v414_v50 = vmul.f32 %v335_v26, %v5885_v28  ;;  %v431_v28 = vmul.f32 %v5930_v53, %v412_v34 }
 0x13b   :  { %v434_v32 = vmul.f32 %v5930_v53, %v415_v57  ;;  %v458_v40 = vadd.f32 %v5949_v46, %v439_v36 }
 0x13c   :  { %v433_v51 = vmul.f32 %v5930_v53, %v414_v50  ;;  %v450_v59 = vadd.f32 %v5949_v46, %v431_v28 }
 0x13d   :  { %v453_v3 = vadd.f32 %v5949_v46, %v434_v32 }
 0x13e   :  { %v452_v20 = vadd.f32 %v5949_v46, %v433_v51 }
 0x13f   :  { %4765 = vmatmul.msk.f32.gmra.mxu1 %vm62_vm0, %v457_v23  ;;  %4758 = vmatmul.msk.f32.gmra.mxu0 %vm62_vm0, %v450_v59 }
 0x147   :  { %4766 = vmatmul.msk.f32.gmra.mxu1 %vm62_vm0, %v458_v40  ;;  %4759 = vmatmul.msk.f32.gmra.mxu0 %vm62_vm0, %v451_v62 }
 0x14f   :  { %4767 = vmatmul.msk.f32.gmra.mxu1 %vm62_vm0, %v459_v9  ;;  %4760 = vmatmul.msk.f32.gmra.mxu0 %vm62_vm0, %v452_v20 }
 0x157   :  { %4761 = vmatmul.msk.f32.gmra.mxu0 %vm62_vm0, %v453_v3 }
 0x18c   :  { %v533_v35 = vpop.f32.mrf.mxu0 }
 0x18d   :  { %v6222_v25 = vadd.f32 %v6219_v19, %v533_v35 }
 0x18f   :  { %693 = vrot.lane.b32.xlu2 %v6222_v25, %s5595_s17  ;;  %805 = vrot.lane.b32.xlu1 %v6222_v25, %s5596_s18 }
 0x194   :  { %v536_v46 = vpop.f32.mrf.mxu0 }
 0x195   :  { %v6240_v55 = vadd.f32 %v6219_v19, %v536_v46 }
 0x197   :  { %597 = vrot.lane.b32.xlu1 %v6222_v25, %s5597_s19  ;;  %v5053_v39 = vpack.i.bf16 %v6222_v25, %v6240_v55 }
 0x19c   :  { %v539_v21 = vpop.f32.mrf.mxu0 }
 0x19d   :  { %v6260_v49 = vadd.f32 %v6219_v19, %v539_v21 }
 0x19f   :  { %645 = vrot.lane.b32.xlu1 %v6222_v25, %s5598_s20 }
 0x1a4   :  { %v563_v53 = vpop.f32.mrf.mxu1  ;;  %v542_v24 = vpop.f32.mrf.mxu0 }
 0x1a5   :  { %v6233_v54 = vadd.f32 %v6219_v19, %v563_v53  ;;  %v6270_v60 = vadd.f32 %v6219_v19, %v542_v24 }
 0x1a7   :  { %9200 = vst [vmem:[#allocation3_spill] sm:$0xff] %v6233_v54  ;;  %617 = vrot.lane.b32.xlu0 %v6233_v54, %s5597_s19  ;;  %1198 = vrot.lane.b32.xlu2 %v6233_v54, %s5596_s18  ;;  %v5058_v16 = vpack.i.bf16 %v6260_v49, %v6270_v60 }
 0x1a8   :  { %647 = vrot.lane.b32.xlu1 %v6240_v55, %s5598_s20 }
 0x1ac   :  { %v566_v11 = vpop.f32.mrf.mxu1  ;;  %v545_v44 = vpop.f32.mrf.mxu0 }
 0x1ad   :  { %v6245_v56 = vadd.f32 %v6219_v19, %v566_v11  ;;  %v6279_v63 = vadd.f32 %v6219_v19, %v545_v44 }
 0x1af   :  { %9201 = vst [vmem:[#allocation4_spill] sm:$0xff] %v6245_v56  ;;  %665 = vrot.lane.b32.xlu0 %v6233_v54, %s5598_s20  ;;  %713 = vrot.lane.b32.xlu2 %v6233_v54, %s5595_s17 }
 0x1b0   :  { %619 = vrot.lane.b32.xlu1 %v6245_v56, %s5597_s19 }
 0x1b4   :  { %v569_v45 = vpop.f32.mrf.mxu1  ;;  %v548_v30 = vpop.f32.mrf.mxu0 }
 0x1b5   :  { %v6292_v4 = vadd.f32 %v6219_v19, %v569_v45  ;;  %v6321_v41 = vadd.f32 %v6219_v19, %v548_v30 }
 0x1b7   :  { %807 = vrot.lane.b32.xlu0 %v6240_v55, %s5596_s18  ;;  %599 = vrot.lane.b32.xlu2 %v6240_v55, %s5597_s19  ;;  %9202 = vst [vmem:[#allocation5_spill] sm:$0xff] %v6292_v4  ;;  %v5063_v6 = vpack.i.bf16 %v6279_v63, %v6321_v41 }
 0x1b8   :  { %715 = vrot.lane.b32.xlu1 %v6245_v56, %s5595_s17 }
 0x1bc   :  { %v572_v0 = vpop.f32.mrf.mxu1  ;;  %v551_v29 = vpop.f32.mrf.mxu0 }
 0x1bd   :  { %v6316_v5 = vadd.f32 %v6219_v19, %v572_v0  ;;  %v6366_v1 = vadd.f32 %v6219_v19, %v551_v29 }
 0x1bf   :  { %601 = vrot.lane.b32.xlu0 %v6260_v49, %s5597_s19  ;;  %695 = vrot.lane.b32.xlu2 %v6240_v55, %s5595_s17  ;;  %9204 = vst [vmem:[#allocation7_spill] sm:$0xff] %v6316_v5 }
 0x1c0   :  { %5054 = vrot.lane.b32.xlu1 %v5053_v39, %s5599_s4 }
 0x1c4   :  { %v575_v58 = vpop.f32.mrf.mxu1  ;;  %v554_v47 = vpop.f32.mrf.mxu0 }
 0x1c5   :  { %v6297_v48 = vadd.f32 %v6219_v19, %v575_v58  ;;  %v6393_v10 = vadd.f32 %v6219_v19, %v554_v47 }
 0x1c7   :  { %699 = vrot.lane.b32.xlu0 %v6270_v60, %s5595_s17  ;;  %1200 = vrot.lane.b32.xlu2 %v6245_v56, %s5596_s18  ;;  %9203 = vst [vmem:[#allocation6_spill] sm:$0xff] %v6297_v48  ;;  %v5068_v59 = vpack.i.bf16 %v6366_v1, %v6393_v10 }
 0x1c8   :  { %649 = vrot.lane.b32.xlu1 %v6260_v49, %s5598_s20 }
 0x1cc   :  { %v578_v27 = vpop.f32.mrf.mxu1  ;;  %v557_v32 = vpop.f32.mrf.mxu0 }
 0x1cd   :  { %v6353_v17 = vadd.f32 %v6219_v19, %v578_v27  ;;  %v6437_v40 = vadd.f32 %v6219_v19, %v557_v32 }
 0x1cf   :  { %667 = vrot.lane.b32.xlu2 %v6245_v56, %s5598_s20  ;;  %813 = vrot.lane.b32.xlu0 %v6279_v63, %s5596_s18  ;;  %9207 = vst [vmem:[#allocation10_spill] sm:$0xff] %v6353_v17 }
 0x1d0   :  { %697 = vrot.lane.b32.xlu1 %v6260_v49, %s5595_s17  ;;  %9217 = vst [vmem:[#allocation20_spill] sm:$0xff] %v6437_v40 }
 0x1d4   :  { %v560_v61 = vpop.f32.mrf.mxu0 }
 0x1d5   :  { %v6420_v52 = vadd.f32 %v6219_v19, %v560_v61 }
 0x1d7   :  { %809 = vrot.lane.b32.xlu2 %v6260_v49, %s5596_s18  ;;  %701 = vrot.lane.b32.xlu0 %v6279_v63, %s5595_s17  ;;  %9215 = vst [vmem:[#allocation18_spill] sm:$0xff] %v6420_v52 }
 0x1d8   :  { %717 = vrot.lane.b32.xlu1 %v6292_v4, %s5595_s17 }
 0x1df   :  { %1202 = vrot.lane.b32.xlu2 %v6292_v4, %s5596_s18  ;;  %1206 = vrot.lane.b32.xlu0 %v6297_v48, %s5596_s18 }
 0x1e0   :  { %811 = vrot.lane.b32.xlu1 %v6270_v60, %s5596_s18 }
 0x1e7   :  { %621 = vrot.lane.b32.xlu2 %v6292_v4, %s5597_s19  ;;  %625 = vrot.lane.b32.xlu0 %v6297_v48, %s5597_s19 }
 0x1e8   :  { %651 = vrot.lane.b32.xlu1 %v6270_v60, %s5598_s20 }
 0x1e9   :  { %v6327_v7 = vpop.permute.xlu2 %693 }
 0x1ea   :  { %9205 = vst [vmem:[#allocation8_spill] sm:$0xff] %v6327_v7 }
 0x1ef   :  { %669 = vrot.lane.b32.xlu2 %v6292_v4, %s5598_s20  ;;  %673 = vrot.lane.b32.xlu0 %v6297_v48, %s5598_s20 }
 0x1f0   :  { %1204 = vrot.lane.b32.xlu1 %v6316_v5, %s5596_s18 }
 0x1f7   :  { %603 = vrot.lane.b32.xlu2 %v6270_v60, %s5597_s19  ;;  %607 = vrot.lane.b32.xlu0 %v6321_v41, %s5597_s19 }
 0x1f8   :  { %623 = vrot.lane.b32.xlu1 %v6316_v5, %s5597_s19 }
 0x1ff   :  { %655 = vrot.lane.b32.xlu0 %v6321_v41, %s5598_s20  ;;  %671 = vrot.lane.b32.xlu2 %v6316_v5, %s5598_s20 }
 0x200   :  { %719 = vrot.lane.b32.xlu1 %v6316_v5, %s5595_s17 }
 0x201   :  { %v6335_v15 = vpop.permute.xlu2 %1198  ;;  %v6339_v8 = vpop.permute.xlu1 %805 }
 0x207   :  { %703 = vrot.lane.b32.xlu0 %v6321_v41, %s5595_s17  ;;  %5059 = vrot.lane.b32.xlu2 %v5058_v16, %s5599_s4 }
 0x208   :  { %605 = vrot.lane.b32.xlu1 %v6279_v63, %s5597_s19 }
 0x209   :  { %v6346_v22 = vpop.permute.xlu2 %713  ;;  %v6350_v13 = vpop.permute.xlu1 %597 }
 0x20a   :  { %9206 = vst [vmem:[#allocation9_spill] sm:$0xff] %v6346_v22 }
 0x20f   :  { %1208 = vrot.lane.b32.xlu0 %v6353_v17, %s5596_s18  ;;  %723 = vrot.lane.b32.xlu2 %v6353_v17, %s5595_s17 }
 0x210   :  { %653 = vrot.lane.b32.xlu1 %v6279_v63, %s5598_s20 }
 0x211   :  { %v6359_v14 = vpop.permute.xlu2 %599  ;;  %v6363_v33 = vpop.permute.xlu1 %645 }
 0x212   :  { %v5073_v21 = vpack.i.bf16 %v6327_v7, %v6363_v33 }
 0x217   :  { %817 = vrot.lane.b32.xlu0 %v6366_v1, %s5596_s18  ;;  %609 = vrot.lane.b32.xlu2 %v6366_v1, %s5597_s19 }
 0x218   :  { %721 = vrot.lane.b32.xlu1 %v6297_v48, %s5595_s17 }
 0x219   :  { %v6372_v34 = vpop.permute.xlu2 %695  ;;  %v6374_v26 = vpop.permute.xlu0 %617 }
 0x21a   :  { %9208 = vst [vmem:[#allocation11_spill] sm:$0xff] %v6372_v34  ;;  %v6378_v57 = vpop.permute.xlu1 %647 }
 0x21b   :  { %9209 = vst [vmem:[#allocation12_spill] sm:$0xff] %v6374_v26 }
 0x21f   :  { %705 = vrot.lane.b32.xlu0 %v6366_v1, %s5595_s17  ;;  %657 = vrot.lane.b32.xlu2 %v6366_v1, %s5598_s20 }
 0x220   :  { %815 = vrot.lane.b32.xlu1 %v6321_v41, %s5596_s18 }
 0x221   :  { %v6384_v12 = vpop.permute.xlu2 %1200  ;;  %v6386_v50 = vpop.permute.xlu0 %665 }
 0x222   :  { %9210 = vst [vmem:[#allocation13_spill] sm:$0xff] %v6386_v50  ;;  %v6390_v43 = vpop.permute.xlu1 %619 }
 0x223   :  { %9211 = vst [vmem:[#allocation14_spill] sm:$0xff] %v6390_v43 }
 0x227   :  { %659 = vrot.lane.b32.xlu0 %v6393_v10, %s5598_s20  ;;  %819 = vrot.lane.b32.xlu2 %v6393_v10, %s5596_s18 }
 0x228   :  { %627 = vrot.lane.b32.xlu1 %v6353_v17, %s5597_s19 }
 0x229   :  { %v6399_v51 = vpop.permute.xlu2 %667  ;;  %v6401_v28 = vpop.permute.xlu0 %807 }
 0x22a   :  { %9212 = vst [vmem:[#allocation15_spill] sm:$0xff] %v6399_v51  ;;  %v6405_v3 = vpop.permute.xlu1 %715 }
 0x22b   :  { %9213 = vst [vmem:[#allocation16_spill] sm:$0xff] %v6405_v3 }
 0x22f   :  { %707 = vrot.lane.b32.xlu0 %v6393_v10, %s5595_s17  ;;  %611 = vrot.lane.b32.xlu2 %v6393_v10, %s5597_s19 }
 0x230   :  { %675 = vrot.lane.b32.xlu1 %v6353_v17, %s5598_s20 }
 0x231   :  { %v6411_v23 = vpop.permute.xlu2 %809  ;;  %v6413_v2 = vpop.permute.xlu0 %601 }
 0x232   :  { %v6417_v20 = vpop.permute.xlu1 %5054 }
 0x233   :  { %9214 = vst [vmem:[#allocation17_spill] sm:$0xff] %v6417_v20 }
 0x237   :  { %5069 = vrot.lane.b32.xlu0 %v5068_v59, %s5599_s4  ;;  %1196 = vrot.lane.b32.xlu2 %v6420_v52, %s5596_s18 }
 0x238   :  { %5064 = vrot.lane.b32.xlu1 %v5063_v6, %s5599_s4 }
 0x239   :  { %v6429_v36 = vpop.permute.xlu2 %1202  ;;  %v6431_v31 = vpop.permute.xlu0 %699 }
 0x23a   :  { %9216 = vst [vmem:[#allocation19_spill] sm:$0xff] %v6431_v31  ;;  %v6434_v18 = vpop.permute.xlu1 %649 }
 0x23f   :  { %1000 = vrot.lane.b32.xlu2 %v6363_v33, %s5596_s18  ;;  %613 = vrot.lane.b32.xlu0 %v6437_v40, %s5597_s19 }
 0x240   :  { %1194 = vrot.lane.b32.xlu1 %v6437_v40, %s5596_s18 }
 0x241   :  { %v6443_v37 = vpop.permute.xlu2 %621  ;;  %v6445_v62 = vpop.permute.xlu0 %813 }
 0x242   :  { %9218 = vst [vmem:[#allocation21_spill] sm:$0xff] %v6443_v37  ;;  %v6449_v42 = vpop.permute.xlu1 %697 }
 0x243   :  { %9219 = vst [vmem:[#allocation22_spill] sm:$0xff] %v6449_v42  ;;  %v5083_v30 = vpack.i.bf16 %v6449_v42, %v6434_v18 }
 0x247   :  { %1097 = vrot.lane.b32.xlu2 %v6327_v7, %s5596_s18  ;;  %709 = vrot.lane.b32.xlu0 %v6437_v40, %s5595_s17 }
 0x248   :  { %661 = vrot.lane.b32.xlu1 %v6437_v40, %s5598_s20 }
 0x249   :  { %v6455_v9 = vpop.permute.xlu2 %669  ;;  %v6457_v19 = vpop.permute.xlu0 %701 }
 0x24a   :  { %9220 = vst [vmem:[#allocation23_spill] sm:$0xff] %v6455_v9  ;;  %v6461_v35 = vpop.permute.xlu1 %717 }
 0x24b   :  { %9221 = vst [vmem:[#allocation24_spill] sm:$0xff] %v6457_v19 }
 0x24c   :  { %9222 = vst [vmem:[#allocation25_spill] sm:$0xff] %v6461_v35 }
 0x24f   :  { %1489 = vrot.lane.b32.xlu2 %v6346_v22, %s5596_s18  ;;  %615 = vrot.lane.b32.xlu0 %v6420_v52, %s5597_s19 }
 0x250   :  { %663 = vrot.lane.b32.xlu1 %v6420_v52, %s5598_s20 }
 0x251   :  { %v6467_v53 = vpop.permute.xlu2 %603  ;;  %v6469_v46 = vpop.permute.xlu0 %1206 }
 0x252   :  { %v6473_v11 = vpop.permute.xlu1 %811 }
 0x257   :  { %5074 = vrot.lane.b32.xlu2 %v5073_v21, %s5599_s4  ;;  %711 = vrot.lane.b32.xlu0 %v6420_v52, %s5595_s17 }
 0x258   :  { %1491 = vrot.lane.b32.xlu1 %v6405_v3, %s5596_s18 }
 0x259   :  { %v6480_v24 = vpop.permute.xlu2 %671  ;;  %v6482_v39 = vpop.permute.xlu0 %625 }
 0x25a   :  { %9223 = vst [vmem:[#allocation26_spill] sm:$0xff] %v6480_v24  ;;  %v6486_v45 = vpop.permute.xlu1 %651 }
 0x25b   :  { %9224 = vst [vmem:[#allocation27_spill] sm:$0xff] %v6482_v39 }
 0x25f   :  { %905 = vrot.lane.b32.xlu2 %v6359_v14, %s5596_s18  ;;  %903 = vrot.lane.b32.xlu0 %v6350_v13, %s5596_s18 }
 0x260   :  { %1493 = vrot.lane.b32.xlu1 %v6461_v35, %s5596_s18 }
 0x261   :  { %v6492_v44 = vpop.permute.xlu2 %5059  ;;  %v6494_v0 = vpop.permute.xlu0 %673 }
 0x262   :  { %9225 = vst [vmem:[#allocation28_spill] sm:$0xff] %v6492_v44  ;;  %v6498_v58 = vpop.permute.xlu1 %1204 }
 0x263   :  { %9226 = vst [vmem:[#allocation29_spill] sm:$0xff] %v6494_v0 }
 0x267   :  { %1394 = vrot.lane.b32.xlu2 %v6399_v51, %s5596_s18  ;;  %1295 = vrot.lane.b32.xlu0 %v6374_v26, %s5596_s18 }
 0x268   :  { %5084 = vrot.lane.b32.xlu1 %v5083_v30, %s5599_s4 }
 0x269   :  { %v6506_v16 = vpop.permute.xlu2 %723  ;;  %v6508_v27 = vpop.permute.xlu0 %607 }
 0x26a   :  { %9227 = vst [vmem:[#allocation30_spill] sm:$0xff] %v6506_v16  ;;  %v6511_v29 = vpop.permute.xlu1 %623 }
 0x26b   :  { %9228 = vst [vmem:[#allocation31_spill] sm:$0xff] %v6511_v29  ;;  %v5093_v30 = vpack.i.bf16 %v6443_v37, %v6511_v29 }
 0x26f   :  { %1392 = vrot.lane.b32.xlu0 %v6386_v50, %s5596_s18  ;;  %907 = vrot.lane.b32.xlu2 %v6413_v2, %s5596_s18 }
 0x270   :  { %1301 = vrot.lane.b32.xlu1 %v6511_v29, %s5596_s18 }
 0x271   :  { %v6517_v47 = vpop.permute.xlu2 %609  ;;  %v6519_v32 = vpop.permute.xlu0 %655 }
 0x272   :  { %9229 = vst [vmem:[#allocation32_spill] sm:$0xff] %v6519_v32  ;;  %v6523_v61 = vpop.permute.xlu1 %719 }
 0x273   :  { %9230 = vst [vmem:[#allocation33_spill] sm:$0xff] %v6523_v61 }
 0x277   :  { %1002 = vrot.lane.b32.xlu0 %v6378_v57, %s5596_s18  ;;  %1396 = vrot.lane.b32.xlu2 %v6455_v9, %s5596_s18 }
 0x278   :  { %1495 = vrot.lane.b32.xlu1 %v6523_v61, %s5596_s18 }
 0x279   :  { %v6529_v59 = vpop.permute.xlu2 %657  ;;  %v6531_v6 = vpop.permute.xlu0 %703 }
 0x27a   :  { %9231 = vst [vmem:[#allocation34_spill] sm:$0xff] %v6529_v59  ;;  %v6535_v21 = vpop.permute.xlu1 %605 }
 0x27b   :  { %9232 = vst [vmem:[#allocation35_spill] sm:$0xff] %v6531_v6 }
 0x27f   :  { %1099 = vrot.lane.b32.xlu0 %v6372_v34, %s5596_s18  ;;  %909 = vrot.lane.b32.xlu2 %v6467_v53, %s5596_s18 }
 0x280   :  { %5094 = vrot.lane.b32.xlu1 %v5093_v30, %s5599_s4 }
 0x281   :  { %v820_v38 = vpop.permute.xlu2 %819  ;;  %v6543_v35 = vpop.permute.xlu0 %1208 }
 0x282   :  { %4768 = vmatpush.xpose.msk.msrb.mxu1 %vm821_vm5, %v820_v38  ;;  %v6547_v61 = vpop.permute.xlu1 %653  ;;  %v5078_v38 = vpack.i.bf16 %v6372_v34, %v6378_v57  ;;  %v5088_v34 = vpack.i.bf16 %v6431_v31, %v6486_v45 }
 0x283   :  { %9233 = vst [vmem:[#allocation36_spill] sm:$0xff] %v6547_v61 }
 0x287   :  { %1297 = vrot.lane.b32.xlu0 %v6390_v43, %s5596_s18  ;;  %1103 = vrot.lane.b32.xlu2 %v6431_v31, %s5596_s18 }
 0x289   :  { %v6553_v3 = vpop.permute.xlu2 %611  ;;  %v818_v22 = vpop.permute.xlu0 %817 }
 0x28a   :  { %4769 = vmatpush.xpose.msk.msrb.mxu1 %vm821_vm5, %v818_v22  ;;  %v6556_v29 = vpop.permute.xlu1 %721  ;;  %v5108_v22 = vpack.i.bf16 %v6437_v40, %v6457_v19 }
 0x28b   :  { %9234 = vst [vmem:[#allocation37_spill] sm:$0xff] %v6556_v29  ;;  %1497 = vrot.lane.b32.xlu1 %v6556_v29, %s5596_s18 }
 0x28f   :  { %5079 = vrot.lane.b32.xlu0 %v5078_v38, %s5599_s4  ;;  %1398 = vrot.lane.b32.xlu2 %v6480_v24, %s5596_s18 }
 0x291   :  { %v6565_v30 = vpop.permute.xlu2 %1196  ;;  %v6567_v20 = vpop.permute.xlu0 %705 }
 0x292   :  { %9235 = vst [vmem:[#allocation38_spill] sm:$0xff] %v6567_v20  ;;  %v816_v44 = vpop.permute.xlu1 %815 }
 0x293   :  { %5109 = vrot.lane.b32.xlu1 %v5108_v22, %s5599_s4  ;;  %4770 = vmatpush.xpose.msk.msrb.mxu1 %vm821_vm5, %v816_v44  ;;  %v741_v22 = vmul.f32 0.35355338, %v6222_v25 }
 0x297   :  { %1004 = vrot.lane.b32.xlu0 %v6434_v18, %s5596_s18  ;;  %5089 = vrot.lane.b32.xlu2 %v5088_v34, %s5599_s4 }
 0x298   :  { %4771 = vmatpush.xpose.msk.msrb.mxu1 %vm821_vm5, %v6445_v62 }
 0x299   :  { %v6580_v38 = vpop.permute.xlu2 %1000  ;;  %v6582_v24 = vpop.permute.xlu0 %659 }
 0x29a   :  { %9236 = vst [vmem:[#allocation39_spill] sm:$0xff] %v6582_v24  ;;  %v6584_v9 = vpop.permute.xlu1 %627 }
 0x29b   :  { %9237 = vst [vmem:[#allocation40_spill] sm:$0xff] %v6584_v9  ;;  %1107 = vrot.lane.b32.xlu1 %v6531_v6, %s5596_s18 }
 0x29c   :  { %4772 = vmatpush.xpose.msk.msrb.mxu1 %vm821_vm5, %v6473_v11 }
 0x29f   :  { %1101 = vrot.lane.b32.xlu0 %v6449_v42, %s5596_s18  ;;  %911 = vrot.lane.b32.xlu2 %v6535_v21, %s5596_s18 }
 0x2a0   :  { %4773 = vmatpush.xpose.msk.msrb.mxu1 %vm821_vm5, %v6411_v23 }
 0x2a1   :  { %v6596_v34 = vpop.permute.xlu2 %1097  ;;  %v6598_v62 = vpop.permute.xlu0 %707 }
 0x2a2   :  { %9238 = vst [vmem:[#allocation41_spill] sm:$0xff] %v6596_v34  ;;  %v6600_v44 = vpop.permute.xlu1 %675 }
 0x2a3   :  { %9239 = vst [vmem:[#allocation42_spill] sm:$0xff] %v6598_v62  ;;  %1499 = vrot.lane.b32.xlu1 %v6506_v16, %s5596_s18 }
 0x2a4   :  { %9240 = vst [vmem:[#allocation43_spill] sm:$0xff] %v6600_v44  ;;  %4774 = vmatpush.xpose.msk.msrb.mxu1 %vm821_vm5, %v6401_v28 }
 0x2a7   :  { %1299 = vrot.lane.b32.xlu0 %v6443_v37, %s5596_s18  ;;  %1303 = vrot.lane.b32.xlu2 %v6482_v39, %s5596_s18  ;;  %v742_v37 = vmul.f32 0.35355338, %v6240_v55  ;;  %v743_v55 = vmul.f32 0.35355338, %v6260_v49  ;;  %v744_v49 = vmul.f32 0.35355338, %v6270_v60 }
 0x2a8   :  { %4775 = vmatpush.xpose.msk.msrb.mxu1 %vm821_vm5, %v6339_v8 }
 0x2a9   :  { %v6612_v23 = vpop.permute.xlu2 %1489  ;;  %v6614_v11 = vpop.permute.xlu0 %5069 }
 0x2aa   :  { %9241 = vst [vmem:[#allocation44_spill] sm:$0xff] %v6612_v23  ;;  %v6617_v31 = vpop.permute.xlu1 %5064 }
 0x2ab   :  { %9242 = vst [vmem:[#allocation45_spill] sm:$0xff] %v6614_v11  ;;  %4776 = vmatmul.msk.f32.vlgmr.msrb.gmra.mxu1 %vm821_vm5, %v741_v22  ;;  %1012 = vrot.lane.b32.xlu1 %v6529_v59, %s5596_s18  ;;  %v5103_v22 = vpack.i.bf16 %v6350_v13, %v6547_v61 }
 0x2ac   :  { %9243 = vst [vmem:[#allocation46_spill] sm:$0xff] %v6617_v31 }
 0x2af   :  { %1006 = vrot.lane.b32.xlu0 %v6486_v45, %s5596_s18  ;;  %1400 = vrot.lane.b32.xlu2 %v6494_v0, %s5596_s18 }
 0x2b1   :  { %v6626_v8 = vpop.permute.xlu2 %5074  ;;  %v6628_v28 = vpop.permute.xlu0 %613 }
 0x2b2   :  { %9244 = vst [vmem:[#allocation47_spill] sm:$0xff] %v6626_v8  ;;  %v6631_v25 = vpop.permute.xlu1 %1194 }
 0x2b3   :  { %9245 = vst [vmem:[#allocation48_spill] sm:$0xff] %v6628_v28  ;;  %4777 = vmatmul.msk.f32.gmra.mxu1 %vm821_vm5, %v742_v37  ;;  %1109 = vrot.lane.b32.xlu1 %v6567_v20, %s5596_s18  ;;  %v5148_v37 = vpack.i.bf16 %v6297_v48, %v6517_v47  ;;  %v5153_v48 = vpack.i.bf16 %v6413_v2, %v6529_v59 }
 0x2b4   :  { %9246 = vst [vmem:[#allocation49_spill] sm:$0xff] %v6631_v25 }
 0x2b7   :  { %1008 = vrot.lane.b32.xlu0 %v6547_v61, %s5596_s18  ;;  %5104 = vrot.lane.b32.xlu2 %v5103_v22, %s5599_s4 }
 0x2b9   :  { %v6641_v42 = vpop.permute.xlu2 %905  ;;  %v6643_v23 = vpop.permute.xlu0 %709 }
 0x2ba   :  { %9247 = vst [vmem:[#allocation50_spill] sm:$0xff] %v6643_v23  ;;  %v6648_v40 = vpop.permute.xlu1 %661 }
 0x2bb   :  { %9248 = vst [vmem:[#allocation51_spill] sm:$0xff] %v6648_v40  ;;  %4778 = vmatmul.msk.f32.gmra.mxu1 %vm821_vm5, %v743_v55  ;;  %5149 = vrot.lane.b32.xlu1 %v5148_v37, %s5599_s4  ;;  %v5098_v55 = vpack.i.bf16 %v6292_v4, %v6535_v21 }
 0x2bf   :  { %1105 = vrot.lane.b32.xlu0 %v6457_v19, %s5596_s18  ;;  %913 = vrot.lane.b32.xlu2 %v6508_v27, %s5596_s18  ;;  %v745_v19 = vmul.f32 0.35355338, %v6279_v63  ;;  %v746_v63 = vmul.f32 0.35355338, %v6321_v41  ;;  %v747_v41 = vmul.f32 0.35355338, %v6366_v1 }
 0x2c1   :  { %v6656_v22 = vpop.permute.xlu2 %1394  ;;  %v6658_v7 = vpop.permute.xlu0 %615 }
 0x2c2   :  { %9249 = vst [vmem:[#allocation52_spill] sm:$0xff] %v6658_v7  ;;  %v6663_v61 = vpop.permute.xlu1 %663 }
 0x2c3   :  { %9250 = vst [vmem:[#allocation53_spill] sm:$0xff] %v6663_v61  ;;  %4779 = vmatmul.msk.f32.gmra.mxu1 %vm821_vm5, %v744_v49  ;;  %5154 = vrot.lane.b32.xlu1 %v5153_v48, %s5599_s4  ;;  %v5113_v48 = vpack.i.bf16 %v6556_v29, %v6374_v26 }
 0x2c7   :  { %5099 = vrot.lane.b32.xlu0 %v5098_v55, %s5599_s4  ;;  %1010 = vrot.lane.b32.xlu2 %v6519_v32, %s5596_s18 }
 0x2c9   :  { %v6672_v37 = vpop.permute.xlu2 %907  ;;  %v6674_v60 = vpop.permute.xlu0 %711 }
 0x2ca   :  { %9251 = vst [vmem:[#allocation54_spill] sm:$0xff] %v6674_v60  ;;  %v6677_v59 = vpop.permute.xlu1 %1491 }
 0x2cb   :  { %9252 = vst [vmem:[#allocation55_spill] sm:$0xff] %v6677_v59  ;;  %4780 = vmatmul.msk.f32.gmra.mxu1 %vm821_vm5, %v745_v19  ;;  %917 = vrot.lane.b32.xlu1 %v6553_v3, %s5596_s18  ;;  %v5118_v19 = vpack.i.bf16 %v6316_v5, %v6508_v27  ;;  %v5138_v5 = vpack.i.bf16 %v6390_v43, %v6600_v44  ;;  %v748_v59 = vmul.f32 0.35355338, %v6393_v10 }
 0x2cc   :  { %v5143_v43 = vpack.i.bf16 %v6494_v0, %v6506_v16  ;;  %v5133_v10 = vpack.i.bf16 %v6482_v39, %v6584_v9  ;;  %v5173_v0 = vpack.i.bf16 %v6245_v56, %v6598_v62 }
 0x2cf   :  { %5114 = vrot.lane.b32.xlu0 %v5113_v48, %s5599_s4  ;;  %1305 = vrot.lane.b32.xlu2 %v6584_v9, %s5596_s18  ;;  %v5158_v9 = vpack.i.bf16 %v6233_v54, %v6567_v20 }
 0x2d1   :  { %v6687_v49 = vpop.permute.xlu2 %1396  ;;  %v6689_v55 = vpop.permute.xlu0 %903 }
 0x2d2   :  { %v6692_v4 = vpop.permute.xlu1 %1493 }
 0x2d3   :  { %9253 = vst [vmem:[#allocation56_spill] sm:$0xff] %v6692_v4  ;;  %4781 = vmatmul.msk.f32.gmra.mxu1 %vm821_vm5, %v746_v63  ;;  %1014 = vrot.lane.b32.xlu1 %v6582_v24, %s5596_s18  ;;  %v5123_v63 = vpack.i.bf16 %v6359_v14, %v6519_v32 }
 0x2d7   :  { %5119 = vrot.lane.b32.xlu0 %v5118_v19, %s5599_s4  ;;  %1402 = vrot.lane.b32.xlu2 %v6600_v44, %s5596_s18  ;;  %v5128_v44 = vpack.i.bf16 %v6420_v52, %v6531_v6 }
 0x2d9   :  { %v6702_v48 = vpop.permute.xlu2 %909  ;;  %v6704_v29 = vpop.permute.xlu0 %1295 }
 0x2da   :  { %v6707_v26 = vpop.permute.xlu1 %5084 }
 0x2db   :  { %9254 = vst [vmem:[#allocation57_spill] sm:$0xff] %v6707_v26  ;;  %4782 = vmatmul.msk.f32.gmra.mxu1 %vm821_vm5, %v747_v41  ;;  %1111 = vrot.lane.b32.xlu1 %v6598_v62, %s5596_s18 }
 0x2df   :  { %5124 = vrot.lane.b32.xlu0 %v5123_v63, %s5599_s4  ;;  %5139 = vrot.lane.b32.xlu2 %v5138_v5, %s5599_s4 }
 0x2e1   :  { %v6718_v19 = vpop.permute.xlu2 %1103  ;;  %v6720_v1 = vpop.permute.xlu0 %1392 }
 0x2e2   :  { %v6723_v41 = vpop.permute.xlu1 %1301 }
 0x2e3   :  { %4783 = vmatmul.msk.f32.gmra.mxu1 %vm821_vm5, %v748_v59  ;;  %1485 = vrot.lane.b32.xlu1 %v6643_v23, %s5596_s18 }
 0x2e7   :  { %5144 = vrot.lane.b32.xlu2 %v5143_v43, %s5599_s4  ;;  %5129 = vrot.lane.b32.xlu0 %v5128_v44, %s5599_s4  ;;  %v5163_v44 = vpack.i.bf16 %v6353_v17, %v6553_v3 }
 0x2e9   :  { %v1399_v5 = vpop.permute.xlu2 %1398  ;;  %v6734_v63 = vpop.permute.xlu0 %1002 }
 0x2ea   :  { %v6738_v59 = vpop.permute.xlu1 %1495 }
 0x2eb   :  { %9255 = vst [vmem:[#allocation58_spill] sm:$0xff] %v6738_v59  ;;  %1390 = vrot.lane.b32.xlu1 %v6663_v61, %s5596_s18 }
 0x2ef   :  { %915 = vrot.lane.b32.xlu2 %v6517_v47, %s5596_s18  ;;  %5134 = vrot.lane.b32.xlu0 %v5133_v10, %s5599_s4  ;;  %v5168_v10 = vpack.i.bf16 %v6467_v53, %v6582_v24 }
 0x2f1   :  { %v6745_v16 = vpop.permute.xlu2 %5089  ;;  %v6747_v43 = vpop.permute.xlu0 %1099 }
 0x2f2   :  { %v6753_v39 = vpop.permute.xlu1 %5094 }
 0x2f3   :  { %9256 = vst [vmem:[#allocation59_spill] sm:$0xff] %v6753_v39 }
 0x2f7   :  { %5164 = vrot.lane.b32.xlu2 %v5163_v44, %s5599_s4  ;;  %5159 = vrot.lane.b32.xlu0 %v5158_v9, %s5599_s4 }
 0x2f9   :  { %v6757_v23 = vpop.permute.xlu2 %911  ;;  %v6759_v6 = vpop.permute.xlu0 %1297 }
 0x2fd   :  { %v6765_v17 = vpop.permute.xlu1 %1497 }
 0x2fe   :  { %9257 = vst [vmem:[#allocation60_spill] sm:$0xff] %v6765_v17 }
 0x2ff   :  { %5169 = vrot.lane.b32.xlu0 %v5168_v10, %s5599_s4  ;;  %5174 = vrot.lane.b32.xlu2 %v5173_v0, %s5599_s4 }
 0x301   :  { %v6769_v20 = vpop.permute.xlu2 %1303  ;;  %v6771_v44 = vpop.permute.xlu0 %5079 }
 0x302   :  { %9258 = vst [vmem:[#allocation61_spill] sm:$0xff] %v6771_v44 }
 0x305   :  { %v6773_v9 = vpop.permute.xlu1 %5109 }
 0x306   :  { %9259 = vst [vmem:[#allocation62_spill] sm:$0xff] %v6773_v9 }
 0x307   :  { %1388 = vrot.lane.b32.xlu2 %v6648_v40, %s5596_s18  ;;  %1291 = vrot.lane.b32.xlu0 %v6628_v28, %s5596_s18 }
 0x309   :  { %v1401_v39 = vpop.permute.xlu2 %1400  ;;  %v6779_v62 = vpop.permute.xlu0 %1004 }
 0x30d   :  { %v6781_v56 = vpop.permute.xlu1 %1107 }
 0x30f   :  { %1293 = vrot.lane.b32.xlu0 %v6658_v7, %s5596_s18 }
 0x311   :  { %v6785_v0 = vpop.permute.xlu2 %5104  ;;  %v6787_v10 = vpop.permute.xlu0 %1101 }
 0x315   :  { %v6789_v24 = vpop.permute.xlu1 %1499 }
 0x316   :  { %9260 = vst [vmem:[#allocation63_spill] sm:$0xff] %v6789_v24 }
 0x317   :  { %1487 = vrot.lane.b32.xlu0 %v6674_v60, %s5596_s18 }
 0x319   :  { %v914_v9 = vpop.permute.xlu2 %913  ;;  %v6793_v54 = vpop.permute.xlu0 %1299 }
 0x31d   :  { %v1013_v28 = vpop.permute.xlu1 %1012 }
 0x321   :  { %v1011_v52 = vpop.permute.xlu2 %1010  ;;  %v1007_v4 = vpop.permute.xlu0 %1006 }
 0x325   :  { %v6795_v32 = vpop.permute.xlu1 %1109 }
 0x328   :  { %v6797_v59 = vpop.f32.mrf.mxu1 }
 0x329   :  { %9261 = vst [vmem:[#allocation64_spill] sm:$0xff] %v6797_v59  ;;  %v6799_v7 = vpop.permute.xlu2 %1305  ;;  %v1009_v17 = vpop.permute.xlu0 %1008 }
 0x32d   :  { %v6801_v31 = vpop.permute.xlu1 %5149 }
 0x32e   :  { %9262 = vst [vmem:[#allocation65_spill] sm:$0xff] %v6801_v31 }
 0x330   :  { %v6803_v8 = vpop.f32.mrf.mxu1 }
 0x331   :  { %9263 = vst [vmem:[#allocation66_spill] sm:$0xff] %v6803_v8  ;;  %v1403_v24 = vpop.permute.xlu2 %1402  ;;  %v1586_v60 = vsel %vm1582_vm6, %v6803_v8, -inf  ;;  %v6807_v25 = vpop.permute.xlu0 %1105 }
 0x332   :  { %4864 = vmatpush.xpose.msk.msrb.mxu0 %vm821_vm5, %v1403_v24  ;;  %1587 = vmax.xlane.f32.xlu2 %v1586_v60 }
 0x335   :  { %v6811_v34 = vpop.permute.xlu1 %5154 }
 0x336   :  { %4865 = vmatpush.xpose.msk.msrb.mxu0 %vm821_vm5, %v1401_v39  ;;  %v1583_v39 = vsel %vm1582_vm6, %v6797_v59, -inf }
 0x338   :  { %v6813_v44 = vpop.f32.mrf.mxu1 }
 0x339   :  { %9264 = vst [vmem:[#allocation67_spill] sm:$0xff] %v6813_v44  ;;  %v6815_v11 = vpop.permute.xlu2 %5139  ;;  %v1589_v31 = vsel %vm1582_vm6, %v6813_v44, -inf  ;;  %v6819_v26 = vpop.permute.xlu0 %5099 }
 0x33a   :  { %4866 = vmatpush.xpose.msk.msrb.mxu0 %vm821_vm5, %v1399_v5  ;;  %1590 = vmax.xlane.f32.xlu1 %v1589_v31 }
 0x33d   :  { %v918_v24 = vpop.permute.xlu1 %917 }
 0x33e   :  { %4867 = vmatpush.xpose.msk.msrb.mxu0 %vm821_vm5, %v6687_v49  ;;  %4784 = vmatpush.xpose.msk.msra.mxu1 %vm821_vm5, %v918_v24 }
 0x33f   :  { %5028 = vmatpush.xpose.msk.msra.mxu2 %vm821_vm5, %v918_v24 }
 0x340   :  { %v6828_v60 = vpop.f32.mrf.mxu1 }
 0x341   :  { %v6830_v8 = vpop.permute.xlu2 %5144  ;;  %1584 = vmax.xlane.f32.xlu0 %v1583_v39  ;;  %v6832_v44 = vpop.permute.xlu0 %5114  ;;  %v1592_v49 = vsel %vm1582_vm6, %v6828_v60, -inf }
 0x342   :  { %4868 = vmatpush.xpose.msk.msrb.mxu0 %vm821_vm5, %v6656_v22 }
 0x345   :  { %v1015_v31 = vpop.permute.xlu1 %1014 }
 0x346   :  { %4869 = vmatpush.xpose.msk.msrb.mxu0 %vm821_vm5, %v6720_v1  ;;  %4800 = vmatpush.xpose.msk.msra.mxu3 %vm821_vm5, %v1015_v31 }
 0x348   :  { %v6841_v5 = vpop.f32.mrf.mxu1 }
 0x349   :  { %9265 = vst [vmem:[#allocation68_spill] sm:$0xff] %v6841_v5  ;;  %v916_v24 = vpop.permute.xlu2 %915  ;;  %1593 = vmax.xlane.f32.xlu0 %v1592_v49  ;;  %v1595_v39 = vsel %vm1582_vm6, %v6841_v5, -inf  ;;  %v6845_v59 = vpop.permute.xlu0 %5119 }
 0x34a   :  { %4785 = vmatpush.xpose.msk.msra.mxu1 %vm821_vm5, %v916_v24  ;;  %5029 = vmatpush.xpose.msk.msra.mxu2 %vm821_vm5, %v916_v24 }
 0x34b   :  { %1596 = vmax.xlane.f32.xlu2 %v1595_v39  ;;  %4801 = vmatpush.xpose.msk.msra.mxu3 %vm821_vm5, %v1013_v28 }
 0x34d   :  { %v1112_v22 = vpop.permute.xlu1 %1111 }
 0x34e   :  { %4786 = vmatpush.xpose.msk.msra.mxu1 %vm821_vm5, %v914_v9  ;;  %5030 = vmatpush.xpose.msk.msra.mxu2 %vm821_vm5, %v914_v9 }
 0x34f   :  { %4802 = vmatpush.xpose.msk.msra.mxu3 %vm821_vm5, %v1011_v52 }
 0x350   :  { %v6853_v1 = vpop.f32.mrf.mxu1 }
 0x351   :  { %v6855_v31 = vpop.permute.xlu2 %5164  ;;  %v1598_v49 = vsel %vm1582_vm6, %v6853_v1, -inf  ;;  %v6859_v5 = vpop.permute.xlu0 %5124 }
 0x352   :  { %4787 = vmatpush.xpose.msk.msra.mxu1 %vm821_vm5, %v6757_v23  ;;  %5031 = vmatpush.xpose.msk.msra.mxu2 %vm821_vm5, %v6757_v23 }
 0x353   :  { %1599 = vmax.xlane.f32.xlu1 %v1598_v49  ;;  %4803 = vmatpush.xpose.msk.msra.mxu3 %vm821_vm5, %v1009_v17  ;;  %v5141_v49 = vunpack.i.l.bf16 %v6815_v11 }
 0x355   :  { %v6870_v52 = vpop.permute.xlu1 %1485 }
 0x356   :  { %4788 = vmatpush.xpose.msk.msra.mxu1 %vm821_vm5, %v6702_v48  ;;  %5032 = vmatpush.xpose.msk.msra.mxu2 %vm821_vm5, %v6702_v48 }
 0x357   :  { %4804 = vmatpush.xpose.msk.msra.mxu3 %vm821_vm5, %v1007_v4 }
 0x358   :  { %v6873_v28 = vpop.f32.mrf.mxu1 }
 0x359   :  { %v6875_v9 = vpop.permute.xlu2 %5174  ;;  %v1601_v23 = vsel %vm1582_vm6, %v6873_v28, -inf  ;;  %v6879_v24 = vpop.permute.xlu0 %5129 }
 0x35a   :  { %4789 = vmatpush.xpose.msk.msra.mxu1 %vm821_vm5, %v6672_v37  ;;  %5033 = vmatpush.xpose.msk.msra.mxu2 %vm821_vm5, %v6672_v37 }
 0x35b   :  { %1602 = vmax.xlane.f32.xlu2 %v1601_v23  ;;  %4805 = vmatpush.xpose.msk.msra.mxu3 %vm821_vm5, %v6779_v62  ;;  %v753_v62 = vmul.f32 0.35355338, %v6535_v21  ;;  %v9273_v23 = vld [vmem:[#allocation46_spill] sm:$0xff] }
 0x35d   :  { %v1391_v4 = vpop.permute.xlu1 %1390 }
 0x35e   :  { %4790 = vmatpush.xpose.msk.msra.mxu1 %vm821_vm5, %v6641_v42  ;;  %5034 = vmatpush.xpose.msk.msra.mxu2 %vm821_vm5, %v6641_v42  ;;  %v749_v42 = vmul.f32 0.35355338, %v6350_v13  ;;  %v750_v13 = vmul.f32 0.35355338, %v6359_v14 }
 0x35f   :  { %4806 = vmatpush.xpose.msk.msra.mxu3 %vm821_vm5, %v6734_v63  ;;  %4870 = vmatpush.xpose.msk.msrb.mxu0 %vm821_vm5, %v1391_v4  ;;  %v789_v63 = vmul.f32 0.35355338, %v6648_v40  ;;  %v5066_v4 = vunpack.i.l.bf16 %v9273_v23 }
 0x360   :  { %v6894_v17 = vpop.f32.mrf.mxu1 }
 0x361   :  { %v1389_v48 = vpop.permute.xlu2 %1388  ;;  %v1604_v37 = vsel %vm1582_vm6, %v6894_v17, -inf  ;;  %v6898_v39 = vpop.permute.xlu0 %5134 }
 0x362   :  { %4791 = vmatpush.xpose.msk.msra.mxu1 %vm821_vm5, %v6689_v55  ;;  %5035 = vmatpush.xpose.msk.msra.mxu2 %vm821_vm5, %v6689_v55  ;;  %v757_v55 = vmul.f32 0.35355338, %v6363_v33  ;;  %v754_v33 = vmul.f32 0.35355338, %v6508_v27  ;;  %v752_v27 = vmul.f32 0.35355338, %v6467_v53 }
 0x363   :  { %1605 = vmax.xlane.f32.xlu0 %v1604_v37  ;;  %4807 = vmatpush.xpose.msk.msra.mxu3 %vm821_vm5, %v6580_v38  ;;  %v9267_v53 = vld [vmem:[#allocation45_spill] sm:$0xff] }
 0x364   :  { %4871 = vmatpush.xpose.msk.msrb.mxu0 %vm821_vm5, %v1389_v48  ;;  %v9268_v38 = vld [vmem:[#allocation61_spill] sm:$0xff]  ;;  %v9274_v48 = vld [vmem:[#allocation36_spill] sm:$0xff] }
 0x365   :  { %4792 = vmatmul.msk.f32.vlgmr.msra.gmra.mxu1 %vm821_vm5, %v749_v42  ;;  %4796 = vmatmul.msk.f32.vlgmr.msra.gmra.mxu2 %vm821_vm5, %v753_v62  ;;  %v761_v37 = vmul.f32 0.35355338, %v9274_v48  ;;  %v9275_v42 = vld [vmem:[#allocation8_spill] sm:$0xff]  ;;  %v5122_v48 = vunpack.i.h.bf16 %v6845_v59 }
 0x366   :  { %4816 = vmatpush.xpose.msk.msrb.mxu1 %vm821_vm5, %v1112_v22  ;;  %4832 = vmatpush.xpose.msk.msrb.mxu2 %vm821_vm5, %v6543_v35  ;;  %v790_v35 = vmul.f32 0.35355338, %v6663_v61  ;;  %v765_v62 = vmul.f32 0.35355338, %v9275_v42  ;;  %v9290_v42 = vld [vmem:[#allocation44_spill] sm:$0xff] }
 0x367   :  { %4848 = vmatpush.xpose.msk.msrb.mxu3 %vm821_vm5, %v6799_v7  ;;  %4872 = vmatmul.msk.f32.vlgmr.msrb.gmra.mxu0 %vm821_vm5, %v789_v63  ;;  %v9276_v63 = vld [vmem:[#allocation60_spill] sm:$0xff] }
 0x368   :  { %4808 = vmatmul.msk.f32.vlgmr.msra.gmra.mxu3 %vm821_vm5, %v757_v55  ;;  %v9277_v55 = vld [vmem:[#allocation20_spill] sm:$0xff] }
 0x369   :  { %v6926_v7 = vpop.permute.xlu0 %5159 }
 0x36a   :  { %4817 = vmatpush.xpose.msk.msrb.mxu1 %vm821_vm5, %v6795_v32  ;;  %4833 = vmatpush.xpose.msk.msrb.mxu2 %vm821_vm5, %v6469_v46  ;;  %v755_v46 = vmul.f32 0.35355338, %v6517_v47  ;;  %v5091_v47 = vunpack.i.l.bf16 %v6745_v16  ;;  %v760_v32 = vmul.f32 0.35355338, %v6486_v45  ;;  %v5071_v45 = vunpack.i.l.bf16 %v9267_v53 }
 0x36b   :  { %4849 = vmatpush.xpose.msk.msrb.mxu3 %vm821_vm5, %v6769_v20  ;;  %v758_v20 = vmul.f32 0.35355338, %v6378_v57  ;;  %v751_v57 = vmul.f32 0.35355338, %v6413_v2 }
 0x36d   :  { %4793 = vmatmul.msk.f32.gmra.mxu1 %vm821_vm5, %v750_v13  ;;  %4797 = vmatmul.msk.f32.gmra.mxu2 %vm821_vm5, %v754_v33  ;;  %v773_v13 = vmul.f32 0.35355338, %v9277_v55  ;;  %v9278_v33 = vld [vmem:[#allocation23_spill] sm:$0xff] }
 0x36e   :  { %4818 = vmatpush.xpose.msk.msrb.mxu1 %vm821_vm5, %v6781_v56  ;;  %4834 = vmatpush.xpose.msk.msrb.mxu2 %vm821_vm5, %v6498_v58  ;;  %v5156_v58 = vunpack.i.l.bf16 %v6811_v34  ;;  %v9292_v55 = vld [vmem:[#allocation3_spill] sm:$0xff] }
 0x36f   :  { %4850 = vmatpush.xpose.msk.msrb.mxu3 %vm821_vm5, %v6723_v41  ;;  %4873 = vmatmul.msk.f32.gmra.mxu0 %vm821_vm5, %v790_v35  ;;  %v5067_v35 = vunpack.i.h.bf16 %v9273_v23 }
 0x370   :  { %4809 = vmatmul.msk.f32.gmra.mxu3 %vm821_vm5, %v758_v20  ;;  %v793_v20 = vmul.f32 0.35355338, %v9278_v33 }
 0x371   :  { %v6948_v56 = vpop.permute.xlu0 %5169 }
 0x372   :  { %4819 = vmatpush.xpose.msk.msrb.mxu1 %vm821_vm5, %v6807_v25  ;;  %4835 = vmatpush.xpose.msk.msrb.mxu2 %vm821_vm5, %v6429_v36  ;;  %v5171_v14 = vunpack.i.l.bf16 %v6948_v56  ;;  %v791_v36 = vmul.f32 0.35355338, %v6386_v50  ;;  %v5081_v25 = vunpack.i.l.bf16 %v9268_v38 }
 0x373   :  { %4851 = vmatpush.xpose.msk.msrb.mxu3 %vm821_vm5, %v6793_v54  ;;  %v759_v54 = vmul.f32 0.35355338, %v6434_v18  ;;  %v5106_v18 = vunpack.i.l.bf16 %v6785_v0 }
 0x374   :  { %2521 = vmatpush.msra.mxu0 %v5171_v14  ;;  %v5147_v14 = vunpack.i.h.bf16 %v6830_v8 }
 0x375   :  { %4794 = vmatmul.msk.f32.gmra.mxu1 %vm821_vm5, %v751_v57  ;;  %4798 = vmatmul.msk.f32.gmra.mxu2 %vm821_vm5, %v755_v46  ;;  %v5166_v57 = vunpack.i.l.bf16 %v6855_v31 }
 0x376   :  { %4820 = vmatpush.xpose.msk.msrb.mxu1 %vm821_vm5, %v6718_v19  ;;  %4836 = vmatpush.xpose.msk.msrb.mxu2 %vm821_vm5, %v6384_v12  ;;  %v5126_v12 = vunpack.i.l.bf16 %v6859_v5  ;;  %v9271_v19 = vld [vmem:[#allocation63_spill] sm:$0xff] }
 0x377   :  { %4852 = vmatpush.xpose.msk.msrb.mxu3 %vm821_vm5, %v6759_v6  ;;  %4874 = vmatmul.msk.f32.gmra.mxu0 %vm821_vm5, %v791_v36  ;;  %v9266_v6 = vld [vmem:[#allocation57_spill] sm:$0xff] }
 0x378   :  { %4810 = vmatmul.msk.f32.gmra.mxu3 %vm821_vm5, %v759_v54  ;;  %2522 = vmatpush.msra.mxu0 %v5156_v58  ;;  %v5086_v21 = vunpack.i.l.bf16 %v9266_v6  ;;  %v9279_v54 = vld [vmem:[#allocation28_spill] sm:$0xff]  ;;  %v9280_v36 = vld [vmem:[#allocation65_spill] sm:$0xff] }
 0x379   :  { %v1292_v2 = vpop.permute.xlu0 %1291  ;;  %v5061_v46 = vunpack.i.l.bf16 %v9279_v54  ;;  %v5151_v58 = vunpack.i.l.bf16 %v9280_v36  ;;  %v5152_v23 = vunpack.i.h.bf16 %v9280_v36 }
 0x37a   :  { %4821 = vmatpush.xpose.msk.msrb.mxu1 %vm821_vm5, %v6787_v10  ;;  %4837 = vmatpush.xpose.msk.msrb.mxu2 %vm821_vm5, %v6335_v15  ;;  %v756_v15 = vmul.f32 0.35355338, %v6553_v3  ;;  %v9270_v3 = vld [vmem:[#allocation49_spill] sm:$0xff]  ;;  %v9272_v10 = vld [vmem:[#allocation47_spill] sm:$0xff] }
 0x37b   :  { %4853 = vmatpush.xpose.msk.msrb.mxu3 %vm821_vm5, %v6704_v29  ;;  %2523 = vmatpush.msra.mxu0 %v5126_v12  ;;  %v792_v29 = vmul.f32 0.35355338, %v6399_v51  ;;  %v5076_v22 = vunpack.i.l.bf16 %v9272_v10  ;;  %v9281_v12 = vld [vmem:[#allocation58_spill] sm:$0xff] }
 0x37d   :  { %2524 = vmatpush.msra.mxu0 %v5106_v18  ;;  %4795 = vmatmul.msk.f32.gmra.mxu1 %vm821_vm5, %v752_v27  ;;  %v5062_v18 = vunpack.i.h.bf16 %v9279_v54  ;;  %v5121_v27 = vunpack.i.l.bf16 %v6845_v59  ;;  %v5102_v59 = vunpack.i.h.bf16 %v6819_v26 }
 0x37e   :  { %4822 = vmatpush.xpose.msk.msrb.mxu1 %vm821_vm5, %v6747_v43  ;;  %4838 = vmatpush.xpose.msk.msrb.mxu2 %vm821_vm5, %v6565_v30  ;;  %v9269_v30 = vld [vmem:[#allocation41_spill] sm:$0xff]  ;;  %v5072_v43 = vunpack.i.h.bf16 %v9267_v53 }
 0x37f   :  { %2525 = vmatpush.msra.mxu0 %v5091_v47  ;;  %4799 = vmatmul.msk.f32.gmra.mxu2 %vm821_vm5, %v756_v15  ;;  %v9282_v47 = vld [vmem:[#allocation17_spill] sm:$0xff] }
 0x380   :  { %4811 = vmatmul.msk.f32.gmra.mxu3 %vm821_vm5, %v760_v32  ;;  %4875 = vmatmul.msk.f32.gmra.mxu0 %vm821_vm5, %v792_v29  ;;  %v5056_v32 = vunpack.i.l.bf16 %v9282_v47  ;;  %v9284_v29 = vld [vmem:[#allocation56_spill] sm:$0xff] }
 0x381   :  { %2526 = vmatpush.msra.mxu0 %v5086_v21  ;;  %v1294_v41 = vpop.permute.xlu0 %1293  ;;  %v9285_v21 = vld [vmem:[#allocation11_spill] sm:$0xff] }
 0x382   :  { %4823 = vmatpush.xpose.msk.msrb.mxu1 %vm821_vm5, %v9269_v30  ;;  %4839 = vmatpush.xpose.msk.msrb.mxu2 %vm821_vm5, %v9270_v3  ;;  %v766_v53 = vmul.f32 0.35355338, %v9285_v21  ;;  %v5101_v30 = vunpack.i.l.bf16 %v6819_v26  ;;  %v9287_v3 = vld [vmem:[#allocation26_spill] sm:$0xff]  ;;  %v5132_v26 = vunpack.i.h.bf16 %v6879_v24 }
 0x383   :  { %2527 = vmatpush.msra.mxu0 %v5081_v25  ;;  %4854 = vmatpush.xpose.msk.msrb.mxu3 %vm821_vm5, %v1294_v41  ;;  %v5057_v41 = vunpack.i.h.bf16 %v9282_v47 }
 0x385   :  { %2528 = vmatpush.msra.mxu0 %v5076_v22  ;;  %4824 = vmatmul.msk.f32.vlgmr.msrb.gmra.mxu1 %vm821_vm5, %v765_v62  ;;  %v5172_v22 = vunpack.i.h.bf16 %v6948_v56  ;;  %v9291_v62 = vld [vmem:[#allocation22_spill] sm:$0xff] }
 0x386   :  { %4880 = vmatpush.xpose.msk.msra.mxu1 %vm821_vm5, %v9271_v19  ;;  %2343 = vmatpush.msra.mxu2 %v5071_v45  ;;  %v9286_v45 = vld [vmem:[#allocation18_spill] sm:$0xff]  ;;  %v794_v19 = vmul.f32 0.35355338, %v9287_v3 }
 0x387   :  { %2877 = vmatpush.msrb.mxu0 %v5141_v49  ;;  %4840 = vmatmul.msk.f32.vlgmr.msrb.gmra.mxu2 %vm821_vm5, %v773_v13  ;;  %v774_v25 = vmul.f32 0.35355338, %v9286_v45  ;;  %v9288_v49 = vld [vmem:[#allocation55_spill] sm:$0xff]  ;;  %v775_v13 = vmul.f32 0.35355338, %v9292_v55  ;;  %v9300_v45 = vld [vmem:[#allocation24_spill] sm:$0xff] }
 0x388   :  { %2344 = vmatpush.msra.mxu2 %v5072_v43  ;;  %4812 = vmatmul.msk.f32.gmra.mxu3 %vm821_vm5, %v761_v37  ;;  %v5167_v43 = vunpack.i.h.bf16 %v6855_v31  ;;  %v5127_v37 = vunpack.i.h.bf16 %v6859_v5  ;;  %v9289_v31 = vld [vmem:[#allocation34_spill] sm:$0xff]  ;;  %v5177_v5 = vunpack.i.h.bf16 %v6875_v9 }
 0x389   :  { %4876 = vmatmul.msk.f32.gmra.mxu0 %vm821_vm5, %v793_v20  ;;  %4855 = vmatpush.xpose.msk.msrb.mxu3 %vm821_vm5, %v1292_v2  ;;  %v9283_v2 = vld [vmem:[#allocation32_spill] sm:$0xff]  ;;  %v763_v56 = vmul.f32 0.35355338, %v9289_v31 }
 0x38a   :  { %4881 = vmatpush.xpose.msk.msra.mxu1 %vm821_vm5, %v9276_v63  ;;  %2345 = vmatpush.msra.mxu2 %v5066_v4  ;;  %v762_v15 = vmul.f32 0.35355338, %v9283_v2  ;;  %v5157_v4 = vunpack.i.h.bf16 %v6811_v34  ;;  %v767_v63 = vmul.f32 0.35355338, %v9291_v62  ;;  %v9293_v34 = vld [vmem:[#allocation29_spill] sm:$0xff] }
 0x38b   :  { %2878 = vmatpush.msrb.mxu0 %v5147_v14  ;;  %v795_v20 = vmul.f32 0.35355338, %v9293_v34  ;;  %v1488_v14 = vpop.permute.xlu0 %1487 }
 0x38c   :  { %2346 = vmatpush.msra.mxu2 %v5067_v35  ;;  %v5107_v35 = vunpack.i.h.bf16 %v6785_v0  ;;  %v9294_v0 = vld [vmem:[#allocation39_spill] sm:$0xff] }
 0x38d   :  { %2432 = vmatpush.msra.mxu3 %v5166_v57  ;;  %4825 = vmatmul.msk.f32.gmra.mxu1 %vm821_vm5, %v766_v53  ;;  %v5162_v57 = vunpack.i.h.bf16 %v6926_v7  ;;  %v764_v54 = vmul.f32 0.35355338, %v9294_v0  ;;  %v9154_v53 = vunpack.i.l.bf16 %v6898_v39 }
 0x38e   :  { %4882 = vmatpush.xpose.msk.msra.mxu1 %vm821_vm5, %v9281_v12  ;;  %2347 = vmatpush.msra.mxu2 %v5061_v46  ;;  %v9295_v46 = vld [vmem:[#allocation19_spill] sm:$0xff] }
 0x38f   :  { %2433 = vmatpush.msra.mxu3 %v5151_v58  ;;  %4841 = vmatmul.msk.f32.gmra.mxu2 %vm821_vm5, %v774_v25  ;;  %v768_v36 = vmul.f32 0.35355338, %v9295_v46  ;;  %v9296_v58 = vld [vmem:[#allocation4_spill] sm:$0xff]  ;;  %v769_v25 = vmul.f32 0.35355338, %v9300_v45 }
 0x390   :  { %2348 = vmatpush.msra.mxu2 %v5062_v18  ;;  %4813 = vmatmul.msk.f32.gmra.mxu3 %vm821_vm5, %v762_v15  ;;  %v776_v12 = vmul.f32 0.35355338, %v9296_v58  ;;  %v5176_v18 = vunpack.i.l.bf16 %v6875_v9  ;;  %v5161_v15 = vunpack.i.l.bf16 %v6926_v7  ;;  %v9299_v9 = vld [vmem:[#allocation48_spill] sm:$0xff]  ;;  %v9301_v7 = vld [vmem:[#allocation5_spill] sm:$0xff]  ;;  %v5117_v58 = vunpack.i.h.bf16 %v6832_v44 }
 0x391   :  { %2434 = vmatpush.msra.mxu3 %v5121_v27  ;;  %4877 = vmatmul.msk.f32.gmra.mxu0 %vm821_vm5, %v794_v19  ;;  %v9297_v27 = vld [vmem:[#allocation43_spill] sm:$0xff]  ;;  %v777_v19 = vmul.f32 0.35355338, %v9301_v7  ;;  %v9320_v7 = vld [vmem:[#allocation16_spill] sm:$0xff] }
 0x392   :  { %4883 = vmatpush.xpose.msk.msra.mxu1 %vm821_vm5, %v9284_v29  ;;  %2349 = vmatpush.msra.mxu2 %v5056_v32  ;;  %v796_v47 = vmul.f32 0.35355338, %v9297_v27  ;;  %v9298_v32 = vld [vmem:[#allocation62_spill] sm:$0xff]  ;;  %v781_v29 = vmul.f32 0.35355338, %v9299_v9 }
 0x393   :  { %2435 = vmatpush.msra.mxu3 %v5101_v30  ;;  %v5112_v2 = vunpack.i.h.bf16 %v9298_v32  ;;  %v5111_v21 = vunpack.i.l.bf16 %v9298_v32  ;;  %v5092_v30 = vunpack.i.h.bf16 %v6745_v16  ;;  %v5082_v16 = vunpack.i.h.bf16 %v9268_v38  ;;  %v9305_v38 = vld [vmem:[#allocation7_spill] sm:$0xff]  ;;  %v9315_v27 = vld [vmem:[#allocation54_spill] sm:$0xff] }
 0x394   :  { %2350 = vmatpush.msra.mxu2 %v5057_v41  ;;  %v9153_v41 = vunpack.i.h.bf16 %v6898_v39  ;;  %v9316_v32 = vld [vmem:[#allocation27_spill] sm:$0xff] }
 0x395   :  { %2436 = vmatpush.msra.mxu3 %v5172_v22  ;;  %4826 = vmatmul.msk.f32.gmra.mxu1 %vm821_vm5, %v767_v63  ;;  %v9307_v63 = vld [vmem:[#allocation38_spill] sm:$0xff] }
 0x396   :  { %4884 = vmatpush.xpose.msk.msra.mxu1 %vm821_vm5, %v9288_v49  ;;  %2699 = vmatpush.msrb.mxu2 %v5167_v43  ;;  %v9302_v43 = vld [vmem:[#allocation59_spill] sm:$0xff]  ;;  %v771_v55 = vmul.f32 0.35355338, %v9307_v63 }
 0x397   :  { %2437 = vmatpush.msra.mxu3 %v5157_v4  ;;  %4842 = vmatmul.msk.f32.gmra.mxu2 %vm821_vm5, %v775_v13  ;;  %v9152_v22 = vunpack.i.l.bf16 %v9302_v43  ;;  %v9151_v49 = vunpack.i.h.bf16 %v9302_v43  ;;  %v9308_v13 = vld [vmem:[#allocation6_spill] sm:$0xff] }
 0x398   :  { %2700 = vmatpush.msrb.mxu2 %v5152_v23  ;;  %4814 = vmatmul.msk.f32.gmra.mxu3 %vm821_vm5, %v763_v56  ;;  %v5077_v23 = vunpack.i.h.bf16 %v9272_v10  ;;  %v778_v56 = vmul.f32 0.35355338, %v9305_v38  ;;  %v9306_v10 = vld [vmem:[#allocation12_spill] sm:$0xff]  ;;  %v779_v34 = vmul.f32 0.35355338, %v9308_v13 }
 0x399   :  { %2438 = vmatpush.msra.mxu3 %v5127_v37  ;;  %4878 = vmatmul.msk.f32.gmra.mxu0 %vm821_vm5, %v795_v20  ;;  %v9304_v37 = vld [vmem:[#allocation35_spill] sm:$0xff]  ;;  %v783_v62 = vmul.f32 0.35355338, %v9306_v10  ;;  %v9309_v20 = vld [vmem:[#allocation14_spill] sm:$0xff] }
 0x39a   :  { %4885 = vmatpush.xpose.msk.msra.mxu1 %vm821_vm5, %v9290_v42  ;;  %2701 = vmatpush.msrb.mxu2 %v5122_v48  ;;  %v9150_v48 = vunpack.i.h.bf16 %v6815_v11  ;;  %v770_v31 = vmul.f32 0.35355338, %v9304_v37  ;;  %v9149_v42 = vunpack.i.l.bf16 %v6832_v44  ;;  %v9321_v37 = vld [vmem:[#allocation25_spill] sm:$0xff] }
 0x39b   :  { %2439 = vmatpush.msra.mxu3 %v5107_v35  ;;  %v784_v35 = vmul.f32 0.35355338, %v9309_v20  ;;  %v9323_v20 = vld [vmem:[#allocation33_spill] sm:$0xff] }
 0x39c   :  { %2702 = vmatpush.msrb.mxu2 %v5102_v59  ;;  %v9310_v59 = vld [vmem:[#allocation42_spill] sm:$0xff] }
 0x39d   :  { %4827 = vmatmul.msk.f32.gmra.mxu1 %vm821_vm5, %v768_v36  ;;  %v5146_v36 = vunpack.i.l.bf16 %v6830_v8 }
 0x39e   :  { %4886 = vmatpush.xpose.msk.msra.mxu1 %vm821_vm5, %v1488_v14  ;;  %2703 = vmatpush.msrb.mxu2 %v5177_v5  ;;  %v772_v5 = vmul.f32 0.35355338, %v9310_v59  ;;  %v9311_v14 = vld [vmem:[#allocation10_spill] sm:$0xff] }
 0x39f   :  { %4843 = vmatmul.msk.f32.gmra.mxu2 %vm821_vm5, %v776_v12  ;;  %v9314_v12 = vld [vmem:[#allocation31_spill] sm:$0xff] }
 0x3a0   :  { %2704 = vmatpush.msrb.mxu2 %v5162_v57  ;;  %4815 = vmatmul.msk.f32.gmra.mxu3 %vm821_vm5, %v764_v54  ;;  %v780_v57 = vmul.f32 0.35355338, %v9311_v14  ;;  %v9313_v54 = vld [vmem:[#allocation50_spill] sm:$0xff] }
 0x3a1   :  { %4879 = vmatmul.msk.f32.gmra.mxu0 %vm821_vm5, %v796_v47  ;;  %v797_v46 = vmul.f32 0.35355338, %v9313_v54  ;;  %v798_v47 = vmul.f32 0.35355338, %v9315_v27 }
 0x3a2   :  { %4887 = vmatpush.xpose.msk.msra.mxu1 %vm821_vm5, %v6870_v52  ;;  %2705 = vmatpush.msrb.mxu2 %v5132_v26  ;;  %v5131_v52 = vunpack.i.l.bf16 %v6879_v24  ;;  %v5087_v24 = vunpack.i.h.bf16 %v9266_v6  ;;  %v9303_v6 = vld [vmem:[#allocation52_spill] sm:$0xff]  ;;  %v9312_v26 = vld [vmem:[#allocation21_spill] sm:$0xff] }
 0x3a3   :  { %v782_v4 = vmul.f32 0.35355338, %v9303_v6  ;;  %v785_v0 = vmul.f32 0.35355338, %v9312_v26  ;;  %v9324_v26 = vld [vmem:[#allocation66_spill] sm:$0xff] }
 0x3a4   :  { %2706 = vmatpush.msrb.mxu2 %v5112_v2  ;;  %v787_v2 = vmul.f32 0.35355338, %v9316_v32 }
 0x3a5   :  { %4828 = vmatmul.msk.f32.gmra.mxu1 %vm821_vm5, %v769_v25  ;;  %v9319_v25 = vld [vmem:[#allocation40_spill] sm:$0xff]  ;;  %v1588_v59 = vpop.xlane.xlu2 %1587 }
 0x3a6   :  { %2610 = vmatpush.msrb.mxu1 %v5176_v18  ;;  %v786_v18 = vmul.f32 0.35355338, %v9314_v12 }
 0x3a7   :  { %4844 = vmatmul.msk.f32.gmra.mxu2 %vm821_vm5, %v777_v19  ;;  %v800_v19 = vmul.f32 0.35355338, %v9320_v7 }
 0x3a8   :  { %2611 = vmatpush.msrb.mxu1 %v5161_v15  ;;  %4856 = vmatmul.msk.f32.vlgmr.msrb.gmra.mxu3 %vm821_vm5, %v781_v29  ;;  %v9317_v15 = vld [vmem:[#allocation9_spill] sm:$0xff]  ;;  %v9318_v29 = vld [vmem:[#allocation64_spill] sm:$0xff] }
 0x3a9   :  { %5036 = vmatpush.msrb.mxu3 %v9154_v53  ;;  %v799_v8 = vmul.f32 0.35355338, %v9317_v15 }
 0x3aa   :  { %2612 = vmatpush.msrb.mxu1 %v5131_v52 }
 0x3ab   :  { %5037 = vmatpush.msrb.mxu3 %v9153_v41 }
 0x3ac   :  { %2613 = vmatpush.msrb.mxu1 %v5111_v21 }
 0x3ad   :  { %5038 = vmatpush.msrb.mxu3 %v9152_v22  ;;  %4829 = vmatmul.msk.f32.gmra.mxu1 %vm821_vm5, %v770_v31  ;;  %v801_v31 = vmul.f32 0.35355338, %v9321_v37 }
 0x3ae   :  { %2614 = vmatpush.msrb.mxu1 %v5092_v30  ;;  %v788_v30 = vmul.f32 0.35355338, %v9319_v25 }
 0x3af   :  { %5039 = vmatpush.msrb.mxu3 %v9151_v49  ;;  %4845 = vmatmul.msk.f32.gmra.mxu2 %vm821_vm5, %v778_v56 }
 0x3b0   :  { %2615 = vmatpush.msrb.mxu1 %v5087_v24  ;;  %4857 = vmatmul.msk.f32.gmra.mxu3 %vm821_vm5, %v782_v4 }
 0x3b1   :  { %5040 = vmatpush.msrb.mxu3 %v9150_v48 }
 0x3b2   :  { %2616 = vmatpush.msrb.mxu1 %v5082_v16 }
 0x3b3   :  { %5041 = vmatpush.msrb.mxu3 %v9149_v42 }
 0x3b4   :  { %2617 = vmatpush.msrb.mxu1 %v5077_v23  ;;  %v1585_v52 = vpop.xlane.xlu0 %1584 }
 0x3b5   :  { %4830 = vmatmul.msk.f32.gmra.mxu1 %vm821_vm5, %v771_v55  ;;  %v1775_v21 = vsub.f32 %v9318_v29, %v1585_v52 }
 0x3b7   :  { %4846 = vmatmul.msk.f32.gmra.mxu2 %vm821_vm5, %v779_v34  ;;  %v1839_v45 = vmul.f32 1.442695, %v1775_v21 }
 0x3b8   :  { %4858 = vmatmul.msk.f32.gmra.mxu3 %vm821_vm5, %v783_v62 }
 0x3b9   :  { %5255 = vpow2.f32 %v1839_v45 }
 0x3bd   :  { %4831 = vmatmul.msk.f32.gmra.mxu1 %vm821_vm5, %v772_v5 }
 0x3bf   :  { %4847 = vmatmul.msk.f32.gmra.mxu2 %vm821_vm5, %v780_v57  ;;  %v7147_v38 = vpop.eup %5255 }
 0x3c0   :  { %4859 = vmatmul.msk.f32.gmra.mxu3 %vm821_vm5, %v784_v35  ;;  %v1967_v55 = vsel %vm1582_vm6, %v7147_v38, 0.0  ;;  %v802_v35 = vmul.f32 0.35355338, %v9323_v20 }
 0x3c5   :  { %4888 = vmatmul.msk.f32.vlgmr.msra.gmra.mxu1 %vm821_vm5, %v797_v46 }
 0x3c6   :  { %2966 = vmatpush.msra.mxu1 %v5146_v36 }
 0x3c8   :  { %4860 = vmatmul.msk.f32.gmra.mxu3 %vm821_vm5, %v785_v0  ;;  %2967 = vmatpush.msra.mxu1 %v5117_v58  ;;  %v1776_v0 = vsub.f32 %v9324_v26, %v1588_v59 }
 0x3ca   :  { %v1841_v32 = vmul.f32 1.442695, %v1776_v0 }
 0x3cc   :  { %5257 = vpow2.f32 %v1841_v32 }
 0x3cd   :  { %4889 = vmatmul.msk.f32.gmra.mxu1 %vm821_vm5, %v798_v47 }
 0x3d0   :  { %4861 = vmatmul.msk.f32.gmra.mxu3 %vm821_vm5, %v786_v18  ;;  %v9326_v18 = vld [vmem:[#allocation37_spill] sm:$0xff] }
 0x3d1   :  { %v803_v47 = vmul.f32 0.35355338, %v9326_v18 }
 0x3d5   :  { %4890 = vmatmul.msk.f32.gmra.mxu1 %vm821_vm5, %v799_v8 }
 0x3d8   :  { %4862 = vmatmul.msk.f32.gmra.mxu3 %vm821_vm5, %v787_v2 }
 0x3dd   :  { %4891 = vmatmul.msk.f32.gmra.mxu1 %vm821_vm5, %v800_v19 }
 0x3e0   :  { %4863 = vmatmul.msk.f32.gmra.mxu3 %vm821_vm5, %v788_v30  ;;  %v9328_v30 = vld [vmem:[#allocation30_spill] sm:$0xff] }
 0x3e1   :  { %v804_v19 = vmul.f32 0.35355338, %v9328_v30 }
 0x3e2   :  { %v7138_v24 = vpop.f32.mrf.mxu1 }
 0x3e3   :  { %v1607_v23 = vsel %vm1582_vm6, %v7138_v24, -inf }
 0x3e4   :  { %v7140_v16 = vpop.f32.mrf.mxu0  ;;  %1608 = vmax.xlane.f32.xlu2 %v1607_v23  ;;  %v7198_v23 = vpop.eup %5257 }
 0x3e5   :  { %v1727_v4 = vsel %vm1582_vm6, %v7140_v16, -inf  ;;  %4892 = vmatmul.msk.f32.gmra.mxu1 %vm821_vm5, %v801_v31  ;;  %v1591_v31 = vpop.xlane.xlu1 %1590 }
 0x3e6   :  { %1728 = vmax.xlane.f32.xlu1 %v1727_v4 }
 0x3e8   :  { %v7149_v56 = vpop.f32.mrf.mxu2 }
 0x3e9   :  { %v1619_v13 = vsel %vm1582_vm6, %v7149_v56, -inf }
 0x3ea   :  { %v7154_v62 = vpop.f32.mrf.mxu1 }
 0x3eb   :  { %v7152_v10 = vpop.f32.mrf.mxu3  ;;  %v1610_v58 = vsel %vm1582_vm6, %v7154_v62, -inf }
 0x3ec   :  { %v7156_v63 = vpop.f32.mrf.mxu0  ;;  %1968 = vadd.xlane.f32.xlu2 %v1967_v55  ;;  %v1631_v12 = vsel %vm1582_vm6, %v7152_v10, -inf }
 0x3ed   :  { %9322 = vst [vmem:[#allocation57_spill] sm:$0xff] %v7156_v63  ;;  %v1730_v34 = vsel %vm1582_vm6, %v7156_v63, -inf  ;;  %4893 = vmatmul.msk.f32.gmra.mxu1 %vm821_vm5, %v802_v35 }
 0x3ee   :  { %1620 = vmax.xlane.f32.xlu1 %v1619_v13  ;;  %1731 = vmax.xlane.f32.xlu0 %v1730_v34  ;;  %v1970_v34 = vsel %vm1582_vm6, %v7198_v23, 0.0 }
 0x3f0   :  { %v7165_v5 = vpop.f32.mrf.mxu2 }
 0x3f1   :  { %v1622_v25 = vsel %vm1582_vm6, %v7165_v5, -inf }
 0x3f2   :  { %v7170_v57 = vpop.f32.mrf.mxu1 }
 0x3f3   :  { %v7168_v14 = vpop.f32.mrf.mxu3  ;;  %v1613_v35 = vsel %vm1582_vm6, %v7170_v57, -inf }
 0x3f4   :  { %v1634_v46 = vsel %vm1582_vm6, %v7168_v14, -inf  ;;  %v7175_v36 = vpop.f32.mrf.mxu0 }
 0x3f5   :  { %9325 = vst [vmem:[#allocation45_spill] sm:$0xff] %v7175_v36  ;;  %1635 = vmax.xlane.f32.xlu2 %v1634_v46  ;;  %4894 = vmatmul.msk.f32.gmra.mxu1 %vm821_vm5, %v803_v47  ;;  %v1733_v45 = vsel %vm1582_vm6, %v7175_v36, -inf  ;;  %v1600_v46 = vpop.xlane.xlu1 %1599 }
 0x3f6   :  { %1611 = vmax.xlane.f32.xlu1 %v1610_v58  ;;  %1632 = vmax.xlane.f32.xlu0 %v1631_v12  ;;  %v9330_v12 = vld [vmem:[#allocation67_spill] sm:$0xff] }
 0x3f7   :  { %v1777_v18 = vsub.f32 %v9330_v12, %v1591_v31 }
 0x3f8   :  { %v7185_v8 = vpop.f32.mrf.mxu2 }
 0x3f9   :  { %v1843_v30 = vmul.f32 1.442695, %v1777_v18 }
 0x3fa   :  { %v7187_v52 = vpop.f32.mrf.mxu1 }
 0x3fb   :  { %v7183_v2 = vpop.f32.mrf.mxu3  ;;  %v1616_v29 = vsel %vm1582_vm6, %v7187_v52, -inf  ;;  %5259 = vpow2.f32 %v1843_v30 }
 0x3fc   :  { %v1637_v32 = vsel %vm1582_vm6, %v7183_v2, -inf }
 0x3fd   :  { %v7191_v21 = vpop.f32.mrf.mxu0  ;;  %1617 = vmax.xlane.f32.xlu2 %v1616_v29  ;;  %4895 = vmatmul.msk.f32.gmra.mxu1 %vm821_vm5, %v804_v19  ;;  %v1780_v29 = vsub.f32 %v6853_v1, %v1600_v46  ;;  %v1594_v19 = vpop.xlane.xlu0 %1593  ;;  %v1625_v1 = vsel %vm1582_vm6, %v7185_v8, -inf }
 0x3fe   :  { %9327 = vst [vmem:[#allocation61_spill] sm:$0xff] %v7191_v21  ;;  %1734 = vmax.xlane.f32.xlu1 %v1733_v45  ;;  %1623 = vmax.xlane.f32.xlu0 %v1622_v25  ;;  %v1736_v47 = vsel %vm1582_vm6, %v7191_v21, -inf }
 0x402   :  { %v7203_v55 = vpop.f32.mrf.mxu2  ;;  %v7205_v13 = vpop.f32.mrf.mxu1 }
 0x403   :  { %v7201_v4 = vpop.f32.mrf.mxu3  ;;  %v1655_v25 = vsel %vm1582_vm6, %v7205_v13, -inf  ;;  %v1628_v46 = vsel %vm1582_vm6, %v7203_v55, -inf }
 0x404   :  { %v1640_v22 = vsel %vm1582_vm6, %v7201_v4, -inf }
 0x406   :  { %v7211_v59 = vpop.f32.mrf.mxu0  ;;  %1971 = vadd.xlane.f32.xlu1 %v1970_v34  ;;  %1614 = vmax.xlane.f32.xlu0 %v1613_v35  ;;  %v1849_v34 = vmul.f32 1.442695, %v1780_v29  ;;  %v1778_v35 = vsub.f32 %v6828_v60, %v1594_v19 }
 0x407   :  { %9329 = vst [vmem:[#allocation41_spill] sm:$0xff] %v7211_v59  ;;  %v1739_v26 = vsel %vm1582_vm6, %v7211_v59, -inf }
 0x408   :  { %1740 = vmax.xlane.f32.xlu2 %v1739_v26  ;;  %5261 = vpow2.f32 %v1849_v34 }
 0x40a   :  { %v7217_v58 = vpop.f32.mrf.mxu2  ;;  %v7225_v45 = vpop.f32.mrf.mxu1 }
 0x40b   :  { %v7215_v0 = vpop.f32.mrf.mxu3  ;;  %v1658_v53 = vsel %vm1582_vm6, %v7225_v45, -inf }
 0x40c   :  { %v1643_v18 = vsel %vm1582_vm6, %v7215_v0, -inf }
 0x40e   :  { %1737 = vmax.xlane.f32.xlu0 %v1736_v47  ;;  %1638 = vmax.xlane.f32.xlu1 %v1637_v32  ;;  %v1845_v47 = vmul.f32 1.442695, %v1778_v35  ;;  %v7242_v32 = vpop.eup %5259  ;;  %v7244_v60 = vpop.f32.mrf.mxu0 }
 0x40f   :  { %9331 = vst [vmem:[#allocation49_spill] sm:$0xff] %v7244_v60  ;;  %v7246_v29 = vpop.eup %5261  ;;  %v1973_v19 = vsel %vm1582_vm6, %v7242_v32, 0.0  ;;  %v1742_v34 = vsel %vm1582_vm6, %v7244_v60, -inf }
 0x410   :  { %1656 = vmax.xlane.f32.xlu2 %v1655_v25  ;;  %5263 = vpow2.f32 %v1845_v47  ;;  %v9332_v47 = vld [vmem:[#allocation68_spill] sm:$0xff] }
 0x412   :  { %v7232_v26 = vpop.f32.mrf.mxu2  ;;  %v7238_v12 = vpop.f32.mrf.mxu1 }
 0x413   :  { %v7229_v31 = vpop.f32.mrf.mxu3 }
 0x416   :  { %1626 = vmax.xlane.f32.xlu0 %v1625_v1  ;;  %1629 = vmax.xlane.f32.xlu1 %v1628_v46  ;;  %v1982_v1 = vsel %vm1582_vm6, %v7246_v29, 0.0  ;;  %v1597_v46 = vpop.xlane.xlu2 %1596 }
 0x417   :  { %v1779_v42 = vsub.f32 %v9332_v47, %v1597_v46  ;;  %v1679_v47 = vsel %vm1582_vm6, %v7217_v58, -inf }
 0x418   :  { %1644 = vmax.xlane.f32.xlu2 %v1643_v18  ;;  %v7260_v18 = vpop.eup %5263 }
 0x419   :  { %v1847_v41 = vmul.f32 1.442695, %v1779_v42 }
 0x41a   :  { %v7250_v30 = vpop.f32.mrf.mxu2  ;;  %v7256_v35 = vpop.f32.mrf.mxu1 }
 0x41b   :  { %v7248_v25 = vpop.f32.mrf.mxu3  ;;  %5265 = vpow2.f32 %v1847_v41 }
 0x41c   :  { %v1649_v7 = vsel %vm1582_vm6, %v7248_v25, -inf }
 0x41e   :  { %1974 = vadd.xlane.f32.xlu0 %v1973_v19  ;;  %1743 = vmax.xlane.f32.xlu1 %v1742_v34  ;;  %v1976_v19 = vsel %vm1582_vm6, %v7260_v18, 0.0  ;;  %v1603_v42 = vpop.xlane.xlu2 %1602 }
 0x41f   :  { %v1781_v21 = vsub.f32 %v6873_v28, %v1603_v42  ;;  %v1682_v42 = vsel %vm1582_vm6, %v7232_v26, -inf }
 0x420   :  { %1983 = vadd.xlane.f32.xlu2 %v1982_v1  ;;  %v1685_v1 = vsel %vm1582_vm6, %v7250_v30, -inf }
 0x421   :  { %v7287_v41 = vpop.eup %5265  ;;  %v1851_v54 = vmul.f32 1.442695, %v1781_v21  ;;  %v1661_v21 = vsel %vm1582_vm6, %v7238_v12, -inf }
 0x422   :  { %v7265_v49 = vpop.f32.mrf.mxu2  ;;  %v7271_v34 = vpop.f32.mrf.mxu1  ;;  %v1979_v36 = vsel %vm1582_vm6, %v7287_v41, 0.0 }
 0x423   :  { %v7263_v48 = vpop.f32.mrf.mxu3  ;;  %9333 = vst [vmem:[#allocation63_spill] sm:$0xff] %v7265_v49  ;;  %5267 = vpow2.f32 %v1851_v54  ;;  %v1688_v51 = vsel %vm1582_vm6, %v7265_v49, -inf }
 0x426   :  { %1641 = vmax.xlane.f32.xlu0 %v1640_v22  ;;  %1977 = vadd.xlane.f32.xlu1 %v1976_v19  ;;  %v1664_v19 = vsel %vm1582_vm6, %v7256_v35, -inf }
 0x428   :  { %1686 = vmax.xlane.f32.xlu2 %v1685_v1  ;;  %v7289_v1 = vpop.f32.mrf.mxu0 }
 0x429   :  { %9335 = vst [vmem:[#allocation46_spill] sm:$0xff] %v7289_v1 }
 0x42a   :  { %v7281_v60 = vpop.f32.mrf.mxu2  ;;  %v7283_v22 = vpop.f32.mrf.mxu1 }
 0x42b   :  { %v7275_v46 = vpop.f32.mrf.mxu3  ;;  %9334 = vst [vmem:[#allocation47_spill] sm:$0xff] %v7283_v22  ;;  %v1670_v9 = vsel %vm1582_vm6, %v7283_v22, -inf }
 0x42e   :  { %1680 = vmax.xlane.f32.xlu0 %v1679_v47  ;;  %1659 = vmax.xlane.f32.xlu1 %v1658_v53  ;;  %v1745_v53 = vsel %vm1582_vm6, %v7289_v1, -inf  ;;  %v1646_v1 = vsel %vm1582_vm6, %v7229_v31, -inf }
 0x430   :  { %1665 = vmax.xlane.f32.xlu2 %v1664_v19 }
 0x432   :  { %v7298_v47 = vpop.f32.mrf.mxu2  ;;  %v7300_v19 = vpop.f32.mrf.mxu1 }
 0x433   :  { %v7292_v59 = vpop.f32.mrf.mxu3  ;;  %9336 = vst [vmem:[#allocation36_spill] sm:$0xff] %v7298_v47  ;;  %v1694_v63 = vsel %vm1582_vm6, %v7298_v47, -inf }
 0x434   :  { %v1706_v22 = vsel %vm1582_vm6, %v7292_v59, -inf }
 0x436   :  { %1980 = vadd.xlane.f32.xlu0 %v1979_v36  ;;  %1746 = vmax.xlane.f32.xlu1 %v1745_v53 }
 0x438   :  { %1695 = vmax.xlane.f32.xlu2 %v1694_v63  ;;  %v7316_v63 = vpop.eup %5267 }
 0x439   :  { %v1985_v27 = vsel %vm1582_vm6, %v7316_v63, 0.0 }
 0x43a   :  { %v7310_v40 = vpop.f32.mrf.mxu2  ;;  %v7312_v36 = vpop.f32.mrf.mxu1 }
 0x43b   :  { %v7304_v28 = vpop.f32.mrf.mxu3  ;;  %9337 = vst [vmem:[#allocation8_spill] sm:$0xff] %v7312_v36  ;;  %v1676_v53 = vsel %vm1582_vm6, %v7312_v36, -inf }
 0x43e   :  { %1683 = vmax.xlane.f32.xlu0 %v1682_v42  ;;  %1647 = vmax.xlane.f32.xlu1 %v1646_v1 }
 0x440   :  { %1677 = vmax.xlane.f32.xlu2 %v1676_v53  ;;  %v1606_v53 = vpop.xlane.xlu0 %1605 }
 0x441   :  { %v1782_v15 = vsub.f32 %v6894_v17, %v1606_v53  ;;  %v1652_v17 = vsel %vm1582_vm6, %v7263_v48, -inf  ;;  %v1667_v53 = vsel %vm1582_vm6, %v7271_v34, -inf }
 0x442   :  { %v7324_v61 = vpop.f32.mrf.mxu2  ;;  %v7326_v1 = vpop.f32.mrf.mxu1 }
 0x443   :  { %v7318_v54 = vpop.f32.mrf.mxu3  ;;  %9339 = vst [vmem:[#allocation20_spill] sm:$0xff] %v7324_v61  ;;  %v1700_v42 = vsel %vm1582_vm6, %v7324_v61, -inf }
 0x444   :  { %9338 = vst [vmem:[#allocation60_spill] sm:$0xff] %v7318_v54 }
 0x446   :  { %1662 = vmax.xlane.f32.xlu0 %v1661_v21  ;;  %1986 = vadd.xlane.f32.xlu1 %v1985_v27  ;;  %v1853_v21 = vmul.f32 1.442695, %v1782_v15 }
 0x448   :  { %1701 = vmax.xlane.f32.xlu2 %v1700_v42  ;;  %5269 = vpow2.f32 %v1853_v21 }
 0x44a   :  { %v7337_v27 = vpop.f32.mrf.mxu1 }
 0x44b   :  { %v7331_v50 = vpop.f32.mrf.mxu3 }
 0x44c   :  { %9340 = vst [vmem:[#allocation23_spill] sm:$0xff] %v7331_v50  ;;  %v1715_v37 = vsel %vm1582_vm6, %v7331_v50, -inf }
 0x44e   :  { %1650 = vmax.xlane.f32.xlu0 %v1649_v7  ;;  %1689 = vmax.xlane.f32.xlu1 %v1688_v51 }
 0x450   :  { %1716 = vmax.xlane.f32.xlu2 %v1715_v37  ;;  %v7353_v37 = vpop.eup %5269 }
 0x452   :  { %v7347_v7 = vpop.f32.mrf.mxu1 }
 0x453   :  { %v7341_v42 = vpop.f32.mrf.mxu3  ;;  %9342 = vst [vmem:[#allocation65_spill] sm:$0xff] %v7347_v7  ;;  %v1757_v51 = vsel %vm1582_vm6, %v7347_v7, -inf }
 0x454   :  { %9341 = vst [vmem:[#allocation28_spill] sm:$0xff] %v7341_v42 }
 0x456   :  { %1653 = vmax.xlane.f32.xlu0 %v1652_v17  ;;  %1668 = vmax.xlane.f32.xlu1 %v1667_v53  ;;  %v1988_v17 = vsel %vm1582_vm6, %v7353_v37, 0.0 }
 0x457   :  { %v1609_v15 = vpop.xlane.xlu2 %1608 }
 0x458   :  { %1758 = vmax.xlane.f32.xlu2 %v1757_v51  ;;  %v1783_v53 = vsub.f32 %v7138_v24, %v1609_v15 }
 0x459   :  { %v7351_v50 = vpop.xlane.xlu1 %1728 }
 0x45a   :  { %v1855_v36 = vmul.f32 1.442695, %v1783_v53 }
 0x45b   :  { %v7355_v21 = vpop.f32.mrf.mxu3 }
 0x45c   :  { %9343 = vst [vmem:[#allocation58_spill] sm:$0xff] %v7355_v21  ;;  %v1721_v7 = vsel %vm1582_vm6, %v7355_v21, -inf }
 0x45e   :  { %1671 = vmax.xlane.f32.xlu1 %v1670_v9  ;;  %1989 = vadd.xlane.f32.xlu0 %v1988_v17  ;;  %v1691_v9 = vsel %vm1582_vm6, %v7281_v60, -inf }
 0x45f   :  { %v1969_v51 = vpop.xlane.xlu2 %1968 }
 0x460   :  { %1722 = vmax.xlane.f32.xlu2 %v1721_v7  ;;  %5271 = vrcp.f32 %v1969_v51 }
 0x461   :  { %v7364_v61 = vpop.xlane.xlu1 %1620  ;;  %v7366_v47 = vpop.xlane.xlu0 %1731  ;;  %5273 = vpow2.f32 %v1855_v36  ;;  %v1673_v36 = vsel %vm1582_vm6, %v7300_v19, -inf }
 0x462   :  { %9344 = vst [vmem:[#allocation17_spill] sm:$0xff] %v7366_v47  ;;  %v9346_v47 = vunpack.i.l.bf16 %v6898_v39 }
 0x463   :  { %v7368_v49 = vpop.f32.mrf.mxu3 }
 0x464   :  { %9345 = vst [vmem:[#allocation32_spill] sm:$0xff] %v7368_v49  ;;  %v1724_v15 = vsel %vm1582_vm6, %v7368_v49, -inf }
 0x466   :  { %1707 = vmax.xlane.f32.xlu1 %v1706_v22  ;;  %1692 = vmax.xlane.f32.xlu0 %v1691_v9  ;;  %v5272_v24 = vpop.eup %5271 }
 0x467   :  { %v2223_v7 = vmul.f32 %v5272_v24, %v7147_v38  ;;  %v7383_v9 = vpop.eup %5273  ;;  %v9347_v38 = vunpack.i.h.bf16 %v6898_v39  ;;  %v1703_v24 = vsel %vm1582_vm6, %v7275_v46, -inf }
 0x468   :  { %v7377_v17 = vpop.xlane.xlu2 %1635  ;;  %1725 = vmax.xlane.f32.xlu2 %v1724_v15  ;;  %v9350_v15 = vunpack.i.h.bf16 %v9302_v43 }
 0x469   :  { %v1612_v53 = vpop.xlane.xlu1 %1611  ;;  %v1633_v51 = vpop.xlane.xlu0 %1632  ;;  %4896 = vmatmul.msk.f32.vlgmr.msra.gmra.mxu2 %vm1582_vm6, %v2223_v7 }
 0x46a   :  { %v1784_v21 = vsub.f32 %v7154_v62, %v1612_v53  ;;  %2788 = vmatpush.msra.mxu2 %v9346_v47  ;;  %v9348_v62 = vunpack.i.l.bf16 %v9302_v43  ;;  %v1991_v47 = vsel %vm1582_vm6, %v7383_v9, 0.0  ;;  %v9351_v53 = vunpack.i.h.bf16 %v6815_v11 }
 0x46c   :  { %v1857_v22 = vmul.f32 1.442695, %v1784_v21  ;;  %2789 = vmatpush.msra.mxu2 %v9347_v38  ;;  %v9352_v38 = vunpack.i.l.bf16 %v6832_v44  ;;  %v1791_v44 = vsub.f32 %v7152_v10, %v1633_v51  ;;  %v1751_v51 = vsel %vm1582_vm6, %v7326_v1, -inf }
 0x46e   :  { %5275 = vpow2.f32 %v1857_v22  ;;  %1674 = vmax.xlane.f32.xlu1 %v1673_v36  ;;  %1704 = vmax.xlane.f32.xlu0 %v1703_v24  ;;  %v1709_v36 = vsel %vm1582_vm6, %v7304_v28, -inf  ;;  %v1697_v24 = vsel %vm1582_vm6, %v7310_v40, -inf }
 0x46f   :  { %2790 = vmatpush.msra.mxu2 %v9348_v62 }
 0x470   :  { %v1618_v21 = vpop.xlane.xlu2 %1617  ;;  %1992 = vadd.xlane.f32.xlu2 %v1991_v47 }
 0x471   :  { %v7395_v7 = vpop.xlane.xlu1 %1734  ;;  %v7397_v39 = vpop.xlane.xlu0 %1623  ;;  %2791 = vmatpush.msra.mxu2 %v9350_v15  ;;  %v1718_v15 = vsel %vm1582_vm6, %v7341_v42, -inf }
 0x472   :  { %9349 = vst [vmem:[#allocation56_spill] sm:$0xff] %v7395_v7 }
 0x473   :  { %2792 = vmatpush.msra.mxu2 %v9351_v53  ;;  %v1712_v53 = vsel %vm1582_vm6, %v7318_v54, -inf }
 0x474   :  { %v7403_v22 = vpop.eup %5275 }
 0x475   :  { %2793 = vmatpush.msra.mxu2 %v9352_v38  ;;  %v1994_v62 = vsel %vm1582_vm6, %v7403_v22, 0.0  ;;  %v7422_v38 = vpop.f32.mrf.mxu1 }
 0x476   :  { %1710 = vmax.xlane.f32.xlu1 %v1709_v36  ;;  %1698 = vmax.xlane.f32.xlu0 %v1697_v24  ;;  %9354 = vst [vmem:[#allocation18_spill] sm:$0xff] %v7422_v38  ;;  %v1871_v24 = vmul.f32 1.442695, %v1791_v44  ;;  %v1760_v10 = vsel %vm1582_vm6, %v7422_v38, -inf }
 0x478   :  { %1995 = vadd.xlane.f32.xlu2 %v1994_v62 }
 0x479   :  { %v1972_v43 = vpop.xlane.xlu1 %1971  ;;  %v7413_v11 = vpop.xlane.xlu0 %1614 }
 0x47a   :  { %5277 = vrcp.f32 %v1972_v43 }
 0x47b   :  { %v7415_v47 = vpop.xlane.xlu2 %1740  ;;  %5279 = vpow2.f32 %v1871_v24 }
 0x47c   :  { %9353 = vst [vmem:[#allocation11_spill] sm:$0xff] %v7415_v47 }
 0x47e   :  { %1719 = vmax.xlane.f32.xlu1 %v1718_v15  ;;  %1713 = vmax.xlane.f32.xlu0 %v1712_v53  ;;  %v7434_v15 = vpop.f32.mrf.mxu1 }
 0x480   :  { %v5278_v36 = vpop.eup %5277 }
 0x481   :  { %v1639_v62 = vpop.xlane.xlu1 %1638  ;;  %v7424_v49 = vpop.xlane.xlu0 %1737  ;;  %v2224_v43 = vmul.f32 %v5278_v36, %v7198_v23  ;;  %v1787_v36 = vsub.f32 %v7149_v56, %v7364_v61 }
 0x482   :  { %9355 = vst [vmem:[#allocation26_spill] sm:$0xff] %v7424_v49  ;;  %v7438_v42 = vpop.eup %5279 }
 0x483   :  { %v7427_v47 = vpop.xlane.xlu2 %1656  ;;  %4897 = vmatmul.msk.f32.gmra.mxu2 %vm1582_vm6, %v2224_v43  ;;  %v1792_v43 = vsub.f32 %v7168_v14, %v7377_v17  ;;  %v2015_v49 = vsel %vm1582_vm6, %v7438_v42, 0.0  ;;  %v1788_v14 = vsub.f32 %v7165_v5, %v7397_v39  ;;  %v1793_v17 = vsub.f32 %v7183_v2, %v1639_v62 }
 0x485   :  { %v1865_v5 = vmul.f32 1.442695, %v1788_v14 }
 0x486   :  { %1761 = vmax.xlane.f32.xlu1 %v1760_v10  ;;  %1752 = vmax.xlane.f32.xlu0 %v1751_v51  ;;  %v1786_v10 = vsub.f32 %v7187_v52, %v1618_v21  ;;  %v1754_v51 = vsel %vm1582_vm6, %v7337_v27, -inf  ;;  %v7454_v7 = vpop.f32.mrf.mxu1  ;;  %v1763_v21 = vsel %vm1582_vm6, %v7434_v15, -inf }
 0x488   :  { %v1861_v61 = vmul.f32 1.442695, %v1786_v10 }
 0x489   :  { %v7436_v44 = vpop.xlane.xlu1 %1629  ;;  %v1627_v53 = vpop.xlane.xlu0 %1626 }
 0x48a   :  { %v1789_v23 = vsub.f32 %v7185_v8, %v1627_v53  ;;  %v1863_v8 = vmul.f32 1.442695, %v1787_v36  ;;  %v1873_v53 = vmul.f32 1.442695, %v1792_v43 }
 0x48b   :  { %v7443_v24 = vpop.xlane.xlu2 %1644 }
 0x48c   :  { %v1867_v38 = vmul.f32 1.442695, %v1789_v23  ;;  %v1875_v23 = vmul.f32 1.442695, %v1793_v17 }
 0x48e   :  { %1755 = vmax.xlane.f32.xlu0 %v1754_v51  ;;  %2016 = vadd.xlane.f32.xlu1 %v2015_v49  ;;  %5281 = vpow2.f32 %v1867_v38  ;;  %v1766_v38 = vsel %vm1582_vm6, %v7454_v7, -inf }
 0x491   :  { %v7452_v56 = vpop.xlane.xlu1 %1743  ;;  %v1975_v54 = vpop.xlane.xlu0 %1974 }
 0x492   :  { %5283 = vrcp.f32 %v1975_v54 }
 0x493   :  { %5285 = vpow2.f32 %v1863_v8  ;;  %v7458_v52 = vpop.xlane.xlu2 %1983 }
 0x494   :  { %5287 = vpow2.f32 %v1873_v53  ;;  %v7461_v49 = vpop.eup %5281  ;;  %v1785_v53 = vsub.f32 %v7170_v57, %v7413_v11 }
 0x495   :  { %5289 = vpow2.f32 %v1861_v61  ;;  %v2009_v54 = vsel %vm1582_vm6, %v7461_v49, 0.0 }
 0x496   :  { %1764 = vmax.xlane.f32.xlu0 %v1763_v21  ;;  %1767 = vmax.xlane.f32.xlu1 %v1766_v38  ;;  %v1859_v38 = vmul.f32 1.442695, %v1785_v53 }
 0x497   :  { %2010 = vadd.xlane.f32.xlu2 %v2009_v54 }
 0x498   :  { %v5284_v39 = vpop.eup %5283 }
 0x499   :  { %v7469_v36 = vpop.eup %5285  ;;  %v1978_v2 = vpop.xlane.xlu1 %1977  ;;  %v2225_v43 = vmul.f32 %v5284_v39, %v7242_v32 }
 0x49a   :  { %v1642_v62 = vpop.xlane.xlu0 %1641  ;;  %v7472_v10 = vpop.eup %5287  ;;  %5291 = vrcp.f32 %v1978_v2  ;;  %v2003_v14 = vsel %vm1582_vm6, %v7469_v36, 0.0 }
 0x49b   :  { %v7474_v51 = vpop.eup %5289  ;;  %5293 = vpow2.f32 %v1865_v5  ;;  %v7476_v8 = vpop.xlane.xlu2 %1686  ;;  %4898 = vmatmul.msk.f32.gmra.mxu2 %vm1582_vm6, %v2225_v43  ;;  %v1794_v61 = vsub.f32 %v7201_v4, %v1642_v62  ;;  %v2018_v32 = vsel %vm1582_vm6, %v7472_v10, 0.0  ;;  %v1790_v43 = vsub.f32 %v7203_v55, %v7436_v44 }
 0x49c   :  { %5295 = vpow2.f32 %v1875_v23  ;;  %v2000_v17 = vsel %vm1582_vm6, %v7474_v51, 0.0 }
 0x49d   :  { %v1877_v57 = vmul.f32 1.442695, %v1794_v61  ;;  %5297 = vpow2.f32 %v1859_v38 }
 0x49e   :  { %2004 = vadd.xlane.f32.xlu0 %v2003_v14  ;;  %2019 = vadd.xlane.f32.xlu1 %v2018_v32 }
 0x49f   :  { %2001 = vadd.xlane.f32.xlu2 %v2000_v17  ;;  %5299 = vpow2.f32 %v1877_v57 }
 0x4a0   :  { %v5292_v21 = vpop.eup %5291 }
 0x4a1   :  { %v7488_v54 = vpop.eup %5293  ;;  %v1660_v11 = vpop.xlane.xlu1 %1659  ;;  %v2226_v4 = vmul.f32 %v5292_v21, %v7260_v18  ;;  %v1799_v21 = vsub.f32 %v7205_v13, %v7427_v47 }
 0x4a2   :  { %v1681_v5 = vpop.xlane.xlu0 %1680  ;;  %v7491_v39 = vpop.eup %5295  ;;  %v1800_v23 = vsub.f32 %v7225_v45, %v1660_v11  ;;  %v2006_v18 = vsel %vm1582_vm6, %v7488_v54, 0.0  ;;  %v1869_v45 = vmul.f32 1.442695, %v1790_v43 }
 0x4a3   :  { %v7494_v2 = vpop.xlane.xlu2 %1665  ;;  %4899 = vmatmul.msk.f32.gmra.mxu2 %vm1582_vm6, %v2226_v4  ;;  %v2021_v53 = vsel %vm1582_vm6, %v7491_v39, 0.0  ;;  %v7505_v32 = vpop.eup %5297  ;;  %v1807_v38 = vsub.f32 %v7217_v58, %v1681_v5 }
 0x4a4   :  { %v1889_v62 = vmul.f32 1.442695, %v1800_v23  ;;  %v1997_v57 = vsel %vm1582_vm6, %v7505_v32, 0.0  ;;  %v7524_v5 = vpop.f32.mrf.mxu1 }
 0x4a5   :  { %v7507_v17 = vpop.eup %5299  ;;  %v1903_v13 = vmul.f32 1.442695, %v1807_v38 }
 0x4a6   :  { %5301 = vpow2.f32 %v1889_v62  ;;  %2022 = vadd.xlane.f32.xlu1 %v2021_v53  ;;  %2007 = vadd.xlane.f32.xlu0 %v2006_v18  ;;  %v2024_v4 = vsel %vm1582_vm6, %v7507_v17, 0.0  ;;  %v1887_v62 = vmul.f32 1.442695, %v1799_v21 }
 0x4a9   :  { %v7503_v61 = vpop.xlane.xlu1 %1746 }
 0x4aa   :  { %v1981_v14 = vpop.xlane.xlu0 %1980 }
 0x4ab   :  { %5303 = vrcp.f32 %v1981_v14  ;;  %v7509_v55 = vpop.xlane.xlu2 %1695 }
 0x4ac   :  { %v7511_v44 = vpop.eup %5301  ;;  %5305 = vpow2.f32 %v1869_v45  ;;  %v1795_v45 = vsub.f32 %v7215_v0, %v7443_v24 }
 0x4ad   :  { %v2042_v11 = vsel %vm1582_vm6, %v7511_v44, 0.0  ;;  %5307 = vrcp.f32 %v7458_v52 }
 0x4ae   :  { %1998 = vadd.xlane.f32.xlu0 %v1997_v57  ;;  %2043 = vadd.xlane.f32.xlu2 %v2042_v11  ;;  %5309 = vpow2.f32 %v1887_v62  ;;  %v1879_v24 = vmul.f32 1.442695, %v1795_v45 }
 0x4af   :  { %2025 = vadd.xlane.f32.xlu1 %v2024_v4  ;;  %5311 = vpow2.f32 %v1903_v13 }
 0x4b1   :  { %v5304_v23 = vpop.eup %5303  ;;  %v1648_v47 = vpop.xlane.xlu1 %1647 }
 0x4b2   :  { %v1684_v43 = vpop.xlane.xlu0 %1683  ;;  %v2227_v58 = vmul.f32 %v5304_v23, %v7287_v41  ;;  %v7527_v18 = vpop.eup %5305  ;;  %v1796_v52 = vsub.f32 %v7229_v31, %v1648_v47  ;;  %v1809_v41 = vsub.f32 %v7250_v30, %v7476_v8 }
 0x4b3   :  { %v1808_v53 = vsub.f32 %v7232_v26, %v1684_v43  ;;  %v7532_v14 = vpop.xlane.xlu2 %1677  ;;  %v1769_v26 = vsel %vm1582_vm6, %v7524_v5, -inf  ;;  %v5308_v38 = vpop.eup %5307  ;;  %v2012_v0 = vsel %vm1582_vm6, %v7527_v18, 0.0 }
 0x4b4   :  { %4900 = vmatmul.msk.f32.gmra.mxu2 %vm1582_vm6, %v2227_v58  ;;  %v1881_v57 = vmul.f32 1.442695, %v1796_v52  ;;  %v1907_v11 = vmul.f32 1.442695, %v1809_v41  ;;  %v2228_v23 = vmul.f32 %v5308_v38, %v7246_v29  ;;  %v7542_v62 = vpop.eup %5309 }
 0x4b5   :  { %v1905_v21 = vmul.f32 1.442695, %v1808_v53  ;;  %v7544_v30 = vpop.eup %5311  ;;  %v2039_v43 = vsel %vm1582_vm6, %v7542_v62, 0.0 }
 0x4b6   :  { %1770 = vmax.xlane.f32.xlu0 %v1769_v26  ;;  %v2063_v29 = vsel %vm1582_vm6, %v7544_v30, 0.0 }
 0x4b7   :  { %5313 = vpow2.f32 %v1905_v21  ;;  %2013 = vadd.xlane.f32.xlu1 %v2012_v0 }
 0x4b9   :  { %v1987_v4 = vpop.xlane.xlu1 %1986 }
 0x4ba   :  { %v1663_v31 = vpop.xlane.xlu0 %1662  ;;  %5315 = vrcp.f32 %v1987_v4 }
 0x4bb   :  { %5317 = vpow2.f32 %v1879_v24  ;;  %v7547_v8 = vpop.xlane.xlu2 %1701  ;;  %v1801_v13 = vsub.f32 %v7238_v12, %v1663_v31 }
 0x4bc   :  { %4901 = vmatmul.msk.f32.gmra.mxu2 %vm1582_vm6, %v2228_v23  ;;  %5319 = vpow2.f32 %v1881_v57 }
 0x4bd   :  { %v7550_v47 = vpop.eup %5313  ;;  %5321 = vpow2.f32 %v1907_v11  ;;  %v1891_v45 = vmul.f32 1.442695, %v1801_v13 }
 0x4be   :  { %2040 = vadd.xlane.f32.xlu0 %v2039_v43  ;;  %v2066_v58 = vsel %vm1582_vm6, %v7550_v47, 0.0 }
 0x4bf   :  { %2064 = vadd.xlane.f32.xlu1 %v2063_v29  ;;  %2067 = vadd.xlane.f32.xlu2 %v2066_v58  ;;  %5323 = vpow2.f32 %v1891_v45 }
 0x4c0   :  { %v5316_v53 = vpop.eup %5315 }
 0x4c1   :  { %v7558_v52 = vpop.eup %5317  ;;  %v7560_v12 = vpop.xlane.xlu1 %1689  ;;  %v2229_v41 = vmul.f32 %v5316_v53, %v7316_v63 }
 0x4c2   :  { %v1651_v21 = vpop.xlane.xlu0 %1650  ;;  %v7563_v26 = vpop.eup %5319  ;;  %v2027_v4 = vsel %vm1582_vm6, %v7558_v52, 0.0 }
 0x4c3   :  { %v1797_v38 = vsub.f32 %v7248_v25, %v1651_v21  ;;  %v7566_v0 = vpop.eup %5321  ;;  %v7569_v24 = vpop.xlane.xlu2 %1716  ;;  %v2030_v11 = vsel %vm1582_vm6, %v7563_v26, 0.0 }
 0x4c4   :  { %4902 = vmatmul.msk.f32.gmra.mxu2 %vm1582_vm6, %v2229_v41  ;;  %v2069_v63 = vsel %vm1582_vm6, %v7566_v0, 0.0 }
 0x4c5   :  { %v1883_v57 = vmul.f32 1.442695, %v1797_v38  ;;  %v7577_v23 = vpop.eup %5323 }
 0x4c6   :  { %2031 = vadd.xlane.f32.xlu0 %v2030_v11  ;;  %v2045_v45 = vsel %vm1582_vm6, %v7577_v23, 0.0 }
 0x4c7   :  { %5325 = vpow2.f32 %v1883_v57  ;;  %2028 = vadd.xlane.f32.xlu1 %v2027_v4  ;;  %2070 = vadd.xlane.f32.xlu2 %v2069_v63 }
 0x4c9   :  { %v1669_v25 = vpop.xlane.xlu1 %1668 }
 0x4ca   :  { %v1654_v31 = vpop.xlane.xlu0 %1653  ;;  %v1803_v53 = vsub.f32 %v7271_v34, %v1669_v25 }
 0x4cb   :  { %v1798_v13 = vsub.f32 %v7263_v48, %v1654_v31  ;;  %v7580_v43 = vpop.xlane.xlu2 %1758 }
 0x4cc   :  { %v1895_v41 = vmul.f32 1.442695, %v1803_v53 }
 0x4cd   :  { %v1885_v29 = vmul.f32 1.442695, %v1798_v13  ;;  %v7582_v58 = vpop.eup %5325 }
 0x4ce   :  { %2046 = vadd.xlane.f32.xlu0 %v2045_v45  ;;  %v2033_v21 = vsel %vm1582_vm6, %v7582_v58, 0.0 }
 0x4cf   :  { %5327 = vpow2.f32 %v1885_v29  ;;  %2034 = vadd.xlane.f32.xlu2 %v2033_v21  ;;  %v5178_v21 = vpack.i.bf16 %v9303_v6, %v9287_v3 }
 0x4d1   :  { %v7589_v38 = vpop.xlane.xlu1 %1671 }
 0x4d2   :  { %v1990_v48 = vpop.xlane.xlu0 %1989 }
 0x4d3   :  { %5329 = vrcp.f32 %v1990_v48  ;;  %v7591_v57 = vpop.xlane.xlu2 %1722 }
 0x4d4   :  { %5331 = vpow2.f32 %v1895_v41 }
 0x4d5   :  { %v7593_v11 = vpop.eup %5327 }
 0x4d6   :  { %v2036_v34 = vsel %vm1582_vm6, %v7593_v11, 0.0 }
 0x4d7   :  { %2037 = vadd.xlane.f32.xlu2 %v2036_v34 }
 0x4d9   :  { %v5330_v4 = vpop.eup %5329  ;;  %v7597_v63 = vpop.xlane.xlu1 %1707 }
 0x4da   :  { %v1693_v25 = vpop.xlane.xlu0 %1692  ;;  %v2230_v31 = vmul.f32 %v5330_v4, %v7353_v37  ;;  %v7601_v29 = vpop.eup %5331 }
 0x4db   :  { %v1811_v13 = vsub.f32 %v7281_v60, %v1693_v25  ;;  %v7604_v53 = vpop.xlane.xlu2 %1725  ;;  %v2051_v41 = vsel %vm1582_vm6, %v7601_v29, 0.0 }
 0x4dc   :  { %4903 = vmatmul.msk.f32.gmra.mxu2 %vm1582_vm6, %v2230_v31 }
 0x4dd   :  { %v1911_v45 = vmul.f32 1.442695, %v1811_v13 }
 0x4df   :  { %5333 = vpow2.f32 %v1911_v45  ;;  %2052 = vadd.xlane.f32.xlu2 %v2051_v41 }
 0x4e0   :  { %5179 = vrot.lane.b32.xlu1 %v5178_v21, %s5599_s4 }
 0x4e1   :  { %v1675_v37 = vpop.xlane.xlu1 %1674 }
 0x4e2   :  { %v1705_v48 = vpop.xlane.xlu0 %1704  ;;  %v1805_v4 = vsub.f32 %v7300_v19, %v1675_v37 }
 0x4e3   :  { %v1815_v60 = vsub.f32 %v7275_v46, %v1705_v48  ;;  %v1993_v34 = vpop.xlane.xlu2 %1992 }
 0x4e4   :  { %5335 = vrcp.f32 %v1993_v34  ;;  %v1899_v6 = vmul.f32 1.442695, %v1805_v4 }
 0x4e5   :  { %v1919_v25 = vmul.f32 1.442695, %v1815_v60  ;;  %v7613_v31 = vpop.eup %5333 }
 0x4e6   :  { %v2075_v3 = vsel %vm1582_vm6, %v7613_v31, 0.0 }
 0x4e7   :  { %5337 = vpow2.f32 %v1919_v25  ;;  %2076 = vadd.xlane.f32.xlu0 %v2075_v3 }
 0x4e8   :  { %5339 = vpow2.f32 %v1899_v6  ;;  %v5183_v6 = vpack.i.bf16 %v9278_v33, %v9323_v20  ;;  %v9357_v20 = vld [vmem:[#allocation63_spill] sm:$0xff] }
 0x4e9   :  { %v7617_v13 = vpop.xlane.xlu1 %1710 }
 0x4ea   :  { %v1699_v45 = vpop.xlane.xlu0 %1698  ;;  %v5336_v21 = vpop.eup %5335 }
 0x4eb   :  { %v2231_v41 = vmul.f32 %v5336_v21, %v7383_v9  ;;  %v1996_v46 = vpop.xlane.xlu2 %1995  ;;  %v1813_v19 = vsub.f32 %v7310_v40, %v1699_v45  ;;  %v1823_v40 = vsub.f32 %v7140_v16, %v7351_v50  ;;  %v1802_v21 = vsub.f32 %v7256_v35, %v7494_v2 }
 0x4ec   :  { %5341 = vrcp.f32 %v1996_v46 }
 0x4ed   :  { %v7620_v48 = vpop.eup %5337  ;;  %4904 = vmatmul.msk.f32.vlgmr.msra.gmra.mxu3 %vm1582_vm6, %v2231_v41  ;;  %v1915_v60 = vmul.f32 1.442695, %v1813_v19  ;;  %v1935_v41 = vmul.f32 1.442695, %v1823_v40  ;;  %v1893_v50 = vmul.f32 1.442695, %v1802_v21  ;;  %v1810_v19 = vsub.f32 %v9357_v20, %v7560_v12 }
 0x4ee   :  { %9356 = vst [vmem:[#allocation55_spill] sm:$0xff] %v7620_v48  ;;  %v2087_v37 = vsel %vm1582_vm6, %v7620_v48, 0.0  ;;  %v7630_v25 = vpop.eup %5339  ;;  %v9359_v40 = vld [vmem:[#allocation47_spill] sm:$0xff] }
 0x4ef   :  { %2088 = vadd.xlane.f32.xlu0 %v2087_v37  ;;  %5343 = vpow2.f32 %v1915_v60  ;;  %v2057_v45 = vsel %vm1582_vm6, %v7630_v25, 0.0  ;;  %v1909_v2 = vmul.f32 1.442695, %v1810_v19  ;;  %v9360_v19 = vld [vmem:[#allocation8_spill] sm:$0xff] }
 0x4f0   :  { %5345 = vpow2.f32 %v1935_v41 }
 0x4f1   :  { %v7626_v34 = vpop.xlane.xlu1 %1719  ;;  %5347 = vpow2.f32 %v1893_v50 }
 0x4f2   :  { %v7628_v4 = vpop.xlane.xlu0 %1713  ;;  %v5342_v9 = vpop.eup %5341 }
 0x4f3   :  { %v2232_v3 = vmul.f32 %v5342_v9, %v7403_v22 }
 0x4f5   :  { %4905 = vmatmul.msk.f32.gmra.mxu3 %vm1582_vm6, %v2232_v3  ;;  %v7647_v33 = vpop.eup %5343 }
 0x4f6   :  { %v2081_v16 = vsel %vm1582_vm6, %v7647_v33, 0.0  ;;  %v7655_v35 = vpop.eup %5345 }
 0x4f7   :  { %5184 = vrot.lane.b32.xlu2 %v5183_v6, %s5599_s4  ;;  %2058 = vadd.xlane.f32.xlu0 %v2057_v45  ;;  %9358 = vst [vmem:[#allocation34_spill] sm:$0xff] %v7655_v35  ;;  %v7657_v9 = vpop.eup %5347  ;;  %v2111_v3 = vsel %vm1582_vm6, %v7655_v35, 0.0  ;;  %v1804_v45 = vsub.f32 %v9359_v40, %v7589_v38  ;;  %v9361_v38 = vld [vmem:[#allocation36_spill] sm:$0xff] }
 0x4f8   :  { %v2048_v41 = vsel %vm1582_vm6, %v7657_v9, 0.0 }
 0x4f9   :  { %v7643_v22 = vpop.xlane.xlu1 %1761 }
 0x4fa   :  { %v7645_v46 = vpop.xlane.xlu0 %1752 }
 0x4ff   :  { %2082 = vadd.xlane.f32.xlu0 %v2081_v16  ;;  %v1897_v16 = vmul.f32 1.442695, %v1804_v45  ;;  %v9362_v45 = vld [vmem:[#allocation20_spill] sm:$0xff] }
 0x500   :  { %v1814_v35 = vsub.f32 %v9362_v45, %v7547_v8 }
 0x501   :  { %v2017_v37 = vpop.xlane.xlu1 %2016 }
 0x502   :  { %v7653_v60 = vpop.xlane.xlu0 %1755  ;;  %5349 = vrcp.f32 %v2017_v37  ;;  %v1806_v37 = vsub.f32 %v9360_v19, %v7532_v14  ;;  %v9363_v19 = vld [vmem:[#allocation48_spill] sm:$0xff] }
 0x503   :  { %5351 = vpow2.f32 %v1909_v2  ;;  %v1812_v2 = vsub.f32 %v9361_v38, %v7509_v55  ;;  %v1816_v55 = vsub.f32 %v7292_v59, %v7597_v63  ;;  %v9364_v38 = vld [vmem:[#allocation25_spill] sm:$0xff] }
 0x504   :  { %5353 = vpow2.f32 %v1897_v16  ;;  %v1901_v40 = vmul.f32 1.442695, %v1806_v37  ;;  %v5188_v48 = vpack.i.bf16 %v9364_v38, %v9363_v19 }
 0x505   :  { %v1921_v8 = vmul.f32 1.442695, %v1816_v55 }
 0x507   :  { %2112 = vadd.xlane.f32.xlu0 %v2111_v3 }
 0x508   :  { %v5350_v6 = vpop.eup %5349 }
 0x509   :  { %v2239_v12 = vmul.f32 %v5350_v6, %v7438_v42  ;;  %v7664_v21 = vpop.xlane.xlu1 %1767  ;;  %v7671_v20 = vpop.eup %5351 }
 0x50a   :  { %v7668_v50 = vpop.xlane.xlu0 %1764  ;;  %2049 = vadd.xlane.f32.xlu1 %v2048_v41  ;;  %v2072_v3 = vsel %vm1582_vm6, %v7671_v20, 0.0  ;;  %v1913_v41 = vmul.f32 1.442695, %v1812_v2  ;;  %v7685_v16 = vpop.xlane.xlu2 %2010 }
 0x50b   :  { %4912 = vmatmul.msk.f32.vlgmr.msra.gmra.mxu0 %vm1582_vm6, %v2239_v12  ;;  %v7679_v12 = vpop.eup %5353 }
 0x50c   :  { %v2054_v2 = vsel %vm1582_vm6, %v7679_v12, 0.0 }
 0x511   :  { %v2020_v42 = vpop.xlane.xlu1 %2019 }
 0x512   :  { %v2005_v6 = vpop.xlane.xlu0 %2004  ;;  %5355 = vrcp.f32 %v2020_v42  ;;  %2073 = vadd.xlane.f32.xlu1 %v2072_v3  ;;  %v2002_v55 = vpop.xlane.xlu2 %2001 }
 0x513   :  { %5357 = vpow2.f32 %v1901_v40  ;;  %v1917_v40 = vmul.f32 1.442695, %v1814_v35 }
 0x514   :  { %5359 = vpow2.f32 %v1913_v41  ;;  %v1831_v41 = vsub.f32 %v7326_v1, %v7645_v46 }
 0x516   :  { %v1951_v19 = vmul.f32 1.442695, %v1831_v41 }
 0x518   :  { %v5356_v14 = vpop.eup %5355 }
 0x519   :  { %v2023_v37 = vpop.xlane.xlu1 %2022  ;;  %v2240_v3 = vmul.f32 %v5356_v14, %v7472_v10  ;;  %v7696_v59 = vpop.eup %5357 }
 0x51a   :  { %v7691_v42 = vpop.xlane.xlu0 %2007  ;;  %5361 = vrcp.f32 %v2023_v37  ;;  %2055 = vadd.xlane.f32.xlu1 %v2054_v2  ;;  %v7698_v63 = vpop.eup %5359  ;;  %v2060_v45 = vsel %vm1582_vm6, %v7696_v59, 0.0 }
 0x51b   :  { %5189 = vrot.lane.b32.xlu0 %v5188_v48, %s5599_s4  ;;  %4913 = vmatmul.msk.f32.gmra.mxu0 %vm1582_vm6, %v2240_v3  ;;  %5363 = vpow2.f32 %v1917_v40  ;;  %v2078_v48 = vsel %vm1582_vm6, %v7698_v63, 0.0 }
 0x51c   :  { %5365 = vpow2.f32 %v1921_v8 }
 0x520   :  { %v5362_v10 = vpop.eup %5361  ;;  %2061 = vadd.xlane.f32.xlu2 %v2060_v45 }
 0x521   :  { %v2241_v14 = vmul.f32 %v5362_v10, %v7491_v39  ;;  %v7708_v1 = vpop.eup %5363  ;;  %v2044_v8 = vpop.xlane.xlu2 %2043 }
 0x522   :  { %v1999_v35 = vpop.xlane.xlu0 %1998  ;;  %v2026_v38 = vpop.xlane.xlu1 %2025  ;;  %2079 = vadd.xlane.f32.xlu1 %v2078_v48  ;;  %v2084_v37 = vsel %vm1582_vm6, %v7708_v1, 0.0 }
 0x523   :  { %5367 = vrcp.f32 %v2026_v38  ;;  %4914 = vmatmul.msk.f32.gmra.mxu0 %vm1582_vm6, %v2241_v14  ;;  %v7710_v46 = vpop.eup %5365 }
 0x524   :  { %5369 = vrcp.f32 %v1999_v35  ;;  %v2090_v39 = vsel %vm1582_vm6, %v7710_v46, 0.0 }
 0x525   :  { %5371 = vpow2.f32 %v1951_v19 }
 0x526   :  { %5373 = vrcp.f32 %v2002_v55 }
 0x527   :  { %5375 = vrcp.f32 %v2005_v6 }
 0x528   :  { %2085 = vadd.xlane.f32.xlu2 %v2084_v37 }
 0x529   :  { %v5368_v2 = vpop.eup %5367 }
 0x52a   :  { %v7716_v3 = vpop.xlane.xlu0 %1770  ;;  %v5370_v40 = vpop.eup %5369  ;;  %2091 = vadd.xlane.f32.xlu1 %v2090_v39  ;;  %v2242_v45 = vmul.f32 %v5368_v2, %v7507_v17 }
 0x52b   :  { %v7718_v41 = vpop.xlane.xlu1 %2013  ;;  %v2233_v10 = vmul.f32 %v5370_v40, %v7505_v32  ;;  %v7722_v48 = vpop.eup %5371 }
 0x52c   :  { %4915 = vmatmul.msk.f32.gmra.mxu0 %vm1582_vm6, %v2242_v45  ;;  %v2135_v35 = vsel %vm1582_vm6, %v7722_v48, 0.0  ;;  %v5374_v14 = vpop.eup %5373  ;;  %v7729_v32 = vpop.f32.mrf.mxu1 }
 0x52d   :  { %4906 = vmatmul.msk.f32.gmra.mxu3 %vm1582_vm6, %v2233_v10  ;;  %v2234_v17 = vmul.f32 %v5374_v14, %v7474_v51  ;;  %v5376_v37 = vpop.eup %5375  ;;  %v1772_v2 = vsel %vm1582_vm6, %v7729_v32, -inf  ;;  %v1817_v14 = vsub.f32 %v7304_v28, %v7617_v13  ;;  %v7746_v13 = vpop.f32.mrf.mxu0 }
 0x530   :  { %2136 = vadd.xlane.f32.xlu2 %v2135_v35 }
 0x532   :  { %v2041_v19 = vpop.xlane.xlu0 %2040  ;;  %v2068_v38 = vpop.xlane.xlu2 %2067 }
 0x533   :  { %v2065_v55 = vpop.xlane.xlu1 %2064  ;;  %5377 = vrcp.f32 %v2041_v19  ;;  %v2235_v19 = vmul.f32 %v5376_v37, %v7469_v36 }
 0x534   :  { %5379 = vrcp.f32 %v2065_v55  ;;  %v1923_v55 = vmul.f32 1.442695, %v1817_v14 }
 0x535   :  { %4907 = vmatmul.msk.f32.gmra.mxu3 %vm1582_vm6, %v2234_v17  ;;  %5381 = vrcp.f32 %v2044_v8  ;;  %v9366_v17 = vld [vmem:[#allocation16_spill] sm:$0xff] }
 0x536   :  { %5383 = vrcp.f32 %v2068_v38  ;;  %v9365_v38 = vld [vmem:[#allocation15_spill] sm:$0xff] }
 0x537   :  { %5385 = vrcp.f32 %v7691_v42  ;;  %v5193_v28 = vpack.i.bf16 %v9366_v17, %v9365_v38 }
 0x538   :  { %1773 = vmax.xlane.f32.xlu2 %v1772_v2 }
 0x539   :  { %v5378_v39 = vpop.eup %5377 }
 0x53a   :  { %v5380_v40 = vpop.eup %5379  ;;  %v2247_v6 = vmul.f32 %v5378_v39, %v7542_v62  ;;  %v2032_v45 = vpop.xlane.xlu0 %2031 }
 0x53b   :  { %v2255_v51 = vmul.f32 %v5380_v40, %v7544_v30  ;;  %v2029_v10 = vpop.xlane.xlu1 %2028  ;;  %v2071_v35 = vpop.xlane.xlu2 %2070 }
 0x53c   :  { %5387 = vrcp.f32 %v2029_v10  ;;  %4920 = vmatmul.msk.f32.vlgmr.msrb.gmra.mxu1 %vm1582_vm6, %v2247_v6  ;;  %v5382_v62 = vpop.eup %5381  ;;  %v9367_v10 = vld [vmem:[#allocation13_spill] sm:$0xff] }
 0x53d   :  { %4928 = vmatmul.msk.f32.vlgmr.msrb.gmra.mxu2 %vm1582_vm6, %v2255_v51  ;;  %4908 = vmatmul.msk.f32.gmra.mxu3 %vm1582_vm6, %v2235_v19  ;;  %v5384_v8 = vpop.eup %5383  ;;  %5389 = vrcp.f32 %v7685_v16  ;;  %v2248_v37 = vmul.f32 %v5382_v62, %v7511_v44  ;;  %v1748_v44 = vsel %vm1582_vm6, %v7746_v13, -inf }
 0x53e   :  { %v5386_v30 = vpop.eup %5385  ;;  %5391 = vrcp.f32 %v2032_v45  ;;  %v2256_v40 = vmul.f32 %v5384_v8, %v7550_v47 }
 0x53f   :  { %5393 = vrcp.f32 %v2071_v35  ;;  %v2236_v16 = vmul.f32 %v5386_v30, %v7488_v54  ;;  %v9368_v54 = vld [vmem:[#allocation9_spill] sm:$0xff] }
 0x540   :  { %v5198_v35 = vpack.i.bf16 %v9368_v54, %v9367_v10 }
 0x542   :  { %v5388_v42 = vpop.eup %5387  ;;  %v2047_v36 = vpop.xlane.xlu0 %2046 }
 0x543   :  { %v2035_v2 = vpop.xlane.xlu2 %2034  ;;  %5395 = vrcp.f32 %v2047_v36  ;;  %v2243_v39 = vmul.f32 %v5388_v42, %v7558_v52  ;;  %5194 = vrot.lane.b32.xlu1 %v5193_v28, %s5599_s4  ;;  %v5390_v6 = vpop.eup %5389 }
 0x544   :  { %5397 = vpow2.f32 %v1923_v55  ;;  %4921 = vmatmul.msk.f32.gmra.mxu1 %vm1582_vm6, %v2248_v37  ;;  %v5392_v52 = vpop.eup %5391  ;;  %v2237_v55 = vmul.f32 %v5390_v6, %v7461_v49  ;;  %v9372_v6 = vld [vmem:[#allocation50_spill] sm:$0xff] }
 0x545   :  { %4916 = vmatmul.msk.f32.gmra.mxu0 %vm1582_vm6, %v2243_v39  ;;  %4929 = vmatmul.msk.f32.gmra.mxu2 %vm1582_vm6, %v2256_v40  ;;  %v5394_v47 = vpop.eup %5393  ;;  %5399 = vrcp.f32 %v2035_v2  ;;  %v2244_v62 = vmul.f32 %v5392_v52, %v7563_v26  ;;  %v9370_v26 = vld [vmem:[#allocation54_spill] sm:$0xff] }
 0x546   :  { %4909 = vmatmul.msk.f32.gmra.mxu3 %vm1582_vm6, %v2236_v16  ;;  %1749 = vmax.xlane.f32.xlu0 %v1748_v44  ;;  %5401 = vrcp.f32 %v7718_v41  ;;  %v2257_v8 = vmul.f32 %v5394_v47, %v7566_v0  ;;  %v9369_v41 = vld [vmem:[#allocation53_spill] sm:$0xff] }
 0x547   :  { %v5203_v30 = vpack.i.bf16 %v9370_v26, %v9369_v41  ;;  %v9373_v47 = vld [vmem:[#allocation17_spill] sm:$0xff] }
 0x549   :  { %v5396_v45 = vpop.eup %5395 }
 0x54a   :  { %v7759_v51 = vpop.eup %5397  ;;  %v2249_v14 = vmul.f32 %v5396_v45, %v7577_v23  ;;  %v9374_v45 = vld [vmem:[#allocation57_spill] sm:$0xff] }
 0x54b   :  { %v2038_v19 = vpop.xlane.xlu2 %2037  ;;  %5199 = vrot.lane.b32.xlu1 %v5198_v35, %s5599_s4  ;;  %v2093_v23 = vsel %vm1582_vm6, %v7759_v51, 0.0  ;;  %v5400_v0 = vpop.eup %5399  ;;  %v1824_v10 = vsub.f32 %v9374_v45, %v9373_v47 }
 0x54c   :  { %4922 = vmatmul.msk.f32.gmra.mxu1 %vm1582_vm6, %v2249_v14  ;;  %v5402_v42 = vpop.eup %5401  ;;  %5403 = vrcp.f32 %v2038_v19  ;;  %v2245_v17 = vmul.f32 %v5400_v0, %v7582_v58  ;;  %v9375_v14 = vld [vmem:[#allocation56_spill] sm:$0xff]  ;;  %v9376_v19 = vld [vmem:[#allocation45_spill] sm:$0xff] }
 0x54d   :  { %4917 = vmatmul.msk.f32.gmra.mxu0 %vm1582_vm6, %v2244_v62  ;;  %4930 = vmatmul.msk.f32.gmra.mxu2 %vm1582_vm6, %v2257_v8  ;;  %v2238_v37 = vmul.f32 %v5402_v42, %v7527_v18  ;;  %v9371_v18 = vld [vmem:[#allocation51_spill] sm:$0xff]  ;;  %v1937_v54 = vmul.f32 1.442695, %v1824_v10  ;;  %v1825_v62 = vsub.f32 %v9376_v19, %v9375_v14  ;;  %v1836_v19 = vsub.f32 %v7454_v7, %v7664_v21 }
 0x54e   :  { %4910 = vmatmul.msk.f32.gmra.mxu3 %vm1582_vm6, %v2237_v55  ;;  %2094 = vadd.xlane.f32.xlu0 %v2093_v23  ;;  %v5208_v52 = vpack.i.bf16 %v9372_v6, %v9371_v18  ;;  %v9377_v23 = vld [vmem:[#allocation23_spill] sm:$0xff] }
 0x54f   :  { %5405 = vpow2.f32 %v1937_v54  ;;  %v1939_v55 = vmul.f32 1.442695, %v1825_v62  ;;  %v1819_v41 = vsub.f32 %v9377_v23, %v7569_v24  ;;  %v9384_v62 = vld [vmem:[#allocation18_spill] sm:$0xff] }
 0x550   :  { %5204 = vrot.lane.b32.xlu2 %v5203_v30, %s5599_s4 }
 0x551   :  { %v1927_v0 = vmul.f32 1.442695, %v1819_v41  ;;  %v1961_v41 = vmul.f32 1.442695, %v1836_v19 }
 0x552   :  { %v5180_v49 = vpop.permute.xlu1 %5179  ;;  %v5404_v2 = vpop.eup %5403 }
 0x553   :  { %v7778_v38 = vpop.xlane.xlu2 %2052  ;;  %v5182_v28 = vunpack.i.h.bf16 %v5180_v49  ;;  %v5181_v36 = vunpack.i.l.bf16 %v5180_v49  ;;  %v2246_v40 = vmul.f32 %v5404_v2, %v7593_v11  ;;  %v1832_v11 = vsub.f32 %v7337_v27, %v7653_v60  ;;  %v9378_v27 = vld [vmem:[#allocation65_spill] sm:$0xff] }
 0x554   :  { %v1833_v60 = vsub.f32 %v9378_v27, %v7580_v43 }
 0x555   :  { %4918 = vmatmul.msk.f32.gmra.mxu0 %vm1582_vm6, %v2245_v17  ;;  %2794 = vmatpush.msra.mxu2 %v5182_v28  ;;  %v1953_v8 = vmul.f32 1.442695, %v1832_v11  ;;  %v7801_v26 = vpop.eup %5405  ;;  %v9379_v17 = vld [vmem:[#allocation11_spill] sm:$0xff] }
 0x556   :  { %4911 = vmatmul.msk.f32.gmra.mxu3 %vm1582_vm6, %v2238_v37  ;;  %2879 = vmatpush.msrb.mxu0 %v5181_v36  ;;  %v2114_v42 = vsel %vm1582_vm6, %v7801_v26, 0.0  ;;  %v1955_v24 = vmul.f32 1.442695, %v1833_v60 }
 0x557   :  { %5042 = vmatpush.msrb.mxu3 %v5182_v28  ;;  %5407 = vpow2.f32 %v1953_v8  ;;  %v9380_v28 = vld [vmem:[#allocation41_spill] sm:$0xff]  ;;  %v1834_v8 = vsub.f32 %v9384_v62, %v7643_v22  ;;  %v9385_v22 = vld [vmem:[#allocation58_spill] sm:$0xff] }
 0x558   :  { %5409 = vpow2.f32 %v1939_v55  ;;  %v1827_v36 = vsub.f32 %v9380_v28, %v9379_v17  ;;  %v1821_v60 = vsub.f32 %v9385_v22, %v7591_v57  ;;  %v1837_v28 = vsub.f32 %v7524_v5, %v7716_v3  ;;  %v9386_v57 = vld [vmem:[#allocation28_spill] sm:$0xff] }
 0x559   :  { %5411 = vpow2.f32 %v1927_v0 }
 0x55a   :  { %v7786_v58 = vpop.xlane.xlu0 %2076  ;;  %v1943_v43 = vmul.f32 1.442695, %v1827_v36  ;;  %5413 = vpow2.f32 %v1955_v24  ;;  %v1931_v24 = vmul.f32 1.442695, %v1821_v60  ;;  %v1963_v5 = vmul.f32 1.442695, %v1837_v28 }
 0x55b   :  { %v5185_v39 = vpop.permute.xlu2 %5184 }
 0x55c   :  { %v5187_v16 = vunpack.i.h.bf16 %v5185_v39  ;;  %v5186_v44 = vunpack.i.l.bf16 %v5185_v39  ;;  %v9381_v39 = vld [vmem:[#allocation60_spill] sm:$0xff] }
 0x55d   :  { %4919 = vmatmul.msk.f32.gmra.mxu0 %vm1582_vm6, %v2246_v40  ;;  %v7809_v49 = vpop.eup %5407  ;;  %v1818_v40 = vsub.f32 %v9381_v39, %v7628_v4  ;;  %v1835_v4 = vsub.f32 %v7434_v15, %v7668_v50 }
 0x55e   :  { %2880 = vmatpush.msrb.mxu0 %v5187_v16  ;;  %2968 = vmatpush.msra.mxu1 %v5186_v44  ;;  %v2138_v37 = vsel %vm1582_vm6, %v7809_v49, 0.0  ;;  %v7815_v2 = vpop.eup %5409  ;;  %v9382_v16 = vld [vmem:[#allocation26_spill] sm:$0xff]  ;;  %v9383_v44 = vld [vmem:[#allocation61_spill] sm:$0xff] }
 0x55f   :  { %v1826_v18 = vsub.f32 %v9383_v44, %v9382_v16  ;;  %v7825_v47 = vpop.eup %5411  ;;  %v1925_v45 = vmul.f32 1.442695, %v1818_v40  ;;  %v1959_v55 = vmul.f32 1.442695, %v1835_v4 }
 0x560   :  { %v2099_v11 = vsel %vm1582_vm6, %v7825_v47, 0.0  ;;  %v7831_v14 = vpop.eup %5413 }
 0x561   :  { %v1941_v54 = vmul.f32 1.442695, %v1826_v18  ;;  %v2141_v15 = vsel %vm1582_vm6, %v7831_v14, 0.0 }
 0x562   :  { %5209 = vrot.lane.b32.xlu0 %v5208_v52, %s5599_s4  ;;  %v7795_v35 = vpop.xlane.xlu0 %2088  ;;  %v2117_v52 = vsel %vm1582_vm6, %v7815_v2, 0.0 }
 0x56a   :  { %v7803_v30 = vpop.xlane.xlu0 %2058 }
 0x572   :  { %v7821_v6 = vpop.xlane.xlu0 %2082 }
 0x575   :  { %2115 = vadd.xlane.f32.xlu1 %v2114_v42  ;;  %v1957_v42 = vmul.f32 1.442695, %v1834_v8 }
 0x579   :  { %2139 = vadd.xlane.f32.xlu2 %v2138_v37  ;;  %v1820_v37 = vsub.f32 %v9386_v57, %v7626_v34 }
 0x57a   :  { %v7842_v0 = vpop.xlane.xlu0 %2112 }
 0x57d   :  { %2118 = vadd.xlane.f32.xlu1 %v2117_v52  ;;  %v2050_v10 = vpop.xlane.xlu1 %2049 }
 0x57e   :  { %5415 = vrcp.f32 %v2050_v10 }
 0x57f   :  { %5417 = vpow2.f32 %v1943_v43 }
 0x580   :  { %5419 = vpow2.f32 %v1925_v45 }
 0x581   :  { %2100 = vadd.xlane.f32.xlu2 %v2099_v11  ;;  %5421 = vpow2.f32 %v1941_v54  ;;  %v1929_v54 = vmul.f32 1.442695, %v1820_v37  ;;  %v9388_v11 = vld [vmem:[#allocation49_spill] sm:$0xff] }
 0x582   :  { %5423 = vrcp.f32 %v7778_v38  ;;  %v1828_v19 = vsub.f32 %v9388_v11, %v7452_v56  ;;  %v7932_v11 = vpop.f32.mrf.mxu2 }
 0x584   :  { %v5416_v23 = vpop.eup %5415 }
 0x585   :  { %v7840_v50 = vpop.eup %5417  ;;  %2142 = vadd.xlane.f32.xlu1 %v2141_v15  ;;  %v2074_v27 = vpop.xlane.xlu1 %2073  ;;  %v2250_v7 = vmul.f32 %v5416_v23, %v7657_v9 }
 0x586   :  { %5425 = vrcp.f32 %v2074_v27  ;;  %v7845_v21 = vpop.eup %5419  ;;  %v2123_v38 = vsel %vm1582_vm6, %v7840_v50, 0.0 }
 0x587   :  { %5427 = vpow2.f32 %v1959_v55  ;;  %4923 = vmatmul.msk.f32.gmra.mxu1 %vm1582_vm6, %v2250_v7  ;;  %v7852_v17 = vpop.eup %5421  ;;  %v2096_v36 = vsel %vm1582_vm6, %v7845_v21, 0.0  ;;  %v1945_v7 = vmul.f32 1.442695, %v1828_v19 }
 0x588   :  { %5429 = vpow2.f32 %v1961_v41  ;;  %v5424_v9 = vpop.eup %5423  ;;  %v2120_v40 = vsel %vm1582_vm6, %v7852_v17, 0.0 }
 0x589   :  { %2124 = vadd.xlane.f32.xlu2 %v2123_v38  ;;  %5431 = vpow2.f32 %v1957_v42  ;;  %v2251_v44 = vmul.f32 %v5424_v9, %v7601_v29 }
 0x58a   :  { %5433 = vrcp.f32 %v7786_v58  ;;  %v9387_v58 = vld [vmem:[#allocation32_spill] sm:$0xff] }
 0x58b   :  { %v1822_v10 = vsub.f32 %v9387_v58, %v7604_v53 }
 0x58c   :  { %2097 = vadd.xlane.f32.xlu0 %v2096_v36  ;;  %v5426_v39 = vpop.eup %5425 }
 0x58d   :  { %v7863_v43 = vpop.eup %5427  ;;  %2121 = vadd.xlane.f32.xlu1 %v2120_v40  ;;  %v2056_v3 = vpop.xlane.xlu1 %2055  ;;  %v2258_v18 = vmul.f32 %v5426_v39, %v7671_v20  ;;  %v1933_v62 = vmul.f32 1.442695, %v1822_v10 }
 0x58e   :  { %v5190_v16 = vpop.permute.xlu0 %5189  ;;  %5435 = vrcp.f32 %v2056_v3  ;;  %v7867_v45 = vpop.eup %5429  ;;  %v2147_v29 = vsel %vm1582_vm6, %v7863_v43, 0.0 }
 0x58f   :  { %v5192_v34 = vunpack.i.h.bf16 %v5190_v16  ;;  %v5191_v52 = vunpack.i.l.bf16 %v5190_v16  ;;  %5437 = vpow2.f32 %v1931_v24  ;;  %4924 = vmatmul.msk.f32.gmra.mxu1 %vm1582_vm6, %v2251_v44  ;;  %4931 = vmatmul.msk.f32.gmra.mxu2 %vm1582_vm6, %v2258_v18  ;;  %v7875_v20 = vpop.eup %5431  ;;  %v2150_v53 = vsel %vm1582_vm6, %v7867_v45, 0.0  ;;  %v2441_v16 = vpop.f32.mrf.mxu3 }
 0x590   :  { %5439 = vpow2.f32 %v1963_v5  ;;  %v5434_v4 = vpop.eup %5433  ;;  %v2144_v23 = vsel %vm1582_vm6, %v7875_v20, 0.0 }
 0x591   :  { %2795 = vmatpush.msra.mxu2 %v5191_v52  ;;  %5043 = vmatpush.msrb.mxu3 %v5191_v52  ;;  %5441 = vpow2.f32 %v1929_v54  ;;  %v2259_v56 = vmul.f32 %v5434_v4, %v7613_v31 }
 0x592   :  { %2969 = vmatpush.msra.mxu1 %v5192_v34  ;;  %2148 = vadd.xlane.f32.xlu2 %v2147_v29  ;;  %5443 = vrcp.f32 %v7803_v30 }
 0x593   :  { %v2062_v8 = vpop.xlane.xlu2 %2061 }
 0x594   :  { %2151 = vadd.xlane.f32.xlu0 %v2150_v53  ;;  %v5436_v55 = vpop.eup %5435  ;;  %v9390_v53 = vld [vmem:[#allocation55_spill] sm:$0xff] }
 0x595   :  { %v7884_v15 = vpop.eup %5437  ;;  %2145 = vadd.xlane.f32.xlu1 %v2144_v23  ;;  %v2080_v41 = vpop.xlane.xlu1 %2079  ;;  %v2252_v27 = vmul.f32 %v5436_v55, %v7679_v12  ;;  %v9389_v12 = vld [vmem:[#allocation46_spill] sm:$0xff] }
 0x596   :  { %5445 = vrcp.f32 %v2080_v41  ;;  %v7888_v22 = vpop.eup %5439  ;;  %v2105_v30 = vsel %vm1582_vm6, %v7884_v15, 0.0  ;;  %v1829_v38 = vsub.f32 %v9389_v12, %v7503_v61  ;;  %v7941_v41 = vpop.f32.mrf.mxu2 }
 0x597   :  { %5447 = vpow2.f32 %v1933_v62  ;;  %4925 = vmatmul.msk.f32.gmra.mxu1 %vm1582_vm6, %v2252_v27  ;;  %4932 = vmatmul.msk.f32.gmra.mxu2 %vm1582_vm6, %v2259_v56  ;;  %v7894_v60 = vpop.eup %5441  ;;  %v2153_v31 = vsel %vm1582_vm6, %v7888_v22, 0.0  ;;  %v2444_v29 = vpop.f32.mrf.mxu3 }
 0x598   :  { %v5444_v42 = vpop.eup %5443  ;;  %5449 = vpow2.f32 %v1945_v7  ;;  %v2102_v36 = vsel %vm1582_vm6, %v7894_v60, 0.0  ;;  %v1947_v40 = vmul.f32 1.442695, %v1829_v38 }
 0x599   :  { %5451 = vrcp.f32 %v7821_v6  ;;  %v2253_v37 = vmul.f32 %v5444_v42, %v7630_v25 }
 0x59a   :  { %2106 = vadd.xlane.f32.xlu2 %v2105_v30  ;;  %5453 = vrcp.f32 %v2062_v8 }
 0x59b   :  { %v2086_v28 = vpop.xlane.xlu2 %2085 }
 0x59c   :  { %2154 = vadd.xlane.f32.xlu0 %v2153_v31  ;;  %v5446_v9 = vpop.eup %5445 }
 0x59d   :  { %v7903_v24 = vpop.eup %5447  ;;  %2103 = vadd.xlane.f32.xlu1 %v2102_v36  ;;  %v2092_v57 = vpop.xlane.xlu1 %2091  ;;  %v2260_v39 = vmul.f32 %v5446_v9, %v7698_v63 }
 0x59e   :  { %5455 = vrcp.f32 %v2092_v57  ;;  %v7909_v61 = vpop.eup %5449  ;;  %v2108_v6 = vsel %vm1582_vm6, %v7903_v24, 0.0 }
 0x59f   :  { %4926 = vmatmul.msk.f32.gmra.mxu1 %vm1582_vm6, %v2253_v37  ;;  %4933 = vmatmul.msk.f32.gmra.mxu2 %vm1582_vm6, %v2260_v39  ;;  %v5452_v5 = vpop.eup %5451  ;;  %5457 = vpow2.f32 %v1947_v40  ;;  %v2126_v63 = vsel %vm1582_vm6, %v7909_v61, 0.0 }
 0x5a0   :  { %v5454_v3 = vpop.eup %5453  ;;  %5459 = vrcp.f32 %v2086_v28  ;;  %v2261_v52 = vmul.f32 %v5452_v5, %v7647_v33  ;;  %v7945_v28 = vpop.f32.mrf.mxu2 }
 0x5a1   :  { %v2254_v34 = vmul.f32 %v5454_v3, %v7696_v59  ;;  %5461 = vrcp.f32 %v7795_v35 }
 0x5a2   :  { %2109 = vadd.xlane.f32.xlu2 %v2108_v6 }
 0x5a3   :  { %v7913_v44 = vpop.xlane.xlu2 %2136 }
 0x5a4   :  { %v5456_v25 = vpop.eup %5455 }
 0x5a5   :  { %v2264_v18 = vmul.f32 %v5456_v25, %v7710_v46  ;;  %2127 = vadd.xlane.f32.xlu1 %v2126_v63  ;;  %v7923_v58 = vpop.eup %5457 }
 0x5a6   :  { %v5460_v10 = vpop.eup %5459  ;;  %v2129_v59 = vsel %vm1582_vm6, %v7923_v58, 0.0 }
 0x5a7   :  { %4927 = vmatmul.msk.f32.gmra.mxu1 %vm1582_vm6, %v2254_v34  ;;  %4934 = vmatmul.msk.f32.gmra.mxu2 %vm1582_vm6, %v2261_v52  ;;  %v2262_v33 = vmul.f32 %v5460_v10, %v7708_v1  ;;  %v5462_v19 = vpop.eup %5461 }
 0x5a8   :  { %4937 = vmatmul.msk.f32.vlgmr.msrb.gmra.mxu3 %vm1582_vm6, %v2264_v18  ;;  %v2263_v62 = vmul.f32 %v5462_v19, %v9390_v53  ;;  %v7953_v5 = vpop.f32.mrf.mxu2 }
 0x5ab   :  { %v1774_v54 = vpop.xlane.xlu2 %1773 }
 0x5ac   :  { %v1838_v46 = vsub.f32 %v7729_v32, %v1774_v54  ;;  %v9391_v54 = vld [vmem:[#allocation34_spill] sm:$0xff] }
 0x5ad   :  { %2130 = vadd.xlane.f32.xlu1 %v2129_v59 }
 0x5ae   :  { %v1965_v4 = vmul.f32 1.442695, %v1838_v46 }
 0x5af   :  { %4935 = vmatmul.msk.f32.gmra.mxu2 %vm1582_vm6, %v2262_v33 }
 0x5b0   :  { %3015 = vrot.lane.b32.xlu0 %v2441_v16, %s5600_s21  ;;  %5463 = vpow2.f32 %v1965_v4  ;;  %v2447_v35 = vpop.f32.mrf.mxu3  ;;  %v7960_v25 = vpop.f32.mrf.mxu2 }
 0x5b3   :  { %v5205_v30 = vpop.permute.xlu2 %5204 }
 0x5b4   :  { %v5207_v9 = vunpack.i.h.bf16 %v5205_v30  ;;  %v5206_v36 = vunpack.i.l.bf16 %v5205_v30 }
 0x5b5   :  { %v5195_v32 = vpop.permute.xlu1 %5194 }
 0x5b6   :  { %v7935_v8 = vpop.eup %5463  ;;  %v5197_v55 = vunpack.i.h.bf16 %v5195_v32  ;;  %v5196_v23 = vunpack.i.l.bf16 %v5195_v32 }
 0x5b7   :  { %4936 = vmatmul.msk.f32.vlgmr.msra.gmra.mxu2 %vm1582_vm6, %v2263_v62  ;;  %v2156_v1 = vsel %vm1582_vm6, %v7935_v8, 0.0 }
 0x5b8   :  { %3017 = vrot.lane.b32.xlu0 %v2444_v29, %s5600_s21  ;;  %2157 = vadd.xlane.f32.xlu2 %v2156_v1  ;;  %v2450_v31 = vpop.f32.mrf.mxu3  ;;  %v7968_v59 = vpop.f32.mrf.mxu2 }
 0x5b9   :  { %v1750_v27 = vpop.xlane.xlu0 %1749  ;;  %2881 = vmatpush.msrb.mxu0 %v5196_v23  ;;  %2970 = vmatpush.msra.mxu1 %v5197_v55  ;;  %v2619_v3 = vpop.f32.mrf.mxu1 }
 0x5ba   :  { %v1830_v56 = vsub.f32 %v7746_v13, %v1750_v27 }
 0x5bc   :  { %v1949_v7 = vmul.f32 1.442695, %v1830_v56 }
 0x5bd   :  { %v5200_v42 = vpop.permute.xlu1 %5199 }
 0x5be   :  { %5465 = vpow2.f32 %v1949_v7  ;;  %v5202_v12 = vunpack.i.h.bf16 %v5200_v42  ;;  %v5201_v38 = vunpack.i.l.bf16 %v5200_v42 }
 0x5c0   :  { %3019 = vrot.lane.b32.xlu0 %v2447_v35, %s5600_s21  ;;  %2882 = vmatpush.msrb.mxu0 %v5201_v38  ;;  %v2453_v40 = vpop.f32.mrf.mxu3  ;;  %v7973_v19 = vpop.f32.mrf.mxu2 }
 0x5c1   :  { %v2095_v57 = vpop.xlane.xlu0 %2094  ;;  %2971 = vmatpush.msra.mxu1 %v5202_v12  ;;  %v2622_v46 = vpop.f32.mrf.mxu1 }
 0x5c2   :  { %5467 = vrcp.f32 %v2095_v57  ;;  %2883 = vmatpush.msrb.mxu0 %v5206_v36 }
 0x5c3   :  { %2972 = vmatpush.msra.mxu1 %v5207_v9  ;;  %5469 = vrcp.f32 %v7842_v0 }
 0x5c4   :  { %v7947_v13 = vpop.eup %5465  ;;  %5471 = vrcp.f32 %v7913_v44 }
 0x5c5   :  { %v2132_v37 = vsel %vm1582_vm6, %v7947_v13, 0.0 }
 0x5c6   :  { %2133 = vadd.xlane.f32.xlu1 %v2132_v37 }
 0x5c8   :  { %v5468_v39 = vpop.eup %5467  ;;  %3021 = vrot.lane.b32.xlu0 %v2450_v31, %s5600_s21  ;;  %v7977_v32 = vpop.f32.mrf.mxu2 }
 0x5c9   :  { %v2265_v6 = vmul.f32 %v5468_v39, %v7759_v51  ;;  %v5470_v16 = vpop.eup %5469  ;;  %v2456_v63 = vpop.f32.mrf.mxu3 }
 0x5ca   :  { %v5472_v18 = vpop.eup %5471  ;;  %v2530_v51 = vpop.f32.mrf.mxu0  ;;  %v2271_v29 = vmul.f32 %v5470_v16, %v9391_v54 }
 0x5cb   :  { %4938 = vmatmul.msk.f32.gmra.mxu3 %vm1582_vm6, %v2265_v6  ;;  %v2279_v0 = vmul.f32 %v5472_v18, %v7722_v48  ;;  %v2625_v4 = vpop.f32.mrf.mxu1 }
 0x5d0   :  { %3023 = vrot.lane.b32.xlu0 %v2453_v40, %s5600_s21  ;;  %3143 = vrot.lane.b32.xlu2 %v2619_v3, %s5601_s22  ;;  %v7983_v42 = vpop.f32.mrf.mxu2 }
 0x5d1   :  { %v2459_v33 = vpop.f32.mrf.mxu3 }
 0x5d2   :  { %v2533_v44 = vpop.f32.mrf.mxu0 }
 0x5d4   :  { %v5210_v34 = vpop.permute.xlu0 %5209 }
 0x5d5   :  { %v5212_v52 = vunpack.i.h.bf16 %v5210_v34  ;;  %v5211_v10 = vunpack.i.l.bf16 %v5210_v34 }
 0x5d7   :  { %2884 = vmatpush.msrb.mxu0 %v5211_v10  ;;  %2973 = vmatpush.msra.mxu1 %v5212_v52 }
 0x5d8   :  { %3025 = vrot.lane.b32.xlu0 %v2456_v63, %s5600_s21  ;;  %4944 = vmatmul.msk.f32.vlgmr.msrb.gmra.mxu0 %vm1582_vm6, %v2271_v29 }
 0x5d9   :  { %4952 = vmatmul.msk.f32.vlgmr.msra.gmra.mxu1 %vm1582_vm6, %v2279_v0  ;;  %3145 = vrot.lane.b32.xlu2 %v2622_v46, %s5601_s22  ;;  %v2462_v35 = vpop.f32.mrf.mxu3 }
 0x5da   :  { %v2536_v48 = vpop.f32.mrf.mxu0 }
 0x5df   :  { %3079 = vrot.lane.b32.xlu1 %v2530_v51, %s5602_s23 }
 0x5e0   :  { %3027 = vrot.lane.b32.xlu0 %v2459_v33, %s5600_s21 }
 0x5e1   :  { %3147 = vrot.lane.b32.xlu2 %v2625_v4, %s5601_s22 }
 0x5e2   :  { %v2539_v23 = vpop.f32.mrf.mxu0 }
 0x5e7   :  { %3081 = vrot.lane.b32.xlu1 %v2533_v44, %s5602_s23 }
 0x5e8   :  { %3029 = vrot.lane.b32.xlu0 %v2462_v35, %s5600_s21  ;;  %v2116_v53 = vpop.xlane.xlu1 %2115 }
 0x5e9   :  { %5473 = vrcp.f32 %v2116_v53 }
 0x5ea   :  { %v2542_v12 = vpop.f32.mrf.mxu0 }
 0x5ec   :  { %v2140_v62 = vpop.xlane.xlu2 %2139 }
 0x5ed   :  { %5475 = vrcp.f32 %v2140_v62 }
 0x5ef   :  { %3083 = vrot.lane.b32.xlu1 %v2536_v48, %s5602_s23  ;;  %v5474_v55 = vpop.eup %5473 }
 0x5f0   :  { %v2119_v1 = vpop.xlane.xlu1 %2118  ;;  %v2272_v27 = vmul.f32 %v5474_v55, %v7801_v26 }
 0x5f1   :  { %5477 = vrcp.f32 %v2119_v1 }
 0x5f2   :  { %4945 = vmatmul.msk.f32.gmra.mxu0 %vm1582_vm6, %v2272_v27  ;;  %v2545_v40 = vpop.f32.mrf.mxu0 }
 0x5f3   :  { %v5476_v56 = vpop.eup %5475 }
 0x5f4   :  { %v2101_v7 = vpop.xlane.xlu2 %2100  ;;  %v2280_v30 = vmul.f32 %v5476_v56, %v7809_v49  ;;  %v7990_v49 = vpop.f32.mrf.mxu2 }
 0x5f6   :  { %4953 = vmatmul.msk.f32.gmra.mxu1 %vm1582_vm6, %v2280_v30 }
 0x5f7   :  { %3085 = vrot.lane.b32.xlu1 %v2539_v23, %s5602_s23  ;;  %v5478_v31 = vpop.eup %5477 }
 0x5f8   :  { %v2143_v38 = vpop.xlane.xlu1 %2142  ;;  %v2273_v9 = vmul.f32 %v5478_v31, %v7815_v2 }
 0x5f9   :  { %5479 = vrcp.f32 %v2143_v38 }
 0x5fa   :  { %4946 = vmatmul.msk.f32.gmra.mxu0 %vm1582_vm6, %v2273_v9  ;;  %v2548_v52 = vpop.f32.mrf.mxu0 }
 0x5fc   :  { %v2125_v26 = vpop.xlane.xlu2 %2124  ;;  %v7999_v51 = vpop.f32.mrf.mxu2 }
 0x5ff   :  { %v2098_v36 = vpop.xlane.xlu0 %2097  ;;  %3087 = vrot.lane.b32.xlu1 %v2542_v12, %s5602_s23  ;;  %v5480_v57 = vpop.eup %5479 }
 0x600   :  { %5481 = vrcp.f32 %v2098_v36  ;;  %v2122_v37 = vpop.xlane.xlu1 %2121  ;;  %v2281_v39 = vmul.f32 %v5480_v57, %v7831_v14 }
 0x601   :  { %5483 = vrcp.f32 %v2122_v37 }
 0x602   :  { %4954 = vmatmul.msk.f32.gmra.mxu1 %vm1582_vm6, %v2281_v39  ;;  %5485 = vrcp.f32 %v2101_v7  ;;  %v2551_v35 = vpop.f32.mrf.mxu0  ;;  %v3244_v39 = vld [vmem:[%s9074_s5 + $0x18] sm:$0xff] }
 0x603   :  { %5487 = vrcp.f32 %v2125_v26  ;;  %3309 = vmatpush.msrb.mxu2 %v3244_v39 }
 0x604   :  { %v2628_v6 = vpop.f32.mrf.mxu1 }
 0x605   :  { %3149 = vrot.lane.b32.xlu2 %v2628_v6, %s5601_s22  ;;  %v2149_v63 = vpop.xlane.xlu2 %2148  ;;  %v3242_v6 = vld [vmem:[%s9074_s5 + $0x8] sm:$0xff] }
 0x606   :  { %v5482_v2 = vpop.eup %5481 }
 0x607   :  { %3089 = vrot.lane.b32.xlu1 %v2545_v40, %s5602_s23  ;;  %v2266_v3 = vmul.f32 %v5482_v2, %v7845_v21  ;;  %v5484_v16 = vpop.eup %5483  ;;  %v2152_v4 = vpop.xlane.xlu0 %2151  ;;  %v3241_v2 = vld [vmem:[%s9074_s5] sm:$0xff] }
 0x608   :  { %v2146_v18 = vpop.xlane.xlu1 %2145  ;;  %v2274_v14 = vmul.f32 %v5484_v16, %v7852_v17  ;;  %v5486_v34 = vpop.eup %5485 }
 0x609   :  { %4939 = vmatmul.msk.f32.gmra.mxu3 %vm1582_vm6, %v2266_v3  ;;  %5489 = vrcp.f32 %v2146_v18  ;;  %v5488_v54 = vpop.eup %5487  ;;  %v2267_v21 = vmul.f32 %v5486_v34, %v7825_v47 }
 0x60a   :  { %4947 = vmatmul.msk.f32.gmra.mxu0 %vm1582_vm6, %v2274_v14  ;;  %5491 = vrcp.f32 %v2149_v63  ;;  %v2275_v17 = vmul.f32 %v5488_v54, %v7840_v50 }
 0x60c   :  { %v2631_v10 = vpop.f32.mrf.mxu1 }
 0x60d   :  { %3151 = vrot.lane.b32.xlu2 %v2631_v10, %s5601_s22  ;;  %v2107_v44 = vpop.xlane.xlu2 %2106 }
 0x60f   :  { %3091 = vrot.lane.b32.xlu1 %v2548_v52, %s5602_s23  ;;  %v5490_v29 = vpop.eup %5489  ;;  %v2155_v56 = vpop.xlane.xlu0 %2154 }
 0x610   :  { %v2104_v46 = vpop.xlane.xlu1 %2103  ;;  %v2282_v0 = vmul.f32 %v5490_v29, %v7875_v20  ;;  %v5492_v47 = vpop.eup %5491 }
 0x611   :  { %4940 = vmatmul.msk.f32.gmra.mxu3 %vm1582_vm6, %v2267_v21  ;;  %5493 = vrcp.f32 %v2104_v46  ;;  %v2283_v62 = vmul.f32 %v5492_v47, %v7863_v43 }
 0x612   :  { %v8008_v33 = vpop.f32.mrf.mxu2  ;;  %4948 = vmatmul.msk.f32.gmra.mxu0 %vm1582_vm6, %v2275_v17  ;;  %4955 = vmatmul.msk.f32.gmra.mxu1 %vm1582_vm6, %v2282_v0  ;;  %5495 = vrcp.f32 %v2107_v44 }
 0x613   :  { %5497 = vrcp.f32 %v2152_v4 }
 0x614   :  { %v2634_v48 = vpop.f32.mrf.mxu1 }
 0x615   :  { %3153 = vrot.lane.b32.xlu2 %v2634_v48, %s5601_s22  ;;  %v2110_v23 = vpop.xlane.xlu2 %2109 }
 0x617   :  { %3093 = vrot.lane.b32.xlu1 %v2551_v35, %s5602_s23  ;;  %v5494_v53 = vpop.eup %5493 }
 0x618   :  { %v2128_v50 = vpop.xlane.xlu1 %2127  ;;  %v2268_v20 = vmul.f32 %v5494_v53, %v7894_v60  ;;  %v5496_v27 = vpop.eup %5495 }
 0x619   :  { %5499 = vrcp.f32 %v2128_v50  ;;  %v5498_v7 = vpop.eup %5497  ;;  %v2269_v43 = vmul.f32 %v5496_v27, %v7884_v15 }
 0x61a   :  { %v8016_v55 = vpop.f32.mrf.mxu2  ;;  %4941 = vmatmul.msk.f32.gmra.mxu3 %vm1582_vm6, %v2268_v20  ;;  %4956 = vmatmul.msk.f32.gmra.mxu1 %vm1582_vm6, %v2283_v62  ;;  %5501 = vrcp.f32 %v2110_v23  ;;  %v2284_v12 = vmul.f32 %v5498_v7, %v7867_v45 }
 0x61b   :  { %5503 = vrcp.f32 %v2155_v56 }
 0x61c   :  { %v2637_v1 = vpop.f32.mrf.mxu1 }
 0x61d   :  { %3155 = vrot.lane.b32.xlu2 %v2637_v1, %s5601_s22 }
 0x61f   :  { %v5500_v30 = vpop.eup %5499 }
 0x620   :  { %v2131_v60 = vpop.xlane.xlu1 %2130  ;;  %v2276_v31 = vmul.f32 %v5500_v30, %v7909_v61  ;;  %v5502_v26 = vpop.eup %5501 }
 0x621   :  { %5505 = vrcp.f32 %v2131_v60  ;;  %v5504_v36 = vpop.eup %5503  ;;  %v2270_v15 = vmul.f32 %v5502_v26, %v7903_v24  ;;  %v3243_v24 = vld [vmem:[%s9074_s5 + $0x10] sm:$0xff] }
 0x622   :  { %v8024_v38 = vpop.f32.mrf.mxu2  ;;  %4942 = vmatmul.msk.f32.gmra.mxu3 %vm1582_vm6, %v2269_v43  ;;  %4949 = vmatmul.msk.f32.gmra.mxu0 %vm1582_vm6, %v2276_v31  ;;  %v2285_v45 = vmul.f32 %v5504_v36, %v7888_v22  ;;  %v3016_v14 = vpop.permute.xlu0 %3015 }
 0x623   :  { %4957 = vmatmul.msk.f32.gmra.mxu1 %vm1582_vm6, %v2284_v12  ;;  %3310 = vmatpush.msrb.mxu2 %v3243_v24  ;;  %v3191_v29 = vsel %vm821_vm5, %v7932_v11, %v3016_v14 }
 0x624   :  { %v2640_v9 = vpop.f32.mrf.mxu1 }
 0x625   :  { %3157 = vrot.lane.b32.xlu2 %v2640_v9, %s5601_s22  ;;  %3311 = vmatpush.msrb.mxu2 %v3242_v6 }
 0x627   :  { %v5506_v57 = vpop.eup %5505  ;;  %3312 = vmatpush.msrb.mxu2 %v3241_v2 }
 0x628   :  { %v2277_v61 = vmul.f32 %v5506_v57, %v7923_v58 }
 0x62a   :  { %v8033_v37 = vpop.f32.mrf.mxu2  ;;  %4943 = vmatmul.msk.f32.gmra.mxu3 %vm1582_vm6, %v2270_v15  ;;  %4950 = vmatmul.msk.f32.gmra.mxu0 %vm1582_vm6, %v2277_v61 }
 0x62b   :  { %4958 = vmatmul.msk.f32.gmra.mxu1 %vm1582_vm6, %v2285_v45  ;;  %v2158_v40 = vpop.xlane.xlu2 %2157  ;;  %v2800_v52 = vpop.f32.mrf.mxu3 }
 0x62c   :  { %5507 = vrcp.f32 %v2158_v40 }
 0x632   :  { %v5508_v22 = vpop.eup %5507  ;;  %v8044_v58 = vpop.f32.mrf.mxu2 }
 0x633   :  { %v2286_v3 = vmul.f32 %v5508_v22, %v7935_v8  ;;  %v3144_v10 = vpop.permute.xlu2 %3143  ;;  %v3018_v8 = vpop.permute.xlu0 %3017 }
 0x634   :  { %v3192_v48 = vsel %vm821_vm5, %v7941_v41, %v3018_v8 }
 0x635   :  { %4959 = vmatmul.msk.f32.gmra.mxu1 %vm1582_vm6, %v2286_v3 }
 0x639   :  { %v2134_v16 = vpop.xlane.xlu1 %2133 }
 0x63a   :  { %5509 = vrcp.f32 %v2134_v16  ;;  %v2797_v63 = vpop.f32.mrf.mxu2 }
 0x63b   :  { %3031 = vrot.lane.b32.xlu0 %v2797_v63, %s5600_s21  ;;  %v3146_v21 = vpop.permute.xlu2 %3145  ;;  %v3020_v0 = vpop.permute.xlu0 %3019 }
 0x63c   :  { %v3193_v20 = vsel %vm821_vm5, %v7945_v28, %v3020_v0 }
 0x640   :  { %v5510_v18 = vpop.eup %5509 }
 0x641   :  { %v2278_v34 = vmul.f32 %v5510_v18, %v7947_v13 }
 0x643   :  { %4951 = vmatmul.msk.f32.gmra.mxu0 %vm1582_vm6, %v2278_v34  ;;  %3033 = vrot.lane.b32.xlu0 %v2800_v52, %s5600_s21  ;;  %v3148_v35 = vpop.permute.xlu2 %3147  ;;  %v3022_v50 = vpop.permute.xlu0 %3021 }
 0x644   :  { %v3194_v56 = vsel %vm821_vm5, %v7953_v5, %v3022_v50 }
 0x64b   :  { %v3024_v41 = vpop.permute.xlu0 %3023 }
 0x64c   :  { %v3195_v31 = vsel %vm821_vm5, %v7960_v25, %v3024_v41 }
 0x64e   :  { %v2803_v54 = vpop.f32.mrf.mxu3 }
 0x64f   :  { %3035 = vrot.lane.b32.xlu0 %v2803_v54, %s5600_s21 }
 0x651   :  { %v3080_v46 = vpop.permute.xlu1 %3079 }
 0x652   :  { %v3208_v17 = vsel %vm3207_vm7, %v3191_v29, %v3080_v46 }
 0x653   :  { %v3225_v13 = vsel %vm3224_vm8, %v3208_v17, %v3144_v10  ;;  %v3026_v9 = vpop.permute.xlu0 %3025 }
 0x654   :  { %4960 = vmatmul.msk.f32.vlgmr.msrb.gmra.mxu2 %vm62_vm0, %v3225_v13  ;;  %v3196_v61 = vsel %vm821_vm5, %v7968_v59, %v3026_v9 }
 0x655   :  { %v2886_v44 = vpop.f32.mrf.mxu0 }
 0x656   :  { %v2975_v4 = vpop.f32.mrf.mxu1  ;;  %3095 = vrot.lane.b32.xlu1 %v2886_v44, %s5602_s23 }
 0x657   :  { %3159 = vrot.lane.b32.xlu2 %v2975_v4, %s5601_s22 }
 0x659   :  { %v3082_v47 = vpop.permute.xlu1 %3081 }
 0x65a   :  { %v3209_v11 = vsel %vm3207_vm7, %v3192_v48, %v3082_v47 }
 0x65b   :  { %v3226_v53 = vsel %vm3224_vm8, %v3209_v11, %v3146_v21  ;;  %v3028_v40 = vpop.permute.xlu0 %3027 }
 0x65c   :  { %4961 = vmatmul.msk.f32.gmra.mxu2 %vm62_vm0, %v3226_v53  ;;  %v3197_v6 = vsel %vm821_vm5, %v7973_v19, %v3028_v40 }
 0x65f   :  { %v3150_v23 = vpop.permute.xlu2 %3149 }
 0x661   :  { %v3084_v62 = vpop.permute.xlu1 %3083 }
 0x662   :  { %v3210_v1 = vsel %vm3207_vm7, %v3193_v20, %v3084_v62 }
 0x663   :  { %v3227_v27 = vsel %vm3224_vm8, %v3210_v1, %v3148_v35  ;;  %v3030_v16 = vpop.permute.xlu0 %3029 }
 0x664   :  { %4962 = vmatmul.msk.f32.gmra.mxu2 %vm62_vm0, %v3227_v27  ;;  %v3198_v18 = vsel %vm821_vm5, %v7977_v32, %v3030_v16 }
 0x667   :  { %v3152_v43 = vpop.permute.xlu2 %3151 }
 0x669   :  { %v3086_v7 = vpop.permute.xlu1 %3085 }
 0x66a   :  { %v3211_v30 = vsel %vm3207_vm7, %v3194_v56, %v3086_v7 }
 0x66b   :  { %v3228_v60 = vsel %vm3224_vm8, %v3211_v30, %v3150_v23  ;;  %v8128_v23 = vld [vmem:[%s9075_s6] ss:$0 sm:$0xff] }
 0x66c   :  { %4963 = vmatmul.msk.f32.gmra.mxu2 %vm62_vm0, %v3228_v60 }
 0x66f   :  { %v2889_v28 = vpop.f32.mrf.mxu0  ;;  %v3154_v57 = vpop.permute.xlu2 %3153 }
 0x670   :  { %3097 = vrot.lane.b32.xlu1 %v2889_v28, %s5602_s23 }
 0x671   :  { %v3088_v12 = vpop.permute.xlu1 %3087 }
 0x672   :  { %v3212_v26 = vsel %vm3207_vm7, %v3195_v31, %v3088_v12 }
 0x673   :  { %v3229_v5 = vsel %vm3224_vm8, %v3212_v26, %v3152_v43  ;;  %v2978_v36 = vpop.f32.mrf.mxu1  ;;  %v5576_v26 = vld [vmem:[%s9069_s0 + $0x8] sm:$0xff] }
 0x674   :  { %4964 = vmatmul.msk.f32.gmra.mxu2 %vm62_vm0, %v3229_v5  ;;  %3161 = vrot.lane.b32.xlu2 %v2978_v36, %s5601_s22 }
 0x677   :  { %v2892_v15 = vpop.f32.mrf.mxu0  ;;  %v3156_v24 = vpop.permute.xlu2 %3155 }
 0x678   :  { %3099 = vrot.lane.b32.xlu1 %v2892_v15, %s5602_s23 }
 0x679   :  { %v3090_v45 = vpop.permute.xlu1 %3089 }
 0x67a   :  { %v3213_v25 = vsel %vm3207_vm7, %v3196_v61, %v3090_v45 }
 0x67b   :  { %v3230_v39 = vsel %vm3224_vm8, %v3213_v25, %v3154_v57 }
 0x67c   :  { %4965 = vmatmul.msk.f32.gmra.mxu2 %vm62_vm0, %v3230_v39 }
 0x67f   :  { %v2981_v22 = vpop.f32.mrf.mxu1  ;;  %v3158_v34 = vpop.permute.xlu2 %3157 }
 0x680   :  { %3163 = vrot.lane.b32.xlu2 %v2981_v22, %s5601_s22 }
 0x681   :  { %v3092_v2 = vpop.permute.xlu1 %3091 }
 0x682   :  { %v3214_v59 = vsel %vm3207_vm7, %v3197_v6, %v3092_v2 }
 0x683   :  { %v3231_v3 = vsel %vm3224_vm8, %v3214_v59, %v3156_v24 }
 0x684   :  { %4966 = vmatmul.msk.f32.gmra.mxu2 %vm62_vm0, %v3231_v3 }
 0x687   :  { %v2895_v63 = vpop.f32.mrf.mxu0 }
 0x688   :  { %3101 = vrot.lane.b32.xlu1 %v2895_v63, %s5602_s23 }
 0x689   :  { %v3094_v14 = vpop.permute.xlu1 %3093 }
 0x68a   :  { %v3215_v19 = vsel %vm3207_vm7, %v3198_v18, %v3094_v14  ;;  %v5579_v14 = vld [vmem:[%s9069_s0 + $0x20] sm:$0xff] }
 0x68b   :  { %v3232_v52 = vsel %vm3224_vm8, %v3215_v19, %v3158_v34 }
 0x68c   :  { %v2806_v10 = vpop.f32.mrf.mxu3  ;;  %4967 = vmatmul.msk.f32.gmra.mxu2 %vm62_vm0, %v3232_v52 }
 0x68d   :  { %3037 = vrot.lane.b32.xlu0 %v2806_v10, %s5600_s21 }
 0x68f   :  { %v2898_v8 = vpop.f32.mrf.mxu0  ;;  %v2984_v54 = vpop.f32.mrf.mxu1 }
 0x690   :  { %3165 = vrot.lane.b32.xlu2 %v2984_v54, %s5601_s22  ;;  %3103 = vrot.lane.b32.xlu1 %v2898_v8, %s5602_s23 }
 0x694   :  { %v2809_v32 = vpop.f32.mrf.mxu3 }
 0x695   :  { %3039 = vrot.lane.b32.xlu0 %v2809_v32, %s5600_s21 }
 0x697   :  { %v2987_v21 = vpop.f32.mrf.mxu1 }
 0x698   :  { %3167 = vrot.lane.b32.xlu2 %v2987_v21, %s5601_s22 }
 0x69d   :  { %v2812_v29 = vpop.f32.mrf.mxu3 }
 0x69e   :  { %3041 = vrot.lane.b32.xlu0 %v2812_v29, %s5600_s21 }
 0x69f   :  { %v2901_v46 = vpop.f32.mrf.mxu0 }
 0x6a0   :  { %v2990_v17 = vpop.f32.mrf.mxu1  ;;  %3105 = vrot.lane.b32.xlu1 %v2901_v46, %s5602_s23  ;;  %v5580_v46 = vld [vmem:[%s9069_s0 + $0x28] sm:$0xff] }
 0x6a1   :  { %3169 = vrot.lane.b32.xlu2 %v2990_v17, %s5601_s22 }
 0x6a5   :  { %v2815_v13 = vpop.f32.mrf.mxu3 }
 0x6a6   :  { %3043 = vrot.lane.b32.xlu0 %v2815_v13, %s5600_s21 }
 0x6a7   :  { %v2904_v0 = vpop.f32.mrf.mxu0 }
 0x6a8   :  { %v2993_v44 = vpop.f32.mrf.mxu1  ;;  %3107 = vrot.lane.b32.xlu1 %v2904_v0, %s5602_s23 }
 0x6a9   :  { %3171 = vrot.lane.b32.xlu2 %v2993_v44, %s5601_s22 }
 0x6ad   :  { %v2818_v4 = vpop.f32.mrf.mxu3  ;;  %v3032_v35 = vpop.permute.xlu0 %3031 }
 0x6ae   :  { %3045 = vrot.lane.b32.xlu0 %v2818_v4, %s5600_s21  ;;  %v3199_v11 = vsel %vm821_vm5, %v7983_v42, %v3032_v35  ;;  %v5575_v42 = vld [vmem:[%s9069_s0] sm:$0xff] }
 0x6b1   :  { %v3160_v50 = vpop.permute.xlu2 %3159 }
 0x6b2   :  { %v2996_v48 = vpop.f32.mrf.mxu1 }
 0x6b3   :  { %3173 = vrot.lane.b32.xlu2 %v2996_v48, %s5601_s22 }
 0x6b5   :  { %v3034_v30 = vpop.permute.xlu0 %3033 }
 0x6b6   :  { %v3200_v43 = vsel %vm821_vm5, %v7990_v49, %v3034_v30  ;;  %v5577_v49 = vld [vmem:[%s9069_s0 + $0x10] sm:$0xff] }
 0x6c0   :  { %v2907_v47 = vpop.f32.mrf.mxu0 }
 0x6c1   :  { %3109 = vrot.lane.b32.xlu1 %v2907_v47, %s5602_s23  ;;  %v3036_v57 = vpop.permute.xlu0 %3035 }
 0x6c2   :  { %v3201_v25 = vsel %vm821_vm5, %v7999_v51, %v3036_v57  ;;  %v5578_v51 = vld [vmem:[%s9069_s0 + $0x18] sm:$0xff] }
 0x6c8   :  { %v3096_v53 = vpop.permute.xlu1 %3095 }
 0x6c9   :  { %v3216_v20 = vsel %vm3207_vm7, %v3199_v11, %v3096_v53  ;;  %v5581_v53 = vld [vmem:[%s9069_s0 + $0x30] sm:$0xff] }
 0x6ca   :  { %v3233_v62 = vsel %vm3224_vm8, %v3216_v20, %v3160_v50 }
 0x6cb   :  { %4968 = vmatmul.msk.f32.gmra.mxu2 %vm62_vm0, %v3233_v62 }
 0x6ce   :  { %v3162_v31 = vpop.permute.xlu2 %3161 }
 0x6d7   :  { %v3314_v1 = vpop.f32.mrf.mxu2 }
 0x6d8   :  { %v3315_v27 = vadd.f32 %v8128_v23, %v3314_v1 }
 0x6da   :  { %v8134_v41 = vadd.f32 %v5575_v42, %v3315_v27  ;;  %v3164_v40 = vpop.permute.xlu2 %3163 }
 0x6dc   :  { %v3380_v56 = vsel %vm62_vm0, %v8134_v41, 0.0 }
 0x6dd   :  { %3381 = vadd.xlane.f32.xlu0 %v3380_v56 }
 0x6df   :  { %v3317_v7 = vpop.f32.mrf.mxu2 }
 0x6e0   :  { %v3318_v60 = vadd.f32 %v8128_v23, %v3317_v7 }
 0x6e2   :  { %v3098_v28 = vpop.permute.xlu1 %3097  ;;  %v8146_v5 = vadd.f32 %v5576_v26, %v3318_v60 }
 0x6e3   :  { %v3217_v12 = vsel %vm3207_vm7, %v3200_v43, %v3098_v28 }
 0x6e4   :  { %v3234_v9 = vsel %vm3224_vm8, %v3217_v12, %v3162_v31  ;;  %v3383_v45 = vsel %vm62_vm0, %v8146_v5, 0.0 }
 0x6e5   :  { %4969 = vmatmul.msk.f32.gmra.mxu2 %vm62_vm0, %v3234_v9 }
 0x6e7   :  { %v3320_v36 = vpop.f32.mrf.mxu2 }
 0x6e8   :  { %v3321_v15 = vadd.f32 %v8128_v23, %v3320_v36 }
 0x6ea   :  { %v8153_v61 = vadd.f32 %v5577_v49, %v3321_v15  ;;  %v3100_v39 = vpop.permute.xlu1 %3099  ;;  %v3166_v52 = vpop.permute.xlu2 %3165  ;;  %v9392_v49 = vld [vmem:[#allocation2_spill] sm:$0xff] }
 0x6eb   :  { %3384 = vadd.xlane.f32.xlu1 %v3383_v45  ;;  %v3218_v24 = vsel %vm3207_vm7, %v3201_v25, %v3100_v39 }
 0x6ec   :  { %v3386_v22 = vsel %vm62_vm0, %v8153_v61, 0.0  ;;  %v3235_v6 = vsel %vm3224_vm8, %v3218_v24, %v3164_v40 }
 0x6ed   :  { %3387 = vadd.xlane.f32.xlu2 %v3386_v22  ;;  %4970 = vmatmul.msk.f32.gmra.mxu2 %vm62_vm0, %v3235_v6  ;;  %v5582_v22 = vld [vmem:[%s9069_s0 + $0x38] sm:$0xff] }
 0x6ef   :  { %v3323_v2 = vpop.f32.mrf.mxu2 }
 0x6f0   :  { %v3324_v59 = vadd.f32 %v8128_v23, %v3323_v2 }
 0x6f2   :  { %v8168_v3 = vadd.f32 %v5578_v51, %v3324_v59  ;;  %v3168_v4 = vpop.permute.xlu2 %3167 }
 0x6f4   :  { %v3389_v16 = vsel %vm62_vm0, %v8168_v3, 0.0 }
 0x6f5   :  { %3390 = vadd.xlane.f32.xlu0 %v3389_v16 }
 0x6f7   :  { %v3326_v63 = vpop.f32.mrf.mxu2 }
 0x6f8   :  { %v3327_v18 = vadd.f32 %v8128_v23, %v3326_v63 }
 0x6fa   :  { %v8176_v34 = vadd.f32 %v5579_v14, %v3327_v18  ;;  %v3102_v10 = vpop.permute.xlu1 %3101 }
 0x6fc   :  { %v3392_v19 = vsel %vm62_vm0, %v8176_v34, 0.0 }
 0x6fd   :  { %3393 = vadd.xlane.f32.xlu2 %v3392_v19 }
 0x6ff   :  { %v3038_v8 = vpop.permute.xlu0 %3037  ;;  %v3329_v54 = vpop.f32.mrf.mxu2 }
 0x700   :  { %v3202_v32 = vsel %vm821_vm5, %v8008_v33, %v3038_v8  ;;  %v3330_v21 = vadd.f32 %v8128_v23, %v3329_v54 }
 0x701   :  { %v3219_v29 = vsel %vm3207_vm7, %v3202_v32, %v3102_v10 }
 0x702   :  { %v8187_v17 = vadd.f32 %v5580_v46, %v3330_v21  ;;  %v3236_v13 = vsel %vm3224_vm8, %v3219_v29, %v3166_v52  ;;  %v3104_v48 = vpop.permute.xlu1 %3103  ;;  %v5583_v29 = vld [vmem:[%s9069_s0 + $0x40] sm:$0xff] }
 0x703   :  { %4971 = vmatmul.msk.f32.gmra.mxu2 %vm62_vm0, %v3236_v13 }
 0x704   :  { %v3395_v0 = vsel %vm62_vm0, %v8187_v17, 0.0 }
 0x705   :  { %3396 = vadd.xlane.f32.xlu1 %v3395_v0 }
 0x707   :  { %v3040_v44 = vpop.permute.xlu0 %3039  ;;  %v3332_v33 = vpop.f32.mrf.mxu2 }
 0x708   :  { %v3203_v47 = vsel %vm821_vm5, %v8016_v55, %v3040_v44  ;;  %v3333_v35 = vadd.f32 %v8128_v23, %v3332_v33  ;;  %v3170_v55 = vpop.permute.xlu2 %3169 }
 0x709   :  { %v3220_v11 = vsel %vm3207_vm7, %v3203_v47, %v3104_v48 }
 0x70a   :  { %v8200_v50 = vadd.f32 %v5581_v53, %v3333_v35  ;;  %v3237_v20 = vsel %vm3224_vm8, %v3220_v11, %v3168_v4  ;;  %v5584_v4 = vld [vmem:[%s9069_s0 + $0x48] sm:$0xff] }
 0x70b   :  { %4972 = vmatmul.msk.f32.gmra.mxu2 %vm62_vm0, %v3237_v20 }
 0x70c   :  { %v3398_v62 = vsel %vm62_vm0, %v8200_v50, 0.0 }
 0x70d   :  { %3399 = vadd.xlane.f32.xlu2 %v3398_v62 }
 0x70f   :  { %v3335_v39 = vpop.f32.mrf.mxu2 }
 0x710   :  { %v3042_v1 = vpop.permute.xlu0 %3041  ;;  %v3172_v28 = vpop.permute.xlu2 %3171 }
 0x711   :  { %v3204_v27 = vsel %vm821_vm5, %v8024_v38, %v3042_v1 }
 0x712   :  { %v3106_v42 = vpop.permute.xlu1 %3105 }
 0x713   :  { %v3221_v56 = vsel %vm3207_vm7, %v3204_v27, %v3106_v42  ;;  %v5585_v42 = vld [vmem:[%s9069_s0 + $0x50] sm:$0xff] }
 0x714   :  { %v3238_v7 = vsel %vm3224_vm8, %v3221_v56, %v3170_v55 }
 0x715   :  { %4973 = vmatmul.msk.f32.gmra.mxu2 %vm62_vm0, %v3238_v7 }
 0x718   :  { %v3044_v30 = vpop.permute.xlu0 %3043  ;;  %v3174_v36 = vpop.permute.xlu2 %3173 }
 0x719   :  { %v3205_v60 = vsel %vm821_vm5, %v8033_v37, %v3044_v30 }
 0x71a   :  { %v3108_v43 = vpop.permute.xlu1 %3107 }
 0x71b   :  { %v3222_v31 = vsel %vm3207_vm7, %v3205_v60, %v3108_v43 }
 0x71c   :  { %v3239_v12 = vsel %vm3224_vm8, %v3222_v31, %v3172_v28 }
 0x71d   :  { %4974 = vmatmul.msk.f32.gmra.mxu2 %vm62_vm0, %v3239_v12 }
 0x720   :  { %v3046_v38 = vpop.permute.xlu0 %3045 }
 0x721   :  { %v3206_v9 = vsel %vm821_vm5, %v8044_v58, %v3046_v38  ;;  %v3336_v58 = vadd.f32 %v8128_v23, %v3335_v39  ;;  %v5586_v39 = vld [vmem:[%s9069_s0 + $0x58] sm:$0xff] }
 0x723   :  { %v8232_v6 = vadd.f32 %v5582_v22, %v3336_v58 }
 0x725   :  { %v3401_v51 = vsel %vm62_vm0, %v8232_v6, 0.0 }
 0x733   :  { %v3110_v26 = vpop.permute.xlu1 %3109 }
 0x734   :  { %v3223_v57 = vsel %vm3207_vm7, %v3206_v9, %v3110_v26 }
 0x735   :  { %v3240_v15 = vsel %vm3224_vm8, %v3223_v57, %v3174_v36 }
 0x736   :  { %4975 = vmatmul.msk.f32.gmra.mxu2 %vm62_vm0, %v3240_v15 }
 0x74e   :  { %v3338_v63 = vpop.f32.mrf.mxu2 }
 0x74f   :  { %v3339_v10 = vadd.f32 %v8128_v23, %v3338_v63 }
 0x750   :  { %v3382_v37 = vpop.xlane.xlu0 %3381 }
 0x751   :  { %v3428_v45 = vmul.f32 %v3382_v37, %v9392_v49  ;;  %v8254_v46 = vadd.f32 %v5583_v29, %v3339_v10  ;;  %v3772_v29 = vld [vmem:[%s9078_s9 + $0x10] sm:$0xff] }
 0x753   :  { %v8223_v25 = vsub.f32 %v8134_v41, %v3428_v45  ;;  %v3404_v47 = vsel %vm62_vm0, %v8254_v46, 0.0 }
 0x755   :  { %v3460_v40 = vmul.f32 %v8223_v25, %v8223_v25 }
 0x757   :  { %v3476_v24 = vsel %vm62_vm0, %v3460_v40, 0.0 }
 0x758   :  { %3477 = vadd.xlane.f32.xlu0 %v3476_v24 }
 0x75e   :  { %v3385_v2 = vpop.xlane.xlu1 %3384 }
 0x75f   :  { %v3429_v59 = vmul.f32 %v3385_v2, %v9392_v49  ;;  %v5587_v2 = vld [vmem:[%s9069_s0 + $0x60] sm:$0xff] }
 0x760   :  { %v3388_v16 = vpop.xlane.xlu2 %3387  ;;  %3402 = vadd.xlane.f32.xlu0 %v3401_v51 }
 0x761   :  { %v8238_v18 = vsub.f32 %v8146_v5, %v3429_v59  ;;  %v3430_v14 = vmul.f32 %v3388_v16, %v9392_v49 }
 0x763   :  { %v8242_v19 = vsub.f32 %v8153_v61, %v3430_v14  ;;  %v3461_v52 = vmul.f32 %v8238_v18, %v8238_v18  ;;  %v5588_v14 = vld [vmem:[%s9069_s0 + $0x68] sm:$0xff] }
 0x765   :  { %v3479_v8 = vsel %vm62_vm0, %v3461_v52, 0.0  ;;  %v3462_v54 = vmul.f32 %v8242_v19, %v8242_v19 }
 0x766   :  { %3480 = vadd.xlane.f32.xlu1 %v3479_v8 }
 0x767   :  { %v3482_v32 = vsel %vm62_vm0, %v3462_v54, 0.0 }
 0x768   :  { %3483 = vadd.xlane.f32.xlu2 %v3482_v32  ;;  %v3391_v21 = vpop.xlane.xlu0 %3390  ;;  %v3341_v0 = vpop.f32.mrf.mxu2  ;;  %v3773_v32 = vld [vmem:[%s9078_s9 + $0x18] sm:$0xff] }
 0x769   :  { %v3431_v13 = vmul.f32 %v3391_v21, %v9392_v49  ;;  %v3342_v44 = vadd.f32 %v8128_v23, %v3341_v0  ;;  %3838 = vmatpush.msra.mxu3 %v3773_v32  ;;  %v3770_v0 = vld [vmem:[%s9078_s9] sm:$0xff] }
 0x76b   :  { %v8259_v33 = vsub.f32 %v8168_v3, %v3431_v13  ;;  %v8264_v48 = vadd.f32 %v5584_v4, %v3342_v44  ;;  %3839 = vmatpush.msra.mxu3 %v3772_v29  ;;  %v3771_v13 = vld [vmem:[%s9078_s9 + $0x8] sm:$0xff] }
 0x76d   :  { %v3463_v35 = vmul.f32 %v8259_v33, %v8259_v33  ;;  %v3407_v11 = vsel %vm62_vm0, %v8264_v48, 0.0  ;;  %3840 = vmatpush.msra.mxu3 %v3771_v13 }
 0x76e   :  { %3405 = vadd.xlane.f32.xlu1 %v3404_v47 }
 0x76f   :  { %v3485_v53 = vsel %vm62_vm0, %v3463_v35, 0.0  ;;  %3841 = vmatpush.msra.mxu3 %v3770_v0 }
 0x770   :  { %3408 = vadd.xlane.f32.xlu2 %v3407_v11  ;;  %v3394_v20 = vpop.xlane.xlu2 %3393  ;;  %3486 = vadd.xlane.f32.xlu0 %v3485_v53  ;;  %v3344_v1 = vpop.f32.mrf.mxu2 }
 0x771   :  { %v3432_v62 = vmul.f32 %v3394_v20, %v9392_v49  ;;  %v3345_v55 = vadd.f32 %v8128_v23, %v3344_v1 }
 0x773   :  { %v8276_v27 = vsub.f32 %v8176_v34, %v3432_v62  ;;  %v8281_v56 = vadd.f32 %v5585_v42, %v3345_v55 }
 0x775   :  { %v3464_v7 = vmul.f32 %v8276_v27, %v8276_v27  ;;  %v3410_v30 = vsel %vm62_vm0, %v8281_v56, 0.0 }
 0x777   :  { %v3488_v60 = vsel %vm62_vm0, %v3464_v7, 0.0 }
 0x778   :  { %3489 = vadd.xlane.f32.xlu1 %v3488_v60  ;;  %v3397_v43 = vpop.xlane.xlu1 %3396  ;;  %3411 = vadd.xlane.f32.xlu0 %v3410_v30 }
 0x779   :  { %v3433_v28 = vmul.f32 %v3397_v43, %v9392_v49 }
 0x77b   :  { %v8290_v31 = vsub.f32 %v8187_v17, %v3433_v28 }
 0x77d   :  { %v3465_v12 = vmul.f32 %v8290_v31, %v8290_v31 }
 0x77f   :  { %v3491_v38 = vsel %vm62_vm0, %v3465_v12, 0.0 }
 0x780   :  { %v3400_v9 = vpop.xlane.xlu2 %3399  ;;  %3492 = vadd.xlane.f32.xlu2 %v3491_v38  ;;  %v5589_v38 = vld [vmem:[%s9069_s0 + $0x70] sm:$0xff] }
 0x781   :  { %v3434_v26 = vmul.f32 %v3400_v9, %v9392_v49 }
 0x783   :  { %v8297_v36 = vsub.f32 %v8200_v50, %v3434_v26 }
 0x785   :  { %v3466_v57 = vmul.f32 %v8297_v36, %v8297_v36 }
 0x786   :  { %v3347_v15 = vpop.f32.mrf.mxu2 }
 0x787   :  { %v3348_v37 = vadd.f32 %v8128_v23, %v3347_v15  ;;  %v3494_v45 = vsel %vm62_vm0, %v3466_v57, 0.0  ;;  %v8357_v15 = vld [vmem:[%s9076_s7] ss:$0 sm:$0xff] }
 0x788   :  { %3495 = vadd.xlane.f32.xlu0 %v3494_v45 }
 0x789   :  { %v8306_v40 = vadd.f32 %v5586_v39, %v3348_v37  ;;  %v8362_v39 = vld [vmem:[%s9077_s8] ss:$0 sm:$0xff] }
 0x78b   :  { %v3413_v58 = vsel %vm62_vm0, %v8306_v40, 0.0 }
 0x78c   :  { %3414 = vadd.xlane.f32.xlu1 %v3413_v58 }
 0x78e   :  { %v3350_v24 = vpop.f32.mrf.mxu2 }
 0x78f   :  { %v3351_v22 = vadd.f32 %v8128_v23, %v3350_v24 }
 0x791   :  { %v8314_v59 = vadd.f32 %v5587_v2, %v3351_v22 }
 0x793   :  { %v3416_v51 = vsel %vm62_vm0, %v8314_v59, 0.0 }
 0x794   :  { %3417 = vadd.xlane.f32.xlu2 %v3416_v51 }
 0x798   :  { %v3353_v16 = vpop.f32.mrf.mxu2 }
 0x799   :  { %v3354_v63 = vadd.f32 %v8128_v23, %v3353_v16 }
 0x79b   :  { %v8322_v52 = vadd.f32 %v5588_v14, %v3354_v63 }
 0x79d   :  { %v3419_v10 = vsel %vm62_vm0, %v8322_v52, 0.0 }
 0x79e   :  { %3420 = vadd.xlane.f32.xlu0 %v3419_v10 }
 0x7a0   :  { %v3356_v11 = vpop.f32.mrf.mxu2 }
 0x7a1   :  { %v3357_v55 = vadd.f32 %v8128_v23, %v3356_v11 }
 0x7a3   :  { %v8352_v9 = vadd.f32 %v5589_v38, %v3357_v55 }
 0x7a5   :  { %v3422_v22 = vsel %vm62_vm0, %v8352_v9, 0.0 }
 0x7cb   :  { %v3478_v8 = vpop.xlane.xlu0 %3477 }
 0x7cc   :  { %v3524_v54 = vmul.f32 %v3478_v8, %v9392_v49 }
 0x7ce   :  { %v3540_v21 = vadd.f32 1e-05, %v3524_v54  ;;  %v3359_v54 = vpop.f32.mrf.mxu2 }
 0x7d0   :  { %5511 = vrsqrt.f32 %v3540_v21  ;;  %vm3562_vm10 = vweird.f32 %v3540_v21 }
 0x7d3   :  { %v3403_v44 = vpop.xlane.xlu0 %3402 }
 0x7d4   :  { %v3435_v4 = vmul.f32 %v3403_v44, %v9392_v49 }
 0x7d6   :  { %v5512_v47 = vpop.eup %5511  ;;  %v8341_v35 = vsub.f32 %v8232_v6, %v3435_v4 }
 0x7d7   :  { %v3557_v53 = vmul.f32 %v5512_v47, %v3540_v21  ;;  %vm3563_vm9 = vweird.f32 %v5512_v47 }
 0x7d8   :  { %v3467_v20 = vmul.f32 %v8341_v35, %v8341_v35  ;;  %vm3564_vm11 = vmor %vm3562_vm10, %vm3563_vm9 }
 0x7d9   :  { %v3558_v62 = vmul.f32 %v5512_v47, %v3557_v53  ;;  %v3481_v1 = vpop.xlane.xlu1 %3480 }
 0x7da   :  { %v3525_v42 = vmul.f32 %v3481_v1, %v9392_v49  ;;  %v3497_v7 = vsel %vm62_vm0, %v3467_v20, 0.0 }
 0x7db   :  { %v3559_v30 = vmul.f32 0.5, %v3558_v62  ;;  %v3484_v60 = vpop.xlane.xlu2 %3483  ;;  %3498 = vadd.xlane.f32.xlu1 %v3497_v7 }
 0x7dc   :  { %v3541_v43 = vadd.f32 1e-05, %v3525_v42  ;;  %v3526_v28 = vmul.f32 %v3484_v60, %v9392_v49 }
 0x7dd   :  { %v3560_v12 = vsub.f32 1.5, %v3559_v30 }
 0x7de   :  { %5513 = vrsqrt.f32 %v3541_v43  ;;  %v3542_v26 = vadd.f32 1e-05, %v3526_v28  ;;  %vm3572_vm13 = vweird.f32 %v3541_v43 }
 0x7df   :  { %v3561_v57 = vmul.f32 %v5512_v47, %v3560_v12 }
 0x7e0   :  { %5515 = vrsqrt.f32 %v3542_v26  ;;  %vm3582_vm1 = vweird.f32 %v3542_v26 }
 0x7e1   :  { %v3565_v37 = vsel %vm3564_vm11, %v5512_v47, %v3561_v57  ;;  %v3406_v45 = vpop.xlane.xlu1 %3405  ;;  %v3360_v47 = vadd.f32 %v8128_v23, %v3359_v54  ;;  %v5590_v23 = vld [vmem:[%s9069_s0 + $0x78] sm:$0xff] }
 0x7e2   :  { %v3716_v58 = vmul.f32 %v3565_v37, %v8223_v25  ;;  %v3436_v24 = vmul.f32 %v3406_v45, %v9392_v49 }
 0x7e3   :  { %v3409_v2 = vpop.xlane.xlu2 %3408  ;;  %3423 = vadd.xlane.f32.xlu1 %v3422_v22  ;;  %v3487_v51 = vpop.xlane.xlu0 %3486  ;;  %v8389_v60 = vadd.f32 %v5590_v23, %v3360_v47 }
 0x7e4   :  { %v5514_v16 = vpop.eup %5513  ;;  %v3735_v63 = vmul.f32 %v8357_v15, %v3716_v58  ;;  %v8370_v14 = vsub.f32 %v8254_v46, %v3436_v24  ;;  %v3437_v10 = vmul.f32 %v3409_v2, %v9392_v49  ;;  %v3527_v8 = vmul.f32 %v3487_v51, %v9392_v49 }
 0x7e5   :  { %v3567_v25 = vmul.f32 %v5514_v16, %v3541_v43  ;;  %vm3573_vm12 = vweird.f32 %v5514_v16 }
 0x7e6   :  { %v5516_v32 = vpop.eup %5515  ;;  %v3754_v21 = vadd.f32 %v8362_v39, %v3735_v63  ;;  %v8376_v29 = vsub.f32 %v8264_v48, %v3437_v10  ;;  %v3543_v13 = vadd.f32 1e-05, %v3527_v8  ;;  %v3468_v0 = vmul.f32 %v8370_v14, %v8370_v14  ;;  %vm3574_vm15 = vmor %vm3572_vm13, %vm3573_vm12 }
 0x7e7   :  { %v3568_v44 = vmul.f32 %v5514_v16, %v3567_v25  ;;  %v3577_v4 = vmul.f32 %v5516_v32, %v3542_v26  ;;  %vm3583_vm14 = vweird.f32 %v5516_v32  ;;  %v3425_v63 = vsel %vm62_vm0, %v8389_v60, 0.0 }
 0x7e8   :  { %5517 = vrsqrt.f32 %v3543_v13  ;;  %4976 = vmatmul.msk.f32.vlgmr.msra.gmra.mxu3 %vm62_vm0, %v3754_v21  ;;  %v3500_v11 = vsel %vm62_vm0, %v3468_v0, 0.0  ;;  %v3469_v53 = vmul.f32 %v8376_v29, %v8376_v29  ;;  %vm3584_vm2 = vmor %vm3582_vm1, %vm3583_vm14  ;;  %vm3592_vm4 = vweird.f32 %v3543_v13 }
 0x7e9   :  { %v3569_v20 = vmul.f32 0.5, %v3568_v44  ;;  %v3578_v62 = vmul.f32 %v5516_v32, %v3577_v4  ;;  %3501 = vadd.xlane.f32.xlu2 %v3500_v11 }
 0x7ea   :  { %v3503_v1 = vsel %vm62_vm0, %v3469_v53, 0.0 }
 0x7eb   :  { %v3570_v55 = vsub.f32 1.5, %v3569_v20  ;;  %v3579_v42 = vmul.f32 0.5, %v3578_v62  ;;  %v3490_v7 = vpop.xlane.xlu1 %3489  ;;  %3504 = vadd.xlane.f32.xlu0 %v3503_v1  ;;  %v3412_v30 = vpop.xlane.xlu0 %3411 }
 0x7ec   :  { %v3528_v28 = vmul.f32 %v3490_v7, %v9392_v49  ;;  %v3438_v12 = vmul.f32 %v3412_v30, %v9392_v49 }
 0x7ed   :  { %v3571_v38 = vmul.f32 %v5514_v16, %v3570_v55  ;;  %v3580_v57 = vsub.f32 1.5, %v3579_v42 }
 0x7ee   :  { %v5518_v37 = vpop.eup %5517  ;;  %v3544_v45 = vadd.f32 1e-05, %v3528_v28  ;;  %v8394_v58 = vsub.f32 %v8281_v56, %v3438_v12 }
 0x7ef   :  { %v3575_v24 = vsel %vm3574_vm15, %v5514_v16, %v3571_v38  ;;  %v3581_v22 = vmul.f32 %v5516_v32, %v3580_v57  ;;  %v3587_v2 = vmul.f32 %v5518_v37, %v3543_v13  ;;  %vm3593_vm3 = vweird.f32 %v5518_v37 }
 0x7f0   :  { %v3717_v51 = vmul.f32 %v3575_v24, %v8238_v18  ;;  %5519 = vrsqrt.f32 %v3544_v45  ;;  %v3470_v43 = vmul.f32 %v8394_v58, %v8394_v58  ;;  %vm3594_vm5 = vmor %vm3592_vm4, %vm3593_vm3  ;;  %vm3602_vm7 = vweird.f32 %v3544_v45 }
 0x7f1   :  { %v3585_v10 = vsel %vm3584_vm2, %v5516_v32, %v3581_v22  ;;  %v3588_v8 = vmul.f32 %v5518_v37, %v3587_v2  ;;  %3426 = vadd.xlane.f32.xlu2 %v3425_v63 }
 0x7f2   :  { %v3506_v54 = vsel %vm62_vm0, %v3470_v43, 0.0  ;;  %v3736_v16 = vmul.f32 %v8357_v15, %v3717_v51  ;;  %v3718_v18 = vmul.f32 %v3585_v10, %v8242_v19 }
 0x7f3   :  { %v3589_v25 = vmul.f32 0.5, %v3588_v8  ;;  %v3493_v26 = vpop.xlane.xlu2 %3492  ;;  %3507 = vadd.xlane.f32.xlu1 %v3506_v54 }
 0x7f4   :  { %v3529_v21 = vmul.f32 %v3493_v26, %v9392_v49  ;;  %v3755_v0 = vadd.f32 %v8362_v39, %v3736_v16  ;;  %v3737_v53 = vmul.f32 %v8357_v15, %v3718_v18 }
 0x7f5   :  { %v3590_v44 = vsub.f32 1.5, %v3589_v25 }
 0x7f6   :  { %v5520_v4 = vpop.eup %5519  ;;  %v3545_v47 = vadd.f32 1e-05, %v3529_v21  ;;  %4977 = vmatmul.msk.f32.gmra.mxu3 %vm62_vm0, %v3755_v0  ;;  %v3756_v7 = vadd.f32 %v8362_v39, %v3737_v53 }
 0x7f7   :  { %v3591_v32 = vmul.f32 %v5518_v37, %v3590_v44  ;;  %v3597_v11 = vmul.f32 %v5520_v4, %v3544_v45  ;;  %vm3603_vm6 = vweird.f32 %v5520_v4 }
 0x7f8   :  { %5521 = vrsqrt.f32 %v3545_v47  ;;  %vm3604_vm8 = vmor %vm3602_vm7, %vm3603_vm6  ;;  %vm3612_vm10 = vweird.f32 %v3545_v47 }
 0x7f9   :  { %v3595_v20 = vsel %vm3594_vm5, %v5518_v37, %v3591_v32  ;;  %v3598_v62 = vmul.f32 %v5520_v4, %v3597_v11 }
 0x7fa   :  { %v3719_v55 = vmul.f32 %v3595_v20, %v8259_v33 }
 0x7fb   :  { %v3599_v19 = vmul.f32 0.5, %v3598_v62  ;;  %v3496_v1 = vpop.xlane.xlu0 %3495 }
 0x7fc   :  { %v3530_v42 = vmul.f32 %v3496_v1, %v9392_v49  ;;  %v3738_v33 = vmul.f32 %v8357_v15, %v3719_v55 }
 0x7fd   :  { %v3600_v30 = vsub.f32 1.5, %v3599_v19 }
 0x7fe   :  { %v5522_v23 = vpop.eup %5521  ;;  %v3546_v28 = vadd.f32 1e-05, %v3530_v42  ;;  %4978 = vmatmul.msk.f32.gmra.mxu3 %vm62_vm0, %v3756_v7  ;;  %v3757_v63 = vadd.f32 %v8362_v39, %v3738_v33 }
 0x7ff   :  { %v3601_v13 = vmul.f32 %v5520_v4, %v3600_v30  ;;  %v3607_v12 = vmul.f32 %v5522_v23, %v3545_v47  ;;  %v3415_v38 = vpop.xlane.xlu1 %3414  ;;  %vm3613_vm9 = vweird.f32 %v5522_v23 }
 0x800   :  { %5523 = vrsqrt.f32 %v3546_v28  ;;  %v3439_v57 = vmul.f32 %v3415_v38, %v9392_v49  ;;  %vm3614_vm11 = vmor %vm3612_vm10, %vm3613_vm9  ;;  %vm3622_vm13 = vweird.f32 %v3546_v28 }
 0x801   :  { %v3605_v37 = vsel %vm3604_vm8, %v5520_v4, %v3601_v13  ;;  %v3608_v24 = vmul.f32 %v5522_v23, %v3607_v12 }
 0x802   :  { %v8415_v22 = vsub.f32 %v8306_v40, %v3439_v57  ;;  %v3720_v51 = vmul.f32 %v3605_v37, %v8276_v27 }
 0x803   :  { %v3609_v2 = vmul.f32 0.5, %v3608_v24 }
 0x804   :  { %v3471_v45 = vmul.f32 %v8415_v22, %v8415_v22  ;;  %v3739_v26 = vmul.f32 %v8357_v15, %v3720_v51 }
 0x805   :  { %v3610_v43 = vsub.f32 1.5, %v3609_v2 }
 0x806   :  { %v5524_v10 = vpop.eup %5523  ;;  %4979 = vmatmul.msk.f32.gmra.mxu3 %vm62_vm0, %v3757_v63  ;;  %v3509_v8 = vsel %vm62_vm0, %v3471_v45, 0.0  ;;  %v3758_v32 = vadd.f32 %v8362_v39, %v3739_v26 }
 0x807   :  { %v3611_v54 = vmul.f32 %v5522_v23, %v3610_v43  ;;  %v3617_v16 = vmul.f32 %v5524_v10, %v3546_v28  ;;  %v3418_v25 = vpop.xlane.xlu2 %3417  ;;  %3510 = vadd.xlane.f32.xlu0 %v3509_v8  ;;  %vm3623_vm12 = vweird.f32 %v5524_v10 }
 0x808   :  { %v3440_v27 = vmul.f32 %v3418_v25, %v9392_v49  ;;  %vm3624_vm14 = vmor %vm3622_vm13, %vm3623_vm12 }
 0x809   :  { %v3615_v18 = vsel %vm3614_vm11, %v5522_v23, %v3611_v54  ;;  %v3618_v21 = vmul.f32 %v5524_v10, %v3617_v16 }
 0x80a   :  { %v8426_v0 = vsub.f32 %v8314_v59, %v3440_v27  ;;  %v3721_v4 = vmul.f32 %v3615_v18, %v8290_v31 }
 0x80b   :  { %v3619_v44 = vmul.f32 0.5, %v3618_v21 }
 0x80c   :  { %v3472_v47 = vmul.f32 %v8426_v0, %v8426_v0  ;;  %v3740_v62 = vmul.f32 %v8357_v15, %v3721_v4 }
 0x80d   :  { %v3620_v11 = vsub.f32 1.5, %v3619_v44 }
 0x80e   :  { %4980 = vmatmul.msk.f32.gmra.mxu3 %vm62_vm0, %v3758_v32  ;;  %v3512_v53 = vsel %vm62_vm0, %v3472_v47, 0.0  ;;  %v3759_v42 = vadd.f32 %v8362_v39, %v3740_v62 }
 0x80f   :  { %v3621_v20 = vmul.f32 %v5524_v10, %v3620_v11  ;;  %3513 = vadd.xlane.f32.xlu2 %v3512_v53 }
 0x811   :  { %v3625_v19 = vsel %vm3624_vm14, %v5524_v10, %v3621_v20  ;;  %v3421_v1 = vpop.xlane.xlu0 %3420 }
 0x812   :  { %v3441_v31 = vmul.f32 %v3421_v1, %v9392_v49  ;;  %v3722_v55 = vmul.f32 %v3625_v19, %v8297_v36  ;;  %v8468_v1 = vld [vmem:[%s9079_s10] ss:$0 sm:$0xff] }
 0x814   :  { %v8439_v7 = vsub.f32 %v8322_v52, %v3441_v31  ;;  %v3741_v23 = vmul.f32 %v8357_v15, %v3722_v55 }
 0x816   :  { %4981 = vmatmul.msk.f32.gmra.mxu3 %vm62_vm0, %v3759_v42  ;;  %v3473_v30 = vmul.f32 %v8439_v7, %v8439_v7  ;;  %v3760_v13 = vadd.f32 %v8362_v39, %v3741_v23 }
 0x818   :  { %v3515_v28 = vsel %vm62_vm0, %v3473_v30, 0.0 }
 0x819   :  { %3516 = vadd.xlane.f32.xlu1 %v3515_v28 }
 0x81e   :  { %4982 = vmatmul.msk.f32.gmra.mxu3 %vm62_vm0, %v3760_v13 }
 0x84e   :  { %v3499_v36 = vpop.xlane.xlu1 %3498 }
 0x84f   :  { %v3531_v12 = vmul.f32 %v3499_v36, %v9392_v49 }
 0x851   :  { %v3547_v38 = vadd.f32 1e-05, %v3531_v12 }
 0x853   :  { %5525 = vrsqrt.f32 %v3547_v38  ;;  %vm3632_vm1 = vweird.f32 %v3547_v38 }
 0x856   :  { %v3424_v57 = vpop.xlane.xlu1 %3423 }
 0x857   :  { %v3442_v33 = vmul.f32 %v3424_v57, %v9392_v49 }
 0x859   :  { %v5526_v37 = vpop.eup %5525  ;;  %v8451_v24 = vsub.f32 %v8352_v9, %v3442_v33 }
 0x85a   :  { %v3627_v2 = vmul.f32 %v5526_v37, %v3547_v38  ;;  %vm3633_vm15 = vweird.f32 %v5526_v37 }
 0x85b   :  { %v3474_v51 = vmul.f32 %v8451_v24, %v8451_v24  ;;  %vm3634_vm2 = vmor %vm3632_vm1, %vm3633_vm15 }
 0x85c   :  { %v3628_v63 = vmul.f32 %v5526_v37, %v3627_v2  ;;  %v3502_v45 = vpop.xlane.xlu2 %3501 }
 0x85d   :  { %v3532_v43 = vmul.f32 %v3502_v45, %v9392_v49  ;;  %v3518_v10 = vsel %vm62_vm0, %v3474_v51, 0.0 }
 0x85e   :  { %v3629_v8 = vmul.f32 0.5, %v3628_v63  ;;  %3519 = vadd.xlane.f32.xlu0 %v3518_v10  ;;  %v3505_v54 = vpop.xlane.xlu0 %3504 }
 0x85f   :  { %v3548_v16 = vadd.f32 1e-05, %v3532_v43  ;;  %v3533_v25 = vmul.f32 %v3505_v54, %v9392_v49 }
 0x860   :  { %v3630_v27 = vsub.f32 1.5, %v3629_v8 }
 0x861   :  { %5527 = vrsqrt.f32 %v3548_v16  ;;  %v3549_v26 = vadd.f32 1e-05, %v3533_v25  ;;  %vm3642_vm4 = vweird.f32 %v3548_v16 }
 0x862   :  { %v3631_v18 = vmul.f32 %v5526_v37, %v3630_v27 }
 0x863   :  { %5529 = vrsqrt.f32 %v3549_v26  ;;  %vm3652_vm7 = vweird.f32 %v3549_v26 }
 0x864   :  { %v3635_v21 = vsel %vm3634_vm2, %v5526_v37, %v3631_v18  ;;  %v3427_v44 = vpop.xlane.xlu2 %3426 }
 0x865   :  { %v3723_v4 = vmul.f32 %v3635_v21, %v8341_v35  ;;  %v3443_v32 = vmul.f32 %v3427_v44, %v9392_v49 }
 0x866   :  { %v3508_v47 = vpop.xlane.xlu1 %3507 }
 0x867   :  { %v5528_v11 = vpop.eup %5527  ;;  %v8461_v53 = vsub.f32 %v8389_v60, %v3443_v32  ;;  %v3534_v20 = vmul.f32 %v3508_v47, %v9392_v49  ;;  %v3742_v62 = vmul.f32 %v8357_v15, %v3723_v4 }
 0x868   :  { %v3637_v19 = vmul.f32 %v5528_v11, %v3548_v16  ;;  %vm3643_vm3 = vweird.f32 %v5528_v11 }
 0x869   :  { %v5530_v31 = vpop.eup %5529  ;;  %v3550_v55 = vadd.f32 1e-05, %v3534_v20  ;;  %v3761_v35 = vadd.f32 %v8362_v39, %v3742_v62  ;;  %v3475_v42 = vmul.f32 %v8461_v53, %v8461_v53  ;;  %vm3644_vm6 = vmor %vm3642_vm4, %vm3643_vm3 }
 0x86a   :  { %v3638_v30 = vmul.f32 %v5528_v11, %v3637_v19  ;;  %v3647_v23 = vmul.f32 %v5530_v31, %v3549_v26  ;;  %vm3653_vm5 = vweird.f32 %v5530_v31 }
 0x86b   :  { %5531 = vrsqrt.f32 %v3550_v55  ;;  %v3843_v28 = vpop.f32.mrf.mxu3  ;;  %4983 = vmatmul.msk.f32.gmra.mxu3 %vm62_vm0, %v3761_v35  ;;  %v3521_v13 = vsel %vm62_vm0, %v3475_v42, 0.0  ;;  %vm3654_vm8 = vmor %vm3652_vm7, %vm3653_vm5  ;;  %vm3662_vm10 = vweird.f32 %v3550_v55 }
 0x86c   :  { %v3639_v36 = vmul.f32 0.5, %v3638_v30  ;;  %v3648_v12 = vmul.f32 %v5530_v31, %v3647_v23  ;;  %v8476_v38 = vadd.f32 %v8468_v1, %v3843_v28  ;;  %3522 = vadd.xlane.f32.xlu2 %v3521_v13 }
 0x86e   :  { %v3640_v57 = vsub.f32 1.5, %v3639_v36  ;;  %v3649_v33 = vmul.f32 0.5, %v3648_v12  ;;  %v8479_v37 = vmul.f32 0.70710677, %v8476_v38 }
 0x870   :  { %v3641_v2 = vmul.f32 %v5528_v11, %v3640_v57  ;;  %v3650_v51 = vsub.f32 1.5, %v3649_v33  ;;  %v3923_v63 = vmul.f32 %v8479_v37, %v8479_v37 }
 0x871   :  { %v5532_v45 = vpop.eup %5531 }
 0x872   :  { %v3645_v43 = vsel %vm3644_vm6, %v5528_v11, %v3641_v2  ;;  %v3651_v10 = vmul.f32 %v5530_v31, %v3650_v51  ;;  %v3657_v8 = vmul.f32 %v5532_v45, %v3550_v55  ;;  %v8484_v25 = vmin.f32 %v3923_v63, 16.0 }
 0x873   :  { %v3724_v54 = vmul.f32 %v3645_v43, %v8370_v14  ;;  %vm3663_vm9 = vweird.f32 %v5532_v45 }
 0x874   :  { %v3655_v27 = vsel %vm3654_vm8, %v5530_v31, %v3651_v10  ;;  %v3658_v18 = vmul.f32 %v5532_v45, %v3657_v8  ;;  %v3925_v16 = vmul.f32 2.1237322e-06, %v8484_v25  ;;  %v3936_v21 = vmul.f32 3.8918573e-05, %v8484_v25  ;;  %vm3664_vm11 = vmor %vm3662_vm10, %vm3663_vm9 }
 0x875   :  { %v3743_v44 = vmul.f32 %v8357_v15, %v3724_v54  ;;  %v3725_v4 = vmul.f32 %v3655_v27, %v8376_v29 }
 0x876   :  { %v3659_v32 = vmul.f32 0.5, %v3658_v18  ;;  %v3926_v47 = vadd.f32 0.00028619796, %v3925_v16  ;;  %v3937_v11 = vadd.f32 0.001143296, %v3936_v21 }
 0x877   :  { %v3762_v26 = vadd.f32 %v8362_v39, %v3743_v44  ;;  %v3744_v42 = vmul.f32 %v8357_v15, %v3725_v4 }
 0x878   :  { %v3660_v20 = vsub.f32 1.5, %v3659_v32  ;;  %v3927_v14 = vmul.f32 %v3926_v47, %v8484_v25  ;;  %v3938_v62 = vmul.f32 %v3937_v11, %v8484_v25 }
 0x879   :  { %v3846_v19 = vpop.f32.mrf.mxu3  ;;  %4984 = vmatmul.msk.f32.gmra.mxu3 %vm62_vm0, %v3762_v26  ;;  %v3763_v2 = vadd.f32 %v8362_v39, %v3744_v42 }
 0x87a   :  { %v3661_v31 = vmul.f32 %v5532_v45, %v3660_v20  ;;  %v8495_v35 = vadd.f32 %v8468_v1, %v3846_v19  ;;  %v3511_v29 = vpop.xlane.xlu0 %3510  ;;  %v3928_v30 = vadd.f32 0.0036580483, %v3927_v14  ;;  %v3939_v23 = vadd.f32 0.014752088, %v3938_v62 }
 0x87b   :  { %v3535_v28 = vmul.f32 %v3511_v29, %v9392_v49 }
 0x87c   :  { %v3665_v13 = vsel %vm3664_vm11, %v5532_v45, %v3661_v31  ;;  %v8500_v36 = vmul.f32 0.70710677, %v8495_v35  ;;  %v3929_v12 = vmul.f32 %v3928_v30, %v8484_v25  ;;  %v3940_v57 = vmul.f32 %v3939_v23, %v8484_v25 }
 0x87d   :  { %v8504_v55 = vadd.f32 1e-05, %v3535_v28  ;;  %v3726_v51 = vmul.f32 %v3665_v13, %v8394_v58 }
 0x87e   :  { %v3963_v33 = vmul.f32 %v8500_v36, %v8500_v36  ;;  %v3930_v63 = vadd.f32 0.05243302, %v3929_v12  ;;  %v3941_v43 = vadd.f32 0.112945676, %v3940_v57 }
 0x87f   :  { %5533 = vrsqrt.f32 %v8504_v55  ;;  %v3745_v4 = vmul.f32 %v8357_v15, %v3726_v51  ;;  %vm3672_vm12 = vweird.f32 %v8504_v55 }
 0x880   :  { %v8511_v45 = vmin.f32 %v3963_v33, 16.0  ;;  %v3931_v10 = vmul.f32 %v3930_v63, %v8484_v25  ;;  %v3942_v8 = vmul.f32 %v3941_v43, %v8484_v25 }
 0x881   :  { %v3849_v54 = vpop.f32.mrf.mxu3  ;;  %4985 = vmatmul.msk.f32.gmra.mxu3 %vm62_vm0, %v3763_v2  ;;  %v3764_v23 = vadd.f32 %v8362_v39, %v3745_v4  ;;  %v4597_v4 = vld [vmem:[%s9080_s11 + $0x10] sm:$0xff] }
 0x882   :  { %v3965_v27 = vmul.f32 2.1237322e-06, %v8511_v45  ;;  %v3976_v18 = vmul.f32 3.8918573e-05, %v8511_v45  ;;  %v8519_v16 = vadd.f32 %v8468_v1, %v3849_v54  ;;  %v3514_v58 = vpop.xlane.xlu2 %3513  ;;  %v3943_v21 = vadd.f32 0.4994258, %v3942_v8 }
 0x883   :  { %v3536_v44 = vmul.f32 %v3514_v58, %v9392_v49  ;;  %v3932_v32 = vadd.f32 0.18741608, %v3931_v10  ;;  %v8558_v58 = vmul.f32 0.5, %v8476_v38 }
 0x884   :  { %v3966_v47 = vadd.f32 0.00028619796, %v3965_v27  ;;  %v3977_v11 = vadd.f32 0.001143296, %v3976_v18  ;;  %v3944_v20 = vmul.f32 %v3943_v21, %v8484_v25  ;;  %v8527_v14 = vmul.f32 0.70710677, %v8519_v16 }
 0x885   :  { %v8523_v26 = vpop.eup %5533  ;;  %v8529_v62 = vadd.f32 1e-05, %v3536_v44  ;;  %v3933_v28 = vmul.f32 %v3932_v32, %v8484_v25  ;;  %v4598_v25 = vld [vmem:[%s9080_s11 + $0x18] sm:$0xff] }
 0x886   :  { %v3967_v19 = vmul.f32 %v3966_v47, %v8511_v45  ;;  %v3978_v31 = vmul.f32 %v3977_v11, %v8511_v45  ;;  %v3667_v29 = vmul.f32 %v8523_v26, %v8504_v55  ;;  %v8535_v42 = vadd.f32 1.0, %v3944_v20  ;;  %4663 = vmatpush.msra.mxu0 %v4598_v25 }
 0x887   :  { %v4003_v30 = vmul.f32 %v8527_v14, %v8527_v14  ;;  %5535 = vrsqrt.f32 %v8529_v62  ;;  %v3934_v8 = vadd.f32 1.1283791, %v3933_v28  ;;  %vm3673_vm13 = vweird.f32 %v8523_v26 }
 0x888   :  { %v3968_v13 = vadd.f32 0.0036580483, %v3967_v19  ;;  %v3979_v12 = vadd.f32 0.014752088, %v3978_v31  ;;  %v3668_v57 = vmul.f32 %v8523_v26, %v3667_v29  ;;  %5537 = vrcp.f32 %v8535_v42  ;;  %4664 = vmatpush.msra.mxu0 %v4597_v4  ;;  %vm8602_vm2 = vmor %vm3672_vm12, %vm3673_vm13 }
 0x889   :  { %v3852_v33 = vpop.f32.mrf.mxu3  ;;  %4986 = vmatmul.msk.f32.gmra.mxu3 %vm62_vm0, %v3764_v23  ;;  %v8547_v43 = vmin.f32 %v4003_v30, 16.0  ;;  %v3935_v30 = vmul.f32 %v3934_v8, %v8479_v37  ;;  %v3955_v28 = vand.u32 2147483647, %v8535_v42  ;;  %vm3951_vm14 = vweird.f32 %v8535_v42 }
 0x88a   :  { %v3969_v2 = vmul.f32 %v3968_v13, %v8511_v45  ;;  %v3980_v51 = vmul.f32 %v3979_v12, %v8511_v45  ;;  %v3669_v63 = vmul.f32 0.5, %v3668_v57  ;;  %v8550_v10 = vadd.f32 %v8468_v1, %v3852_v33  ;;  %v4596_v12 = vld [vmem:[%s9080_s11 + $0x8] sm:$0xff] }
 0x88b   :  { %v4005_v21 = vmul.f32 2.1237322e-06, %v8547_v43  ;;  %v4016_v44 = vmul.f32 3.8918573e-05, %v8547_v43  ;;  %v3957_v57 = vand.u32 2147483648, %v8535_v42  ;;  %4665 = vmatpush.msra.mxu0 %v4596_v12  ;;  %vm8594_vm1 = vcmp.eq.f32.partialorder %v3955_v28, 8.507059e+37 }
 0x88c   :  { %v3970_v54 = vadd.f32 0.05243302, %v3969_v2  ;;  %v3981_v27 = vadd.f32 0.112945676, %v3980_v51  ;;  %v3670_v11 = vsub.f32 1.5, %v3669_v63  ;;  %vm3682_vm4 = vweird.f32 %v8529_v62 }
 0x88d   :  { %v8555_v18 = vpop.eup %5535  ;;  %v4006_v19 = vadd.f32 0.00028619796, %v4005_v21  ;;  %v4017_v31 = vadd.f32 0.001143296, %v4016_v44  ;;  %v8572_v29 = vmul.f32 0.70710677, %v8550_v10 }
 0x88e   :  { %v3971_v32 = vmul.f32 %v3970_v54, %v8511_v45  ;;  %v3982_v47 = vmul.f32 %v3981_v27, %v8511_v45  ;;  %v3677_v20 = vmul.f32 %v8555_v18, %v8529_v62  ;;  %v5538_v38 = vpop.eup %5537  ;;  %v3671_v8 = vmul.f32 %v8523_v26, %v3670_v11  ;;  %v4595_v54 = vld [vmem:[%s9080_s11] sm:$0xff] }
 0x88f   :  { %v3947_v23 = vmul.f32 %v5538_v38, %v8535_v42  ;;  %v4007_v33 = vmul.f32 %v4006_v19, %v8547_v43  ;;  %v4018_v2 = vmul.f32 %v4017_v31, %v8547_v43  ;;  %v4043_v4 = vmul.f32 %v8572_v29, %v8572_v29  ;;  %4666 = vmatpush.msra.mxu0 %v4595_v54 }
 0x890   :  { %v3983_v13 = vadd.f32 0.4994258, %v3982_v47  ;;  %v3678_v51 = vmul.f32 %v8555_v18, %v3677_v20  ;;  %v3972_v37 = vadd.f32 0.18741608, %v3971_v32  ;;  %vm3952_vm15 = vweird.f32 %v5538_v38  ;;  %v3517_v20 = vpop.xlane.xlu1 %3516 }
 0x891   :  { %v3948_v63 = vsub.f32 1.0, %v3947_v23  ;;  %v4008_v27 = vadd.f32 0.0036580483, %v4007_v33  ;;  %v4019_v21 = vadd.f32 0.014752088, %v4018_v2  ;;  %v8608_v23 = vmin.f32 %v4043_v4, 16.0  ;;  %vm3953_vm3 = vmor %vm3951_vm14, %vm3952_vm15 }
 0x892   :  { %v3984_v25 = vmul.f32 %v3983_v13, %v8511_v45  ;;  %v3679_v44 = vmul.f32 0.5, %v3678_v51  ;;  %v3958_v12 = vor.u32 1.1754944e-38, %v3957_v57  ;;  %v3675_v28 = vsel %vm8602_vm2, %v8523_v26, %v3671_v8  ;;  %v3855_v8 = vpop.f32.mrf.mxu3 }
 0x893   :  { %v3949_v47 = vmul.f32 %v5538_v38, %v3948_v63  ;;  %v4009_v31 = vmul.f32 %v4008_v27, %v8547_v43  ;;  %v4020_v42 = vmul.f32 %v4019_v21, %v8547_v43  ;;  %v3973_v55 = vmul.f32 %v3972_v37, %v8511_v45 }
 0x894   :  { %v8592_v32 = vadd.f32 1.0, %v3984_v25  ;;  %v3680_v2 = vsub.f32 1.5, %v3679_v44  ;;  %v3537_v51 = vmul.f32 %v3517_v20, %v9392_v49  ;;  %v4045_v54 = vmul.f32 2.1237322e-06, %v8608_v23 }
 0x895   :  { %v3950_v13 = vadd.f32 %v5538_v38, %v3949_v47  ;;  %v4010_v33 = vadd.f32 0.05243302, %v4009_v31  ;;  %v4021_v25 = vadd.f32 0.112945676, %v4020_v42  ;;  %v4056_v27 = vmul.f32 3.8918573e-05, %v8608_v23 }
 0x896   :  { %5539 = vrcp.f32 %v8592_v32  ;;  %vm3683_vm5 = vweird.f32 %v8555_v18  ;;  %v3727_v26 = vmul.f32 %v3675_v28, %v8415_v22  ;;  %v3974_v44 = vadd.f32 1.1283791, %v3973_v55 }
 0x897   :  { %v3954_v63 = vsel %vm3953_vm3, %v5538_v38, %v3950_v13  ;;  %v4011_v21 = vmul.f32 %v4010_v33, %v8547_v43  ;;  %v4022_v37 = vmul.f32 %v4021_v25, %v8547_v43  ;;  %v4046_v38 = vadd.f32 0.00028619796, %v4045_v54  ;;  %vm8640_vm6 = vmor %vm3682_vm4, %vm3683_vm5 }
 0x898   :  { %v3959_v57 = vsel %vm8594_vm1, %v3958_v12, %v3954_v63  ;;  %v3681_v4 = vmul.f32 %v8555_v18, %v3680_v2  ;;  %v4057_v47 = vadd.f32 0.001143296, %v4056_v27  ;;  %v8626_v20 = vadd.f32 1e-05, %v3537_v51 }
 0x899   :  { %v3960_v45 = vmul.f32 %v3959_v57, %v3935_v30  ;;  %v4012_v31 = vadd.f32 0.18741608, %v4011_v21  ;;  %v4023_v42 = vadd.f32 0.4994258, %v4022_v37  ;;  %v4047_v13 = vmul.f32 %v4046_v38, %v8608_v23 }
 0x89a   :  { %v3995_v22 = vand.u32 2147483647, %v8592_v32  ;;  %v4058_v12 = vmul.f32 %v4057_v47, %v8608_v23  ;;  %v8633_v28 = vadd.f32 %v8468_v1, %v3855_v8  ;;  %5541 = vrsqrt.f32 %v8626_v20 }
 0x89b   :  { %v4992_v19 = vclamps-f32 %v3960_v45, 1.0  ;;  %v4024_v33 = vmul.f32 %v4023_v42, %v8547_v43  ;;  %v4048_v51 = vadd.f32 0.0036580483, %v4047_v13  ;;  %v3997_v25 = vand.u32 2147483648, %v8592_v32  ;;  %v3858_v13 = vpop.f32.mrf.mxu3 }
 0x89c   :  { %v5540_v11 = vpop.eup %5539  ;;  %v3685_v54 = vsel %vm8640_vm6, %v8555_v18, %v3681_v4  ;;  %v4059_v27 = vadd.f32 0.014752088, %v4058_v12  ;;  %v4013_v21 = vmul.f32 %v4012_v31, %v8547_v43  ;;  %v8656_v8 = vmul.f32 0.70710677, %v8633_v28 }
 0x89d   :  { %v3987_v30 = vmul.f32 %v5540_v11, %v8592_v32  ;;  %v4563_v55 = vadd.f32 1.0, %v4992_v19  ;;  %v8651_v62 = vadd.f32 1.0, %v4024_v33  ;;  %v4049_v45 = vmul.f32 %v4048_v51, %v8608_v23 }
 0x89e   :  { %vm3992_vm7 = vweird.f32 %v5540_v11  ;;  %v4060_v38 = vmul.f32 %v4059_v27, %v8608_v23  ;;  %v3975_v47 = vmul.f32 %v3974_v44, %v8500_v36  ;;  %vm3991_vm8 = vweird.f32 %v8592_v32 }
 0x89f   :  { %v3988_v63 = vsub.f32 1.0, %v3987_v30  ;;  %v4579_v57 = vmul.f32 %v4563_v55, %v8558_v58  ;;  %vm8660_vm9 = vcmp.eq.f32.partialorder %v3995_v22, 8.507059e+37  ;;  %5543 = vrcp.f32 %v8651_v62  ;;  %vm3993_vm10 = vmor %vm3991_vm8, %vm3992_vm7 }
 0x8a0   :  { %v4050_v58 = vadd.f32 0.05243302, %v4049_v45  ;;  %v4061_v4 = vadd.f32 0.112945676, %v4060_v38  ;;  %v4083_v19 = vmul.f32 %v8656_v8, %v8656_v8  ;;  %v8668_v31 = vpop.eup %5541  ;;  %v3998_v36 = vor.u32 1.1754944e-38, %v3997_v25 }
 0x8a1   :  { %v3989_v37 = vmul.f32 %v5540_v11, %v3988_v63  ;;  %5008 = vmatmul.msk.f32.vlgmr.msra.gmra.mxu0 %vm62_vm0, %v4579_v57  ;;  %v4014_v44 = vadd.f32 1.1283791, %v4013_v21  ;;  %v3728_v32 = vmul.f32 %v3685_v54, %v8426_v0  ;;  %v3746_v42 = vmul.f32 %v8357_v15, %v3727_v26 }
 0x8a2   :  { %v4051_v22 = vmul.f32 %v4050_v58, %v8608_v23  ;;  %v4062_v12 = vmul.f32 %v4061_v4, %v8608_v23  ;;  %v3687_v55 = vmul.f32 %v8668_v31, %v8626_v20  ;;  %v4035_v2 = vand.u32 2147483647, %v8651_v62 }
 0x8a3   :  { %v3990_v43 = vadd.f32 %v5540_v11, %v3989_v37  ;;  %v8679_v51 = vmin.f32 %v4083_v19, 16.0  ;;  %v3765_v0 = vadd.f32 %v8362_v39, %v3746_v42  ;;  %v8684_v25 = vadd.f32 %v8468_v1, %v3858_v13 }
 0x8a4   :  { %v4063_v26 = vadd.f32 0.4994258, %v4062_v12  ;;  %v3892_v27 = vmul.f32 0.5, %v8495_v35  ;;  %v4037_v57 = vand.u32 2147483648, %v8651_v62  ;;  %vm3693_vm11 = vweird.f32 %v8668_v31 }
 0x8a5   :  { %v3994_v30 = vsel %vm3993_vm10, %v5540_v11, %v3990_v43  ;;  %v3688_v11 = vmul.f32 %v8668_v31, %v3687_v55  ;;  %v5544_v54 = vpop.eup %5543  ;;  %v4085_v21 = vmul.f32 2.1237322e-06, %v8679_v51  ;;  %v4096_v45 = vmul.f32 3.8918573e-05, %v8679_v51  ;;  %4987 = vmatmul.msk.f32.gmra.mxu3 %vm62_vm0, %v3765_v0 }
 0x8a6   :  { %v3999_v33 = vsel %vm8660_vm9, %v3998_v36, %v3994_v30  ;;  %v4027_v38 = vmul.f32 %v5544_v54, %v8651_v62  ;;  %v4064_v18 = vmul.f32 %v4063_v26, %v8608_v23  ;;  %v8695_v36 = vmul.f32 0.70710677, %v8684_v25 }
 0x8a7   :  { %v4000_v63 = vmul.f32 %v3999_v33, %v3975_v47  ;;  %v4052_v47 = vadd.f32 0.18741608, %v4051_v22  ;;  %v3689_v43 = vmul.f32 0.5, %v3688_v11  ;;  %v4086_v58 = vadd.f32 0.00028619796, %v4085_v21 }
 0x8a8   :  { %v4097_v4 = vadd.f32 0.001143296, %v4096_v45  ;;  %v4028_v19 = vsub.f32 1.0, %v4027_v38  ;;  %v3747_v42 = vmul.f32 %v8357_v15, %v3728_v32  ;;  %v8698_v13 = vadd.f32 1.0, %v4064_v18 }
 0x8a9   :  { %v4993_v37 = vclamps-f32 %v4000_v63, 1.0  ;;  %v3690_v30 = vsub.f32 1.5, %v3689_v43  ;;  %v4087_v12 = vmul.f32 %v4086_v58, %v8679_v51  ;;  %vm4032_vm12 = vweird.f32 %v5544_v54 }
 0x8aa   :  { %v4098_v22 = vmul.f32 %v4097_v4, %v8679_v51  ;;  %v4029_v33 = vmul.f32 %v5544_v54, %v4028_v19  ;;  %v4123_v0 = vmul.f32 %v8695_v36, %v8695_v36  ;;  %v4015_v63 = vmul.f32 %v4014_v44, %v8527_v14  ;;  %v3861_v44 = vpop.f32.mrf.mxu3 }
 0x8ab   :  { %v4564_v35 = vadd.f32 1.0, %v4993_v37  ;;  %vm4031_vm13 = vweird.f32 %v8651_v62  ;;  %5545 = vrcp.f32 %v8698_v13  ;;  %vm3692_vm14 = vweird.f32 %v8626_v20 }
 0x8ac   :  { %v4030_v32 = vadd.f32 %v5544_v54, %v4029_v33  ;;  %v3691_v26 = vmul.f32 %v8668_v31, %v3690_v30  ;;  %vm3694_vm15 = vmor %vm3692_vm14, %vm3693_vm11  ;;  %v4088_v11 = vadd.f32 0.0036580483, %v4087_v12  ;;  %vm4036_vm2 = vcmp.eq.f32.partialorder %v4035_v2, 8.507059e+37 }
 0x8ad   :  { %v4580_v55 = vmul.f32 %v4564_v35, %v3892_v27  ;;  %v4099_v27 = vadd.f32 0.014752088, %v4098_v22  ;;  %vm4033_vm1 = vmor %vm4031_vm13, %vm4032_vm12  ;;  %v4038_v21 = vor.u32 1.1754944e-38, %v4037_v57  ;;  %v8712_v14 = vmin.f32 %v4123_v0, 16.0 }
 0x8ae   :  { %v3766_v62 = vadd.f32 %v8362_v39, %v3747_v42  ;;  %v4034_v45 = vsel %vm4033_vm1, %v5544_v54, %v4030_v32  ;;  %v4053_v20 = vmul.f32 %v4052_v47, %v8608_v23  ;;  %v3695_v37 = vsel %vm3694_vm15, %v8668_v31, %v3691_v26 }
 0x8af   :  { %5009 = vmatmul.msk.f32.gmra.mxu0 %vm62_vm0, %v4580_v55  ;;  %v4100_v38 = vmul.f32 %v4099_v27, %v8679_v51  ;;  %v4039_v18 = vsel %vm4036_vm2, %v4038_v21, %v4034_v45  ;;  %v3729_v43 = vmul.f32 %v3695_v37, %v8439_v7  ;;  %v4125_v58 = vmul.f32 2.1237322e-06, %v8712_v14 }
 0x8b0   :  { %v4136_v2 = vmul.f32 3.8918573e-05, %v8712_v14  ;;  %4988 = vmatmul.msk.f32.gmra.mxu3 %vm62_vm0, %v3766_v62  ;;  %v4040_v57 = vmul.f32 %v4039_v18, %v4015_v63  ;;  %v4089_v4 = vmul.f32 %v4088_v11, %v8679_v51  ;;  %v8724_v54 = vadd.f32 %v8468_v1, %v3861_v44 }
 0x8b1   :  { %v4101_v35 = vadd.f32 0.112945676, %v4100_v38  ;;  %v5546_v23 = vpop.eup %5545  ;;  %v3893_v31 = vmul.f32 0.5, %v8519_v16  ;;  %v4126_v47 = vadd.f32 0.00028619796, %v4125_v58  ;;  %v3748_v7 = vmul.f32 %v8357_v15, %v3729_v43 }
 0x8b2   :  { %v4137_v19 = vadd.f32 0.001143296, %v4136_v2  ;;  %v4994_v42 = vclamps-f32 %v4040_v57, 1.0  ;;  %v4054_v30 = vadd.f32 1.1283791, %v4053_v20  ;;  %v4067_v12 = vmul.f32 %v5546_v23, %v8698_v13 }
 0x8b3   :  { %v4075_v22 = vand.u32 2147483647, %v8698_v13  ;;  %v4077_v55 = vand.u32 2147483648, %v8698_v13  ;;  %v4102_v33 = vmul.f32 %v4101_v35, %v8679_v51  ;;  %v4127_v0 = vmul.f32 %v4126_v47, %v8712_v14 }
 0x8b4   :  { %v4138_v63 = vmul.f32 %v4137_v19, %v8712_v14  ;;  %v4565_v32 = vadd.f32 1.0, %v4994_v42  ;;  %v4068_v16 = vsub.f32 1.0, %v4067_v12  ;;  %v4090_v26 = vadd.f32 0.05243302, %v4089_v4 }
 0x8b5   :  { %v8735_v11 = vmul.f32 0.70710677, %v8724_v54  ;;  %vm4072_vm3 = vweird.f32 %v5546_v23  ;;  %v4103_v15 = vadd.f32 0.4994258, %v4102_v33  ;;  %v3767_v21 = vadd.f32 %v8362_v39, %v3748_v7 }
 0x8b6   :  { %v4139_v27 = vadd.f32 0.014752088, %v4138_v63  ;;  %v4581_v62 = vmul.f32 %v4565_v32, %v3893_v31  ;;  %v4069_v44 = vmul.f32 %v5546_v23, %v4068_v16  ;;  %v4128_v45 = vadd.f32 0.0036580483, %v4127_v0 }
 0x8b7   :  { %v4163_v20 = vmul.f32 %v8735_v11, %v8735_v11  ;;  %v4055_v37 = vmul.f32 %v4054_v30, %v8572_v29  ;;  %v4104_v38 = vmul.f32 %v4103_v15, %v8679_v51  ;;  %vm4071_vm4 = vweird.f32 %v8698_v13 }
 0x8b8   :  { %v4140_v18 = vmul.f32 %v4139_v27, %v8712_v14  ;;  %4989 = vmatmul.msk.f32.gmra.mxu3 %vm62_vm0, %v3767_v21  ;;  %v4070_v43 = vadd.f32 %v5546_v23, %v4069_v44  ;;  %vm4076_vm5 = vcmp.eq.f32.partialorder %v4075_v22, 8.507059e+37  ;;  %5010 = vmatmul.msk.f32.gmra.mxu0 %vm62_vm0, %v4581_v62  ;;  %vm4073_vm6 = vmor %vm4071_vm4, %vm4072_vm3  ;;  %v4078_v39 = vor.u32 1.1754944e-38, %v4077_v55 }
 0x8b9   :  { %v8745_v58 = vmin.f32 %v4163_v20, 16.0  ;;  %v4091_v2 = vmul.f32 %v4090_v26, %v8679_v51  ;;  %v4105_v29 = vadd.f32 1.0, %v4104_v38  ;;  %v4129_v35 = vmul.f32 %v4128_v45, %v8712_v14 }
 0x8ba   :  { %v4141_v57 = vadd.f32 0.112945676, %v4140_v18  ;;  %v4074_v4 = vsel %vm4073_vm6, %v5546_v23, %v4070_v43  ;;  %v3894_v63 = vmul.f32 0.5, %v8550_v10 }
 0x8bb   :  { %v4165_v31 = vmul.f32 2.1237322e-06, %v8745_v58  ;;  %v4176_v47 = vmul.f32 3.8918573e-05, %v8745_v58  ;;  %v4079_v13 = vsel %vm4076_vm5, %v4078_v39, %v4074_v4  ;;  %5547 = vrcp.f32 %v4105_v29 }
 0x8bc   :  { %v4080_v19 = vmul.f32 %v4079_v13, %v4055_v37  ;;  %v4142_v7 = vmul.f32 %v4141_v57, %v8712_v14  ;;  %v4092_v42 = vadd.f32 0.18741608, %v4091_v2  ;;  %v4130_v55 = vadd.f32 0.05243302, %v4129_v35 }
 0x8bd   :  { %v4166_v30 = vadd.f32 0.00028619796, %v4165_v31  ;;  %v4177_v12 = vadd.f32 0.001143296, %v4176_v47  ;;  %v4115_v10 = vand.u32 2147483647, %v4105_v29  ;;  %vm4111_vm8 = vweird.f32 %v4105_v29 }
 0x8be   :  { %v4995_v22 = vclamps-f32 %v4080_v19, 1.0  ;;  %v4143_v33 = vadd.f32 0.4994258, %v4142_v7  ;;  %v4093_v15 = vmul.f32 %v4092_v42, %v8679_v51  ;;  %v4131_v44 = vmul.f32 %v4130_v55, %v8712_v14 }
 0x8bf   :  { %v4167_v0 = vmul.f32 %v4166_v30, %v8745_v58  ;;  %v4178_v23 = vmul.f32 %v4177_v12, %v8745_v58  ;;  %v4117_v43 = vand.u32 2147483648, %v4105_v29  ;;  %vm4116_vm10 = vcmp.eq.f32.partialorder %v4115_v10, 8.507059e+37 }
 0x8c0   :  { %v4566_v32 = vadd.f32 1.0, %v4995_v22  ;;  %v4144_v16 = vmul.f32 %v4143_v33, %v8712_v14  ;;  %v4094_v18 = vadd.f32 1.1283791, %v4093_v15  ;;  %v4132_v2 = vadd.f32 0.18741608, %v4131_v44 }
 0x8c1   :  { %v5548_v26 = vpop.eup %5547  ;;  %v4179_v27 = vadd.f32 0.014752088, %v4178_v23  ;;  %v4168_v20 = vadd.f32 0.0036580483, %v4167_v0  ;;  %v4118_v47 = vor.u32 1.1754944e-38, %v4117_v43 }
 0x8c2   :  { %v4582_v21 = vmul.f32 %v4566_v32, %v3894_v63  ;;  %v4107_v62 = vmul.f32 %v5548_v26, %v4105_v29  ;;  %v4145_v45 = vadd.f32 1.0, %v4144_v16  ;;  %vm4112_vm7 = vweird.f32 %v5548_v26 }
 0x8c3   :  { %v4180_v37 = vmul.f32 %v4179_v27, %v8745_v58  ;;  %v4169_v57 = vmul.f32 %v4168_v20, %v8745_v58  ;;  %v4095_v31 = vmul.f32 %v4094_v18, %v8656_v8  ;;  %vm4113_vm9 = vmor %vm4111_vm8, %vm4112_vm7  ;;  %v4133_v19 = vmul.f32 %v4132_v2, %v8712_v14 }
 0x8c4   :  { %v4108_v38 = vsub.f32 1.0, %v4107_v62  ;;  %5011 = vmatmul.msk.f32.gmra.mxu0 %vm62_vm0, %v4582_v21  ;;  %5549 = vrcp.f32 %v4145_v45  ;;  %v3895_v29 = vmul.f32 0.5, %v8633_v28  ;;  %v4157_v32 = vand.u32 2147483648, %v4145_v45 }
 0x8c5   :  { %v4181_v51 = vadd.f32 0.112945676, %v4180_v37  ;;  %v4170_v12 = vadd.f32 0.05243302, %v4169_v57  ;;  %v4134_v23 = vadd.f32 1.1283791, %v4133_v19  ;;  %vm4151_vm12 = vweird.f32 %v4145_v45 }
 0x8c6   :  { %v4109_v39 = vmul.f32 %v5548_v26, %v4108_v38  ;;  %v4155_v21 = vand.u32 2147483647, %v4145_v45  ;;  %v4158_v28 = vor.u32 1.1754944e-38, %v4157_v32 }
 0x8c7   :  { %v4182_v35 = vmul.f32 %v4181_v51, %v8745_v58  ;;  %v4171_v16 = vmul.f32 %v4170_v12, %v8745_v58  ;;  %v4135_v38 = vmul.f32 %v4134_v23, %v8695_v36 }
 0x8c8   :  { %v4110_v4 = vadd.f32 %v5548_v26, %v4109_v39  ;;  %vm4156_vm14 = vcmp.eq.f32.partialorder %v4155_v21, 8.507059e+37 }
 0x8c9   :  { %v4183_v7 = vadd.f32 0.4994258, %v4182_v35  ;;  %v4172_v37 = vadd.f32 0.18741608, %v4171_v16 }
 0x8ca   :  { %v4114_v13 = vsel %vm4113_vm9, %v5548_v26, %v4110_v4  ;;  %v5550_v42 = vpop.eup %5549 }
 0x8cb   :  { %v4119_v30 = vsel %vm4116_vm10, %v4118_v47, %v4114_v13  ;;  %v4147_v55 = vmul.f32 %v5550_v42, %v4145_v45  ;;  %v4184_v33 = vmul.f32 %v4183_v7, %v8745_v58  ;;  %vm4152_vm11 = vweird.f32 %v5550_v42 }
 0x8cc   :  { %v4120_v22 = vmul.f32 %v4119_v30, %v4095_v31  ;;  %vm4153_vm13 = vmor %vm4151_vm12, %vm4152_vm11  ;;  %v4173_v2 = vmul.f32 %v4172_v37, %v8745_v58  ;;  %v3896_v45 = vmul.f32 0.5, %v8684_v25 }
 0x8cd   :  { %v4148_v63 = vsub.f32 1.0, %v4147_v55  ;;  %v4185_v26 = vadd.f32 1.0, %v4184_v33 }
 0x8ce   :  { %v4996_v0 = vclamps-f32 %v4120_v22, 1.0  ;;  %v4174_v47 = vadd.f32 1.1283791, %v4173_v2 }
 0x8cf   :  { %v4149_v27 = vmul.f32 %v5550_v42, %v4148_v63  ;;  %5551 = vrcp.f32 %v4185_v26  ;;  %v4197_v13 = vand.u32 2147483648, %v4185_v26  ;;  %vm4191_vm1 = vweird.f32 %v4185_v26 }
 0x8d0   :  { %v4567_v15 = vadd.f32 1.0, %v4996_v0 }
 0x8d1   :  { %v3520_v8 = vpop.xlane.xlu0 %3519  ;;  %v4150_v44 = vadd.f32 %v5550_v42, %v4149_v27  ;;  %v4198_v58 = vor.u32 1.1754944e-38, %v4197_v13 }
 0x8d2   :  { %v3538_v14 = vmul.f32 %v3520_v8, %v9392_v49  ;;  %v4583_v62 = vmul.f32 %v4567_v15, %v3895_v29  ;;  %v4175_v29 = vmul.f32 %v4174_v47, %v8735_v11 }
 0x8d3   :  { %v4154_v18 = vsel %vm4153_vm13, %v5550_v42, %v4150_v44  ;;  %v4195_v42 = vand.u32 2147483647, %v4185_v26 }
 0x8d4   :  { %v3554_v20 = vadd.f32 1e-05, %v3538_v14  ;;  %5012 = vmatmul.msk.f32.gmra.mxu0 %vm62_vm0, %v4583_v62  ;;  %v4159_v10 = vsel %vm4156_vm14, %v4158_v28, %v4154_v18  ;;  %v5591_v62 = vld [vmem:[%s9076_s7] ss:$0 sm:$0xff] }
 0x8d5   :  { %v4160_v43 = vmul.f32 %v4159_v10, %v4135_v38  ;;  %v5552_v39 = vpop.eup %5551  ;;  %vm4196_vm3 = vcmp.eq.f32.partialorder %v4195_v42, 8.507059e+37 }
 0x8d6   :  { %5553 = vrsqrt.f32 %v3554_v20  ;;  %v4187_v57 = vmul.f32 %v5552_v39, %v4185_v26  ;;  %vm4192_vm15 = vweird.f32 %v5552_v39  ;;  %vm3702_vm5 = vweird.f32 %v3554_v20 }
 0x8d7   :  { %v4997_v51 = vclamps-f32 %v4160_v43, 1.0  ;;  %vm4193_vm2 = vmor %vm4191_vm1, %vm4192_vm15  ;;  %v3897_v26 = vmul.f32 0.5, %v8724_v54 }
 0x8d8   :  { %v4188_v31 = vsub.f32 1.0, %v4187_v57 }
 0x8d9   :  { %v4568_v35 = vadd.f32 1.0, %v4997_v51 }
 0x8da   :  { %v4189_v7 = vmul.f32 %v5552_v39, %v4188_v31 }
 0x8db   :  { %v4584_v19 = vmul.f32 %v4568_v35, %v3896_v45 }
 0x8dc   :  { %v5554_v4 = vpop.eup %5553  ;;  %v4190_v55 = vadd.f32 %v5552_v39, %v4189_v7 }
 0x8dd   :  { %v3697_v36 = vmul.f32 %v5554_v4, %v3554_v20  ;;  %5013 = vmatmul.msk.f32.gmra.mxu0 %vm62_vm0, %v4584_v19  ;;  %vm3703_vm4 = vweird.f32 %v5554_v4  ;;  %v5592_v20 = vld [vmem:[%s9077_s8] ss:$0 sm:$0xff] }
 0x8de   :  { %v4194_v0 = vsel %vm4193_vm2, %v5552_v39, %v4190_v55  ;;  %vm3704_vm6 = vmor %vm3702_vm5, %vm3703_vm4 }
 0x8df   :  { %v3523_v30 = vpop.xlane.xlu2 %3522  ;;  %v3698_v12 = vmul.f32 %v5554_v4, %v3697_v36  ;;  %v4199_v23 = vsel %vm4196_vm3, %v4198_v58, %v4194_v0 }
 0x8e0   :  { %v3539_v22 = vmul.f32 %v3523_v30, %v9392_v49  ;;  %v4200_v8 = vmul.f32 %v4199_v23, %v4175_v29 }
 0x8e1   :  { %v3699_v25 = vmul.f32 0.5, %v3698_v12 }
 0x8e2   :  { %v3555_v33 = vadd.f32 1e-05, %v3539_v22  ;;  %v4998_v49 = vclamps-f32 %v4200_v8, 1.0 }
 0x8e3   :  { %v3700_v63 = vsub.f32 1.5, %v3699_v25 }
 0x8e4   :  { %5555 = vrsqrt.f32 %v3555_v33  ;;  %v4569_v14 = vadd.f32 1.0, %v4998_v49  ;;  %vm3712_vm8 = vweird.f32 %v3555_v33 }
 0x8e5   :  { %v3701_v32 = vmul.f32 %v5554_v4, %v3700_v63 }
 0x8e6   :  { %v4585_v21 = vmul.f32 %v4569_v14, %v3897_v26 }
 0x8e7   :  { %v3705_v16 = vsel %vm3704_vm6, %v5554_v4, %v3701_v32 }
 0x8e8   :  { %v3730_v15 = vmul.f32 %v3705_v16, %v8451_v24  ;;  %5014 = vmatmul.msk.f32.gmra.mxu0 %vm62_vm0, %v4585_v21 }
 0x8ea   :  { %v5556_v27 = vpop.eup %5555  ;;  %v3749_v44 = vmul.f32 %v5591_v62, %v3730_v15 }
 0x8eb   :  { %v3707_v11 = vmul.f32 %v5556_v27, %v3555_v33  ;;  %vm3713_vm7 = vweird.f32 %v5556_v27 }
 0x8ec   :  { %v3768_v37 = vadd.f32 %v5592_v20, %v3749_v44  ;;  %vm3714_vm9 = vmor %vm3712_vm8, %vm3713_vm7 }
 0x8ed   :  { %v3708_v28 = vmul.f32 %v5556_v27, %v3707_v11 }
 0x8ee   :  { %v3864_v54 = vpop.f32.mrf.mxu3  ;;  %4990 = vmatmul.msk.f32.gmra.mxu3 %vm62_vm0, %v3768_v37 }
 0x8ef   :  { %v3709_v38 = vmul.f32 0.5, %v3708_v28  ;;  %v8787_v24 = vadd.f32 %v8468_v1, %v3864_v54 }
 0x8f1   :  { %v3710_v18 = vsub.f32 1.5, %v3709_v38  ;;  %v8791_v10 = vmul.f32 0.70710677, %v8787_v24  ;;  %v8824_v38 = vld [vmem:[%s9079_s10] ss:$0 sm:$0xff] }
 0x8f3   :  { %v3711_v43 = vmul.f32 %v5556_v27, %v3710_v18  ;;  %v4203_v39 = vmul.f32 %v8791_v10, %v8791_v10 }
 0x8f5   :  { %v3715_v2 = vsel %vm3714_vm9, %v5556_v27, %v3711_v43  ;;  %v4204_v51 = vmin.f32 %v4203_v39, 16.0 }
 0x8f6   :  { %v3731_v57 = vmul.f32 %v3715_v2, %v8461_v53 }
 0x8f7   :  { %v4205_v4 = vmul.f32 2.1237322e-06, %v4204_v51  ;;  %v4216_v45 = vmul.f32 3.8918573e-05, %v4204_v51 }
 0x8f8   :  { %v3750_v35 = vmul.f32 %v5591_v62, %v3731_v57 }
 0x8f9   :  { %v4206_v31 = vadd.f32 0.00028619796, %v4205_v4  ;;  %v4217_v47 = vadd.f32 0.001143296, %v4216_v45 }
 0x8fa   :  { %v3769_v13 = vadd.f32 %v5592_v20, %v3750_v35 }
 0x8fb   :  { %v4207_v36 = vmul.f32 %v4206_v31, %v4204_v51  ;;  %v4218_v19 = vmul.f32 %v4217_v47, %v4204_v51 }
 0x8fc   :  { %v3867_v7 = vpop.f32.mrf.mxu3  ;;  %4991 = vmatmul.msk.f32.gmra.mxu3 %vm62_vm0, %v3769_v13 }
 0x8fd   :  { %v4208_v42 = vadd.f32 0.0036580483, %v4207_v36  ;;  %v4219_v30 = vadd.f32 0.014752088, %v4218_v19  ;;  %v8798_v12 = vadd.f32 %v8468_v1, %v3867_v7 }
 0x8ff   :  { %v4209_v22 = vmul.f32 %v4208_v42, %v4204_v51  ;;  %v4220_v55 = vmul.f32 %v4219_v30, %v4204_v51  ;;  %v8801_v53 = vmul.f32 0.70710677, %v8798_v12 }
 0x901   :  { %v4221_v58 = vadd.f32 0.112945676, %v4220_v55  ;;  %v4243_v25 = vmul.f32 %v8801_v53, %v8801_v53  ;;  %v4210_v33 = vadd.f32 0.05243302, %v4209_v22 }
 0x903   :  { %v4222_v29 = vmul.f32 %v4221_v58, %v4204_v51  ;;  %v8805_v0 = vmin.f32 %v4243_v25, 16.0  ;;  %v4211_v49 = vmul.f32 %v4210_v33, %v4204_v51 }
 0x904   :  { %v3870_v23 = vpop.f32.mrf.mxu3 }
 0x905   :  { %v4223_v63 = vadd.f32 0.4994258, %v4222_v29  ;;  %v4245_v8 = vmul.f32 2.1237322e-06, %v8805_v0  ;;  %v8809_v32 = vadd.f32 %v8468_v1, %v3870_v23  ;;  %v4256_v16 = vmul.f32 3.8918573e-05, %v8805_v0 }
 0x906   :  { %v4212_v62 = vadd.f32 0.18741608, %v4211_v49 }
 0x907   :  { %v4224_v26 = vmul.f32 %v4223_v63, %v4204_v51  ;;  %v4246_v14 = vadd.f32 0.00028619796, %v4245_v8  ;;  %v4257_v15 = vadd.f32 0.001143296, %v4256_v16  ;;  %v8813_v27 = vmul.f32 0.70710677, %v8809_v32 }
 0x908   :  { %v4213_v43 = vmul.f32 %v4212_v62, %v4204_v51 }
 0x909   :  { %v4225_v21 = vadd.f32 1.0, %v4224_v26  ;;  %v4247_v11 = vmul.f32 %v4246_v14, %v8805_v0  ;;  %v4258_v44 = vmul.f32 %v4257_v15, %v8805_v0  ;;  %v4283_v28 = vmul.f32 %v8813_v27, %v8813_v27 }
 0x90a   :  { %v4214_v19 = vadd.f32 1.1283791, %v4213_v43 }
 0x90b   :  { %5557 = vrcp.f32 %v4225_v21  ;;  %v4248_v1 = vadd.f32 0.0036580483, %v4247_v11  ;;  %v4259_v20 = vadd.f32 0.014752088, %v4258_v44  ;;  %v8819_v37 = vmin.f32 %v4283_v28, 16.0 }
 0x90c   :  { %v3873_v54 = vpop.f32.mrf.mxu3  ;;  %v4235_v42 = vand.u32 2147483647, %v4225_v21  ;;  %v4237_v25 = vand.u32 2147483648, %v4225_v21  ;;  %vm4231_vm11 = vweird.f32 %v4225_v21 }
 0x90d   :  { %v8827_v18 = vadd.f32 %v8824_v38, %v3873_v54  ;;  %v4260_v39 = vmul.f32 %v4259_v20, %v8805_v0  ;;  %v4285_v2 = vmul.f32 2.1237322e-06, %v8819_v37  ;;  %v4296_v57 = vmul.f32 3.8918573e-05, %v8819_v37 }
 0x90e   :  { %v4249_v45 = vmul.f32 %v4248_v1, %v8805_v0  ;;  %v4238_v1 = vor.u32 1.1754944e-38, %v4237_v25  ;;  %vm4236_vm13 = vcmp.eq.f32.partialorder %v4235_v42, 8.507059e+37 }
 0x90f   :  { %v8833_v4 = vmul.f32 0.70710677, %v8827_v18  ;;  %v4261_v35 = vadd.f32 0.112945676, %v4260_v39  ;;  %v4286_v31 = vadd.f32 0.00028619796, %v4285_v2  ;;  %v4215_v39 = vmul.f32 %v4214_v19, %v8791_v10 }
 0x910   :  { %v4297_v13 = vadd.f32 0.001143296, %v4296_v57  ;;  %v4250_v33 = vadd.f32 0.05243302, %v4249_v45 }
 0x911   :  { %v5558_v47 = vpop.eup %5557  ;;  %v4323_v36 = vmul.f32 %v8833_v4, %v8833_v4  ;;  %v4262_v7 = vmul.f32 %v4261_v35, %v8805_v0  ;;  %v4287_v30 = vmul.f32 %v4286_v31, %v8819_v37 }
 0x912   :  { %v4227_v51 = vmul.f32 %v5558_v47, %v4225_v21  ;;  %v4298_v22 = vmul.f32 %v4297_v13, %v8819_v37  ;;  %vm4232_vm10 = vweird.f32 %v5558_v47  ;;  %v4251_v62 = vmul.f32 %v4250_v33, %v8805_v0 }
 0x913   :  { %v8841_v55 = vmin.f32 %v4323_v36, 16.0  ;;  %v4263_v29 = vadd.f32 0.4994258, %v4262_v7  ;;  %v4288_v23 = vadd.f32 0.0036580483, %v4287_v30  ;;  %vm4233_vm12 = vmor %vm4231_vm11, %vm4232_vm10 }
 0x914   :  { %v4228_v58 = vsub.f32 1.0, %v4227_v51  ;;  %v4299_v63 = vadd.f32 0.014752088, %v4298_v22  ;;  %v4252_v45 = vadd.f32 0.18741608, %v4251_v62 }
 0x915   :  { %v4325_v8 = vmul.f32 2.1237322e-06, %v8841_v55  ;;  %v4264_v16 = vmul.f32 %v4263_v29, %v8805_v0  ;;  %v4336_v26 = vmul.f32 3.8918573e-05, %v8841_v55  ;;  %v4289_v20 = vmul.f32 %v4288_v23, %v8819_v37  ;;  %v8856_v51 = vld [vmem:[%s9081_s12] ss:$0 sm:$0xff] }
 0x916   :  { %v4229_v49 = vmul.f32 %v5558_v47, %v4228_v58  ;;  %v4300_v14 = vmul.f32 %v4299_v63, %v8819_v37  ;;  %v4253_v58 = vmul.f32 %v4252_v45, %v8805_v0 }
 0x917   :  { %v4326_v15 = vadd.f32 0.00028619796, %v4325_v8  ;;  %v4265_v44 = vadd.f32 1.0, %v4264_v16  ;;  %v4337_v28 = vadd.f32 0.001143296, %v4336_v26 }
 0x918   :  { %v4230_v11 = vadd.f32 %v5558_v47, %v4229_v49  ;;  %v4301_v54 = vadd.f32 0.112945676, %v4300_v14  ;;  %v4290_v13 = vadd.f32 0.05243302, %v4289_v20 }
 0x919   :  { %v4327_v43 = vmul.f32 %v4326_v15, %v8841_v55  ;;  %5559 = vrcp.f32 %v4265_v44  ;;  %v4338_v31 = vmul.f32 %v4337_v28, %v8841_v55  ;;  %v4254_v15 = vadd.f32 1.1283791, %v4253_v58 }
 0x91a   :  { %v4234_v2 = vsel %vm4233_vm12, %v5558_v47, %v4230_v11  ;;  %v4302_v35 = vmul.f32 %v4301_v54, %v8819_v37  ;;  %v3898_v47 = vmul.f32 0.5, %v8787_v24  ;;  %v4291_v23 = vmul.f32 %v4290_v13, %v8819_v37 }
 0x91b   :  { %v4239_v21 = vsel %vm4236_vm13, %v4238_v1, %v4234_v2  ;;  %v4328_v36 = vadd.f32 0.0036580483, %v4327_v43  ;;  %v4339_v10 = vadd.f32 0.014752088, %v4338_v31  ;;  %v4275_v11 = vand.u32 2147483647, %v4265_v44 }
 0x91c   :  { %v4240_v57 = vmul.f32 %v4239_v21, %v4215_v39  ;;  %v4303_v30 = vadd.f32 0.4994258, %v4302_v35  ;;  %v4277_v0 = vand.u32 2147483648, %v4265_v44  ;;  %v4292_v28 = vadd.f32 0.18741608, %v4291_v23 }
 0x91d   :  { %v4340_v33 = vmul.f32 %v4339_v10, %v8841_v55  ;;  %v4329_v16 = vmul.f32 %v4328_v36, %v8841_v55  ;;  %vm4271_vm15 = vweird.f32 %v4265_v44  ;;  %v4255_v43 = vmul.f32 %v4254_v15, %v8801_v53 }
 0x91e   :  { %v4999_v7 = vclamps-f32 %v4240_v57, 1.0  ;;  %v4668_v19 = vpop.f32.mrf.mxu0  ;;  %v4304_v25 = vmul.f32 %v4303_v30, %v8819_v37  ;;  %v4278_v39 = vor.u32 1.1754944e-38, %v4277_v0  ;;  %vm4276_vm2 = vcmp.eq.f32.partialorder %v4275_v11, 8.507059e+37 }
 0x91f   :  { %v5560_v42 = vpop.eup %5559  ;;  %v4669_v63 = vadd.f32 %v8856_v51, %v4668_v19  ;;  %v4341_v26 = vadd.f32 0.112945676, %v4340_v33  ;;  %v4330_v20 = vadd.f32 0.05243302, %v4329_v16  ;;  %v4293_v21 = vmul.f32 %v4292_v28, %v8819_v37 }
 0x920   :  { %v4570_v22 = vadd.f32 1.0, %v4999_v7  ;;  %v4267_v29 = vmul.f32 %v5560_v42, %v4265_v44  ;;  %v4305_v49 = vadd.f32 1.0, %v4304_v25  ;;  %vm4272_vm14 = vweird.f32 %v5560_v42 }
 0x921   :  { %v4716_v14 = vadd.f32 %v4669_v63, %v8134_v41  ;;  %v4342_v1 = vmul.f32 %v4341_v26, %v8841_v55  ;;  %vm4273_vm1 = vmor %vm4271_vm15, %vm4272_vm14  ;;  %v4331_v31 = vmul.f32 %v4330_v20, %v8841_v55  ;;  %v3899_v44 = vmul.f32 0.5, %v8798_v12 }
 0x922   :  { %v4586_v8 = vmul.f32 %v4570_v22, %v3898_v47  ;;  %v4268_v24 = vsub.f32 1.0, %v4267_v29  ;;  %5561 = vrcp.f32 %v4305_v49  ;;  %v4294_v19 = vadd.f32 1.1283791, %v4293_v21 }
 0x923   :  { %4732 = vst.msk [vmem:[%s9082_s13] sm:$0xff] %vm62_vm0, %v4716_v14  ;;  %v4343_v41 = vadd.f32 0.4994258, %v4342_v1  ;;  %v4315_v22 = vand.u32 2147483647, %v4305_v49  ;;  %v4317_v58 = vand.u32 2147483648, %v4305_v49  ;;  %vm4311_vm4 = vweird.f32 %v4305_v49 }
 0x924   :  { %5015 = vmatmul.msk.f32.gmra.mxu0 %vm62_vm0, %v4586_v8  ;;  %v4269_v62 = vmul.f32 %v5560_v42, %v4268_v24  ;;  %v4332_v25 = vadd.f32 0.18741608, %v4331_v31  ;;  %v4295_v14 = vmul.f32 %v4294_v19, %v8813_v27  ;;  %v3900_v1 = vmul.f32 0.5, %v8809_v32 }
 0x925   :  { %v4344_v57 = vmul.f32 %v4343_v41, %v8841_v55  ;;  %v4318_v26 = vor.u32 1.1754944e-38, %v4317_v58  ;;  %vm4316_vm6 = vcmp.eq.f32.partialorder %v4315_v22, 8.507059e+37 }
 0x926   :  { %v4270_v54 = vadd.f32 %v5560_v42, %v4269_v62  ;;  %v4333_v24 = vmul.f32 %v4332_v25, %v8841_v55 }
 0x927   :  { %v8877_v30 = vadd.f32 1.0, %v4344_v57 }
 0x928   :  { %v4274_v2 = vsel %vm4273_vm1, %v5560_v42, %v4270_v54  ;;  %v5562_v45 = vpop.eup %5561  ;;  %v3876_v7 = vpop.f32.mrf.mxu3  ;;  %v4334_v20 = vadd.f32 1.1283791, %v4333_v24 }
 0x929   :  { %v4279_v35 = vsel %vm4276_vm2, %v4278_v39, %v4274_v2  ;;  %v4307_v36 = vmul.f32 %v5562_v45, %v4305_v49  ;;  %v8880_v53 = vadd.f32 %v8824_v38, %v3876_v7  ;;  %5563 = vrcp.f32 %v8877_v30 }
 0x92a   :  { %v4280_v13 = vmul.f32 %v4279_v35, %v4255_v43  ;;  %vm4312_vm3 = vweird.f32 %v5562_v45  ;;  %v4355_v39 = vand.u32 2147483647, %v8877_v30  ;;  %v4357_v21 = vand.u32 2147483648, %v8877_v30 }
 0x92b   :  { %v4308_v37 = vsub.f32 1.0, %v4307_v36  ;;  %v8885_v12 = vmul.f32 0.70710677, %v8880_v53  ;;  %vm4313_vm5 = vmor %vm4311_vm4, %vm4312_vm3  ;;  %vm4351_vm8 = vweird.f32 %v8877_v30  ;;  %v4335_v25 = vmul.f32 %v4334_v20, %v8833_v4 }
 0x92c   :  { %v4671_v10 = vpop.f32.mrf.mxu0  ;;  %v5000_v47 = vclamps-f32 %v4280_v13, 1.0  ;;  %vm4356_vm10 = vcmp.eq.f32.partialorder %v4355_v39, 8.507059e+37 }
 0x92d   :  { %v4672_v42 = vadd.f32 %v8856_v51, %v4671_v10  ;;  %v4309_v29 = vmul.f32 %v5562_v45, %v4308_v37  ;;  %v4363_v16 = vmul.f32 %v8885_v12, %v8885_v12  ;;  %v4358_v37 = vor.u32 1.1754944e-38, %v4357_v21 }
 0x92e   :  { %v4571_v33 = vadd.f32 1.0, %v5000_v47 }
 0x92f   :  { %v4717_v23 = vadd.f32 %v4672_v42, %v8146_v5  ;;  %v4310_v8 = vadd.f32 %v5562_v45, %v4309_v29  ;;  %v8896_v5 = vmin.f32 %v4363_v16, 16.0  ;;  %v5564_v49 = vpop.eup %5563 }
 0x930   :  { %v4587_v63 = vmul.f32 %v4571_v33, %v3899_v44  ;;  %v4347_v62 = vmul.f32 %v5564_v49, %v8877_v30  ;;  %vm4352_vm7 = vweird.f32 %v5564_v49 }
 0x931   :  { %4733 = vst.msk [vmem:[%s9082_s13 + $0x8] sm:$0xff] %vm62_vm0, %v4717_v23  ;;  %v4314_v15 = vsel %vm4313_vm5, %v5562_v45, %v4310_v8  ;;  %v4365_v55 = vmul.f32 2.1237322e-06, %v8896_v5  ;;  %v4376_v54 = vmul.f32 3.8918573e-05, %v8896_v5  ;;  %vm4353_vm9 = vmor %vm4351_vm8, %vm4352_vm7 }
 0x932   :  { %5016 = vmatmul.msk.f32.gmra.mxu0 %vm62_vm0, %v4587_v63  ;;  %v4319_v11 = vsel %vm4316_vm6, %v4318_v26, %v4314_v15  ;;  %v4348_v43 = vsub.f32 1.0, %v4347_v62 }
 0x933   :  { %v4320_v0 = vmul.f32 %v4319_v11, %v4295_v14  ;;  %v3879_v28 = vpop.f32.mrf.mxu3  ;;  %v4366_v2 = vadd.f32 0.00028619796, %v4365_v55  ;;  %v4377_v57 = vadd.f32 0.001143296, %v4376_v54  ;;  %v3901_v55 = vmul.f32 0.5, %v8827_v18 }
 0x934   :  { %v8904_v27 = vadd.f32 %v8824_v38, %v3879_v28  ;;  %v4349_v31 = vmul.f32 %v5564_v49, %v4348_v43 }
 0x935   :  { %v5001_v41 = vclamps-f32 %v4320_v0, 1.0  ;;  %v4674_v35 = vpop.f32.mrf.mxu0  ;;  %v4367_v13 = vmul.f32 %v4366_v2, %v8896_v5  ;;  %v4378_v7 = vmul.f32 %v4377_v57, %v8896_v5 }
 0x936   :  { %v8909_v45 = vmul.f32 0.70710677, %v8904_v27  ;;  %v4675_v36 = vadd.f32 %v8856_v51, %v4674_v35  ;;  %v4350_v47 = vadd.f32 %v5564_v49, %v4349_v31 }
 0x937   :  { %v4572_v32 = vadd.f32 1.0, %v5001_v41  ;;  %v4368_v42 = vadd.f32 0.0036580483, %v4367_v13  ;;  %v4379_v22 = vadd.f32 0.014752088, %v4378_v7 }
 0x938   :  { %v4403_v44 = vmul.f32 %v8909_v45, %v8909_v45  ;;  %v4718_v19 = vadd.f32 %v4675_v36, %v8153_v61  ;;  %v4354_v33 = vsel %vm4353_vm9, %v5564_v49, %v4350_v47 }
 0x939   :  { %v4588_v10 = vmul.f32 %v4572_v32, %v3900_v1  ;;  %v4359_v61 = vsel %vm4356_vm10, %v4358_v37, %v4354_v33  ;;  %v4380_v30 = vmul.f32 %v4379_v22, %v8896_v5  ;;  %v4369_v16 = vmul.f32 %v4368_v42, %v8896_v5 }
 0x93a   :  { %v8919_v58 = vmin.f32 %v4403_v44, 16.0  ;;  %4734 = vst.msk [vmem:[%s9082_s13 + $0x10] sm:$0xff] %vm62_vm0, %v4718_v19  ;;  %v4360_v8 = vmul.f32 %v4359_v61, %v4335_v25 }
 0x93b   :  { %v3882_v29 = vpop.f32.mrf.mxu3  ;;  %5017 = vmatmul.msk.f32.gmra.mxu0 %vm62_vm0, %v4588_v10  ;;  %v4381_v26 = vadd.f32 0.112945676, %v4380_v30  ;;  %v4370_v20 = vadd.f32 0.05243302, %v4369_v16 }
 0x93c   :  { %v4405_v23 = vmul.f32 2.1237322e-06, %v8919_v58  ;;  %v4416_v63 = vmul.f32 3.8918573e-05, %v8919_v58  ;;  %v8931_v4 = vadd.f32 %v8824_v38, %v3882_v29  ;;  %v5002_v15 = vclamps-f32 %v4360_v8, 1.0 }
 0x93d   :  { %v4382_v11 = vmul.f32 %v4381_v26, %v8896_v5  ;;  %v4371_v36 = vmul.f32 %v4370_v20, %v8896_v5 }
 0x93e   :  { %v4406_v24 = vadd.f32 0.00028619796, %v4405_v23  ;;  %v4417_v14 = vadd.f32 0.001143296, %v4416_v63  ;;  %v8935_v49 = vmul.f32 0.70710677, %v8931_v4 }
 0x93f   :  { %v4573_v28 = vadd.f32 1.0, %v5002_v15  ;;  %v4383_v54 = vadd.f32 0.4994258, %v4382_v11  ;;  %v4372_v22 = vadd.f32 0.18741608, %v4371_v36 }
 0x940   :  { %v4407_v0 = vmul.f32 %v4406_v24, %v8919_v58  ;;  %v4418_v62 = vmul.f32 %v4417_v14, %v8919_v58  ;;  %v4443_v1 = vmul.f32 %v8935_v49, %v8935_v49 }
 0x941   :  { %v4677_v43 = vpop.f32.mrf.mxu0  ;;  %v4589_v39 = vmul.f32 %v4573_v28, %v3901_v55  ;;  %v4384_v57 = vmul.f32 %v4383_v54, %v8896_v5  ;;  %v4373_v63 = vmul.f32 %v4372_v22, %v8896_v5 }
 0x942   :  { %v4419_v41 = vadd.f32 0.014752088, %v4418_v62  ;;  %v8943_v2 = vmin.f32 %v4443_v1, 16.0  ;;  %v4678_v21 = vadd.f32 %v8856_v51, %v4677_v43  ;;  %v4408_v35 = vadd.f32 0.0036580483, %v4407_v0 }
 0x943   :  { %5018 = vmatmul.msk.f32.gmra.mxu0 %vm62_vm0, %v4589_v39  ;;  %v4385_v7 = vadd.f32 1.0, %v4384_v57  ;;  %v4374_v0 = vadd.f32 1.1283791, %v4373_v63 }
 0x944   :  { %v4420_v32 = vmul.f32 %v4419_v41, %v8919_v58  ;;  %v4445_v18 = vmul.f32 2.1237322e-06, %v8943_v2  ;;  %v4456_v31 = vmul.f32 3.8918573e-05, %v8943_v2  ;;  %v4719_v13 = vadd.f32 %v4678_v21, %v8168_v3 }
 0x945   :  { %5565 = vrcp.f32 %v4385_v7  ;;  %v4409_v19 = vmul.f32 %v4408_v35, %v8919_v58  ;;  %v4397_v62 = vand.u32 2147483648, %v4385_v7  ;;  %v4395_v20 = vand.u32 2147483647, %v4385_v7 }
 0x946   :  { %v4421_v44 = vadd.f32 0.112945676, %v4420_v32  ;;  %v4446_v10 = vadd.f32 0.00028619796, %v4445_v18  ;;  %v4457_v47 = vadd.f32 0.001143296, %v4456_v31  ;;  %vm4391_vm12 = vweird.f32 %v4385_v7 }
 0x947   :  { %4735 = vst.msk [vmem:[%s9082_s13 + $0x18] sm:$0xff] %vm62_vm0, %v4719_v13  ;;  %v4410_v33 = vadd.f32 0.05243302, %v4409_v19  ;;  %v4398_v57 = vor.u32 1.1754944e-38, %v4397_v62  ;;  %v4375_v18 = vmul.f32 %v4374_v0, %v8885_v12  ;;  %vm4396_vm14 = vcmp.eq.f32.partialorder %v4395_v20, 8.507059e+37 }
 0x948   :  { %v4422_v37 = vmul.f32 %v4421_v44, %v8919_v58  ;;  %v4447_v3 = vmul.f32 %v4446_v10, %v8943_v2  ;;  %v4458_v42 = vmul.f32 %v4457_v47, %v8943_v2 }
 0x949   :  { %v4411_v24 = vmul.f32 %v4410_v33, %v8919_v58 }
 0x94a   :  { %v4423_v25 = vadd.f32 0.4994258, %v4422_v37  ;;  %v4459_v29 = vadd.f32 0.014752088, %v4458_v42  ;;  %v4448_v30 = vadd.f32 0.0036580483, %v4447_v3 }
 0x94b   :  { %v5566_v23 = vpop.eup %5565  ;;  %v4412_v54 = vadd.f32 0.18741608, %v4411_v24 }
 0x94c   :  { %v4424_v61 = vmul.f32 %v4423_v25, %v8919_v58  ;;  %v4460_v8 = vmul.f32 %v4459_v29, %v8943_v2  ;;  %v4387_v16 = vmul.f32 %v5566_v23, %v4385_v7  ;;  %v4449_v11 = vmul.f32 %v4448_v30, %v8943_v2 }
 0x94d   :  { %vm4392_vm11 = vweird.f32 %v5566_v23  ;;  %v4413_v36 = vmul.f32 %v4412_v54, %v8919_v58  ;;  %v3902_v25 = vmul.f32 0.5, %v8880_v53 }
 0x94e   :  { %v4425_v26 = vadd.f32 1.0, %v4424_v61  ;;  %v4461_v14 = vadd.f32 0.112945676, %v4460_v8  ;;  %v4388_v15 = vsub.f32 1.0, %v4387_v16  ;;  %v4450_v39 = vadd.f32 0.05243302, %v4449_v11  ;;  %vm4393_vm13 = vmor %vm4391_vm12, %vm4392_vm11 }
 0x94f   :  { %v4414_v12 = vadd.f32 1.1283791, %v4413_v36 }
 0x950   :  { %5567 = vrcp.f32 %v4425_v26  ;;  %v4462_v55 = vmul.f32 %v4461_v14, %v8943_v2  ;;  %v4389_v1 = vmul.f32 %v5566_v23, %v4388_v15  ;;  %v4437_v37 = vand.u32 2147483648, %v4425_v26 }
 0x951   :  { %v4680_v28 = vpop.f32.mrf.mxu0  ;;  %v4435_v42 = vand.u32 2147483647, %v4425_v26  ;;  %vm4431_vm1 = vweird.f32 %v4425_v26  ;;  %v4415_v8 = vmul.f32 %v4414_v12, %v8909_v45 }
 0x952   :  { %v4681_v5 = vadd.f32 %v8856_v51, %v4680_v28  ;;  %v4463_v41 = vadd.f32 0.4994258, %v4462_v55  ;;  %v4390_v43 = vadd.f32 %v5566_v23, %v4389_v1 }
 0x953   :  { %vm4436_vm3 = vcmp.eq.f32.partialorder %v4435_v42, 8.507059e+37 }
 0x954   :  { %v4720_v21 = vadd.f32 %v4681_v5, %v8176_v34  ;;  %v4464_v35 = vmul.f32 %v4463_v41, %v8943_v2  ;;  %v4394_v31 = vsel %vm4393_vm13, %v5566_v23, %v4390_v43  ;;  %v4451_v34 = vmul.f32 %v4450_v39, %v8943_v2 }
 0x955   :  { %v4399_v13 = vsel %vm4396_vm14, %v4398_v57, %v4394_v31  ;;  %v4438_v23 = vor.u32 1.1754944e-38, %v4437_v37 }
 0x956   :  { %v5568_v32 = vpop.eup %5567  ;;  %4736 = vst.msk [vmem:[%s9082_s13 + $0x20] sm:$0xff] %vm62_vm0, %v4720_v21  ;;  %v4400_v44 = vmul.f32 %v4399_v13, %v4375_v18  ;;  %v4465_v10 = vadd.f32 1.0, %v4464_v35  ;;  %v4452_v29 = vadd.f32 0.18741608, %v4451_v34 }
 0x957   :  { %v4427_v7 = vmul.f32 %v5568_v32, %v4425_v26  ;;  %vm4432_vm15 = vweird.f32 %v5568_v32 }
 0x958   :  { %v5003_v19 = vclamps-f32 %v4400_v44, 1.0  ;;  %5569 = vrcp.f32 %v4465_v10  ;;  %vm4433_vm2 = vmor %vm4431_vm1, %vm4432_vm15  ;;  %v4453_v15 = vmul.f32 %v4452_v29, %v8943_v2  ;;  %v4477_v62 = vand.u32 2147483648, %v4465_v10 }
 0x959   :  { %v4428_v47 = vsub.f32 1.0, %v4427_v7  ;;  %v4475_v1 = vand.u32 2147483647, %v4465_v10  ;;  %vm4471_vm5 = vweird.f32 %v4465_v10 }
 0x95a   :  { %v4683_v22 = vpop.f32.mrf.mxu0  ;;  %v4574_v33 = vadd.f32 1.0, %v5003_v19  ;;  %v4454_v45 = vadd.f32 1.1283791, %v4453_v15  ;;  %v4478_v54 = vor.u32 1.1754944e-38, %v4477_v62 }
 0x95b   :  { %v4429_v3 = vmul.f32 %v5568_v32, %v4428_v47  ;;  %v4684_v58 = vadd.f32 %v8856_v51, %v4683_v22  ;;  %vm4476_vm7 = vcmp.eq.f32.partialorder %v4475_v1, 8.507059e+37 }
 0x95c   :  { %v4590_v30 = vmul.f32 %v4574_v33, %v3902_v25  ;;  %v4455_v43 = vmul.f32 %v4454_v45, %v8935_v49 }
 0x95d   :  { %v4430_v61 = vadd.f32 %v5568_v32, %v4429_v3  ;;  %v4721_v63 = vadd.f32 %v4684_v58, %v8187_v17  ;;  %v3903_v17 = vmul.f32 0.5, %v8904_v27 }
 0x95e   :  { %v5570_v24 = vpop.eup %5569  ;;  %5019 = vmatmul.msk.f32.gmra.mxu0 %vm62_vm0, %v4590_v30 }
 0x95f   :  { %v4434_v16 = vsel %vm4433_vm2, %v5568_v32, %v4430_v61  ;;  %4737 = vst.msk [vmem:[%s9082_s13 + $0x28] sm:$0xff] %vm62_vm0, %v4721_v63  ;;  %v4467_v26 = vmul.f32 %v5570_v24, %v4465_v10  ;;  %vm4472_vm4 = vweird.f32 %v5570_v24  ;;  %v3904_v32 = vmul.f32 0.5, %v8931_v4 }
 0x960   :  { %v4439_v14 = vsel %vm4436_vm3, %v4438_v23, %v4434_v16  ;;  %vm4473_vm6 = vmor %vm4471_vm5, %vm4472_vm4 }
 0x961   :  { %v4440_v53 = vmul.f32 %v4439_v14, %v4415_v8  ;;  %v4468_v0 = vsub.f32 1.0, %v4467_v26 }
 0x963   :  { %v5004_v11 = vclamps-f32 %v4440_v53, 1.0  ;;  %v4469_v28 = vmul.f32 %v5570_v24, %v4468_v0 }
 0x965   :  { %v4575_v55 = vadd.f32 1.0, %v5004_v11  ;;  %v4470_v20 = vadd.f32 %v5570_v24, %v4469_v28  ;;  %v4686_v5 = vpop.f32.mrf.mxu0 }
 0x966   :  { %v4687_v41 = vadd.f32 %v8856_v51, %v4686_v5 }
 0x967   :  { %v4591_v2 = vmul.f32 %v4575_v55, %v3903_v17  ;;  %v4474_v39 = vsel %vm4473_vm6, %v5570_v24, %v4470_v20 }
 0x968   :  { %v4479_v27 = vsel %vm4476_vm7, %v4478_v54, %v4474_v39  ;;  %v4722_v21 = vadd.f32 %v4687_v41, %v8200_v50 }
 0x969   :  { %5020 = vmatmul.msk.f32.gmra.mxu0 %vm62_vm0, %v4591_v2  ;;  %v4480_v57 = vmul.f32 %v4479_v27, %v4455_v43 }
 0x96a   :  { %4738 = vst.msk [vmem:[%s9082_s13 + $0x30] sm:$0xff] %vm62_vm0, %v4722_v21 }
 0x96b   :  { %v5005_v35 = vclamps-f32 %v4480_v57, 1.0 }
 0x96d   :  { %v4576_v18 = vadd.f32 1.0, %v5005_v35 }
 0x96f   :  { %v4592_v13 = vmul.f32 %v4576_v18, %v3904_v32 }
 0x971   :  { %v3885_v31 = vpop.f32.mrf.mxu3  ;;  %5021 = vmatmul.msk.f32.gmra.mxu0 %vm62_vm0, %v4592_v13 }
 0x972   :  { %v8998_v49 = vadd.f32 %v8824_v38, %v3885_v31 }
 0x974   :  { %v3921_v36 = vmul.f32 0.70710677, %v8998_v49 }
 0x976   :  { %v4483_v50 = vmul.f32 %v3921_v36, %v3921_v36 }
 0x978   :  { %v4484_v7 = vmin.f32 %v4483_v50, 16.0 }
 0x97a   :  { %v4485_v44 = vmul.f32 2.1237322e-06, %v4484_v7  ;;  %v4496_v34 = vmul.f32 3.8918573e-05, %v4484_v7 }
 0x97c   :  { %v4486_v10 = vadd.f32 0.00028619796, %v4485_v44  ;;  %v4497_v47 = vadd.f32 0.001143296, %v4496_v34 }
 0x97e   :  { %v4487_v19 = vmul.f32 %v4486_v10, %v4484_v7  ;;  %v4498_v37 = vmul.f32 %v4497_v47, %v4484_v7 }
 0x97f   :  { %v3888_v12 = vpop.f32.mrf.mxu3 }
 0x980   :  { %v9003_v4 = vadd.f32 %v8824_v38, %v3888_v12  ;;  %v4488_v3 = vadd.f32 0.0036580483, %v4487_v19  ;;  %v4499_v42 = vadd.f32 0.014752088, %v4498_v37 }
 0x982   :  { %v9006_v22 = vmul.f32 0.70710677, %v9003_v4  ;;  %v4500_v25 = vmul.f32 %v4499_v42, %v4484_v7  ;;  %v4489_v29 = vmul.f32 %v4488_v3, %v4484_v7 }
 0x984   :  { %v4523_v33 = vmul.f32 %v9006_v22, %v9006_v22  ;;  %v4501_v58 = vadd.f32 0.112945676, %v4500_v25  ;;  %v4490_v8 = vadd.f32 0.05243302, %v4489_v29  ;;  %v3905_v25 = vmul.f32 0.5, %v8998_v49 }
 0x986   :  { %v4524_v61 = vmin.f32 %v4523_v33, 16.0  ;;  %v4502_v30 = vmul.f32 %v4501_v58, %v4484_v7  ;;  %v4491_v26 = vmul.f32 %v4490_v8, %v4484_v7 }
 0x988   :  { %v4525_v23 = vmul.f32 2.1237322e-06, %v4524_v61  ;;  %v4536_v63 = vmul.f32 3.8918573e-05, %v4524_v61  ;;  %v4503_v16 = vadd.f32 0.4994258, %v4502_v30 }
 0x989   :  { %v4492_v62 = vadd.f32 0.18741608, %v4491_v26 }
 0x98a   :  { %v4526_v24 = vadd.f32 0.00028619796, %v4525_v23  ;;  %v4537_v38 = vadd.f32 0.001143296, %v4536_v63  ;;  %v4504_v14 = vmul.f32 %v4503_v16, %v4484_v7 }
 0x98b   :  { %v4493_v20 = vmul.f32 %v4492_v62, %v4484_v7 }
 0x98c   :  { %v4527_v15 = vmul.f32 %v4526_v24, %v4524_v61  ;;  %v4538_v53 = vmul.f32 %v4537_v38, %v4524_v61  ;;  %v4505_v11 = vadd.f32 1.0, %v4504_v14 }
 0x98d   :  { %v4494_v27 = vadd.f32 1.1283791, %v4493_v20 }
 0x98e   :  { %v4539_v0 = vadd.f32 0.014752088, %v4538_v53  ;;  %5571 = vrcp.f32 %v4505_v11  ;;  %v4528_v17 = vadd.f32 0.0036580483, %v4527_v15  ;;  %v4517_v21 = vand.u32 2147483648, %v4505_v11 }
 0x98f   :  { %v4515_v35 = vand.u32 2147483647, %v4505_v11  ;;  %vm4511_vm9 = vweird.f32 %v4505_v11  ;;  %v4495_v50 = vmul.f32 %v4494_v27, %v3921_v36  ;;  %v3906_v53 = vmul.f32 0.5, %v9003_v4 }
 0x990   :  { %v4540_v45 = vmul.f32 %v4539_v0, %v4524_v61  ;;  %v4529_v28 = vmul.f32 %v4528_v17, %v4524_v61  ;;  %v4518_v13 = vor.u32 1.1754944e-38, %v4517_v21 }
 0x991   :  { %vm4516_vm11 = vcmp.eq.f32.partialorder %v4515_v35, 8.507059e+37 }
 0x992   :  { %v4541_v55 = vadd.f32 0.112945676, %v4540_v45  ;;  %v4530_v41 = vadd.f32 0.05243302, %v4529_v28 }
 0x994   :  { %v4542_v1 = vmul.f32 %v4541_v55, %v4524_v61  ;;  %v5572_v2 = vpop.eup %5571  ;;  %v4531_v18 = vmul.f32 %v4530_v41, %v4524_v61 }
 0x995   :  { %v4507_v5 = vmul.f32 %v5572_v2, %v4505_v11  ;;  %vm4512_vm8 = vweird.f32 %v5572_v2 }
 0x996   :  { %v4543_v54 = vadd.f32 0.4994258, %v4542_v1  ;;  %vm4513_vm10 = vmor %vm4511_vm9, %vm4512_vm8  ;;  %v4532_v34 = vadd.f32 0.18741608, %v4531_v18 }
 0x997   :  { %v4508_v43 = vsub.f32 1.0, %v4507_v5 }
 0x998   :  { %v4544_v39 = vmul.f32 %v4543_v54, %v4524_v61  ;;  %v4533_v3 = vmul.f32 %v4532_v34, %v4524_v61 }
 0x999   :  { %v4509_v57 = vmul.f32 %v5572_v2, %v4508_v43 }
 0x99a   :  { %v4545_v32 = vadd.f32 1.0, %v4544_v39  ;;  %v4534_v23 = vadd.f32 1.1283791, %v4533_v3 }
 0x99b   :  { %v4510_v31 = vadd.f32 %v5572_v2, %v4509_v57 }
 0x99c   :  { %5573 = vrcp.f32 %v4545_v32  ;;  %v4557_v36 = vand.u32 2147483648, %v4545_v32  ;;  %v4555_v8 = vand.u32 2147483647, %v4545_v32  ;;  %vm4551_vm13 = vweird.f32 %v4545_v32 }
 0x99d   :  { %v4514_v44 = vsel %vm4513_vm10, %v5572_v2, %v4510_v31 }
 0x99e   :  { %v4519_v7 = vsel %vm4516_vm11, %v4518_v13, %v4514_v44  ;;  %v4558_v49 = vor.u32 1.1754944e-38, %v4557_v36  ;;  %vm4556_vm15 = vcmp.eq.f32.partialorder %v4555_v8, 8.507059e+37 }
 0x99f   :  { %v4520_v10 = vmul.f32 %v4519_v7, %v4495_v50 }
 0x9a1   :  { %v4689_v47 = vpop.f32.mrf.mxu0  ;;  %v5006_v37 = vclamps-f32 %v4520_v10, 1.0 }
 0x9a2   :  { %v5574_v19 = vpop.eup %5573  ;;  %v4690_v12 = vadd.f32 %v8856_v51, %v4689_v47 }
 0x9a3   :  { %v4547_v42 = vmul.f32 %v5574_v19, %v4545_v32  ;;  %v4577_v33 = vadd.f32 1.0, %v5006_v37  ;;  %vm4552_vm12 = vweird.f32 %v5574_v19 }
 0x9a4   :  { %v4723_v29 = vadd.f32 %v4690_v12, %v8232_v6  ;;  %vm4553_vm14 = vmor %vm4551_vm13, %vm4552_vm12  ;;  %v4535_v6 = vmul.f32 %v4534_v23, %v9006_v22 }
 0x9a5   :  { %v4548_v58 = vsub.f32 1.0, %v4547_v42  ;;  %v4593_v30 = vmul.f32 %v4577_v33, %v3905_v25 }
 0x9a6   :  { %4739 = vst.msk [vmem:[%s9082_s13 + $0x38] sm:$0xff] %vm62_vm0, %v4723_v29 }
 0x9a7   :  { %v4549_v63 = vmul.f32 %v5574_v19, %v4548_v58  ;;  %5022 = vmatmul.msk.f32.gmra.mxu0 %vm62_vm0, %v4593_v30 }
 0x9a9   :  { %v4550_v61 = vadd.f32 %v5574_v19, %v4549_v63 }
 0x9ab   :  { %v4554_v16 = vsel %vm4553_vm14, %v5574_v19, %v4550_v61 }
 0x9ac   :  { %v4559_v24 = vsel %vm4556_vm15, %v4558_v49, %v4554_v16 }
 0x9ad   :  { %v4560_v38 = vmul.f32 %v4559_v24, %v4535_v6 }
 0x9af   :  { %v5007_v14 = vclamps-f32 %v4560_v38, 1.0  ;;  %v4692_v15 = vpop.f32.mrf.mxu0 }
 0x9b0   :  { %v4693_v11 = vadd.f32 %v8856_v51, %v4692_v15 }
 0x9b1   :  { %v4578_v26 = vadd.f32 1.0, %v5007_v14 }
 0x9b2   :  { %v4724_v17 = vadd.f32 %v4693_v11, %v8254_v46 }
 0x9b3   :  { %v4594_v0 = vmul.f32 %v4578_v26, %v3906_v53 }
 0x9b4   :  { %4740 = vst.msk [vmem:[%s9082_s13 + $0x40] sm:$0xff] %vm62_vm0, %v4724_v17 }
 0x9b5   :  { %5023 = vmatmul.msk.f32.gmra.mxu0 %vm62_vm0, %v4594_v0 }
 0x9b8   :  { %v4695_v22 = vpop.f32.mrf.mxu0 }
 0x9b9   :  { %v4696_v45 = vadd.f32 %v8856_v51, %v4695_v22 }
 0x9bb   :  { %v4725_v62 = vadd.f32 %v4696_v45, %v8264_v48 }
 0x9bd   :  { %4741 = vst.msk [vmem:[%s9082_s13 + $0x48] sm:$0xff] %vm62_vm0, %v4725_v62 }
 0x9c0   :  { %v4698_v4 = vpop.f32.mrf.mxu0 }
 0x9c1   :  { %v4699_v46 = vadd.f32 %v8856_v51, %v4698_v4 }
 0x9c3   :  { %v4726_v55 = vadd.f32 %v4699_v46, %v8281_v56 }
 0x9c5   :  { %4742 = vst.msk [vmem:[%s9082_s13 + $0x50] sm:$0xff] %vm62_vm0, %v4726_v55 }
 0x9db   :  { %v4701_v28 = vpop.f32.mrf.mxu0 }
 0x9dc   :  { %v4702_v1 = vadd.f32 %v8856_v51, %v4701_v28 }
 0x9de   :  { %v4727_v48 = vadd.f32 %v4702_v1, %v8306_v40 }
 0x9e0   :  { %4743 = vst.msk [vmem:[%s9082_s13 + $0x58] sm:$0xff] %vm62_vm0, %v4727_v48 }
 0x9e6   :  { %v4704_v2 = vpop.f32.mrf.mxu0 }
 0x9e7   :  { %v4705_v20 = vadd.f32 %v8856_v51, %v4704_v2 }
 0x9e9   :  { %v4728_v56 = vadd.f32 %v4705_v20, %v8314_v59 }
 0x9eb   :  { %4744 = vst.msk [vmem:[%s9082_s13 + $0x60] sm:$0xff] %vm62_vm0, %v4728_v56 }
 0x9ee   :  { %v4707_v5 = vpop.f32.mrf.mxu0 }
 0x9ef   :  { %v4708_v54 = vadd.f32 %v8856_v51, %v4707_v5 }
 0x9f1   :  { %v4729_v40 = vadd.f32 %v4708_v54, %v8322_v52 }
 0x9f3   :  { %4745 = vst.msk [vmem:[%s9082_s13 + $0x68] sm:$0xff] %vm62_vm0, %v4729_v40 }
 0xa24   :  { %v4710_v41 = vpop.f32.mrf.mxu0 }
 0xa25   :  { %v4711_v43 = vadd.f32 %v8856_v51, %v4710_v41 }
 0xa27   :  { %v4730_v59 = vadd.f32 %v4711_v43, %v8352_v9 }
 0xa29   :  { %4746 = vst.msk [vmem:[%s9082_s13 + $0x70] sm:$0xff] %vm62_vm0, %v4730_v59 }
 0xa32   :  { %v4713_v39 = vpop.f32.mrf.mxu0 }
 0xa33   :  { %v4714_v27 = vadd.f32 %v8856_v51, %v4713_v39 }
 0xa35   :  { %v4731_v52 = vadd.f32 %v4714_v27, %v8389_v60 }
 0xa37   :  { %4747 = vst.msk [vmem:[%s9082_s13 + $0x78] sm:$0xff] %vm62_vm0, %v4731_v52 }

</bundles_post_ra>
